<compile_context>
chip_gen: v5e
topology: v5e:2x2
jax: 0.10.0
libtpu: 0.0.40
codegen_flags: <defaults>
</compile_context>

<pallas_src>
import math
import functools

import jax
import jax.numpy as jnp
from jax import lax
from jax.experimental import pallas as pl
from jax.experimental.pallas import tpu as pltpu


# ----------------------------------------------------------------------------
# helpers
# ----------------------------------------------------------------------------
def _l2n(x, axis=-1):
    """F.normalize(x, p=2) == x / max(||x||, 1e-12) (rsqrt -> EUP)."""
    return x * lax.rsqrt(jnp.maximum(jnp.sum(x * x, axis=axis, keepdims=True),
                                     1e-24))


def _round_up(x, m):
    return ((x + m - 1) // m) * m


def _pad_to(a, shape):
    pads = [(0, s - d) for d, s in zip(a.shape, shape)]
    if all(p == (0, 0) for p in pads):
        return a
    return jnp.pad(a, pads)


def _vmem_capacity():
    try:
        return int(pltpu.get_tpu_info().vmem_capacity_bytes)
    except Exception:
        return 64 * 1024 * 1024      # conservative fallback (v7x-sized)


def _pick_row_tile(n_pad):
    for t in (2048, 1024, 512, 256, 128):
        if t <= n_pad and n_pad % t == 0:
            return t
    return n_pad


def _pick_row_chunk(n_pad):
    for t in (512, 256, 128):
        if t <= n_pad and n_pad % t == 0:
            return t
    return n_pad


def _pick_batch_tile(b):
    if b <= 256:
        return b
    for t in (256, 128, 64, 32, 16, 8):
        if b % t == 0:
            return t
    return b


def _pick_adj_col_tile(n_pad, panel_budget):
    # bf16 (n_pad, t) panel, conservatively budgeted for 2 pipeline buffers.
    if 2 * n_pad * n_pad * 2 <= panel_budget:
        return n_pad                 # whole adjacency VMEM-resident, full reuse
    for t in (8192, 4096, 2048, 1024, 512, 256, 128):
        if n_pad % t == 0 and 2 * n_pad * t * 2 <= panel_budget:
            return t
    return 128   # TODO(synk): also tile adjacency rows for very large graphs


def _const_spec(shape):
    nd = len(shape)
    return pl.BlockSpec(shape, lambda i, _nd=nd: (0,) * _nd)


# ----------------------------------------------------------------------------
# ItemConv: all layers of one channel fused in a single kernel
# ----------------------------------------------------------------------------
def _item_graph_kernel(adjT_ref, adj_ref, emb0_hbm, w_item_ref, w_i1_ref,
                       w_i2_ref, out_item_ref, out_hs_ref, emb_sc, x_sc, h_sc,
                       *, n_layers, n_col_tiles, col_tile, row_chunk,
                       n_row_chunks):
    l = pl.program_id(0)      # layer index            (sequential carry)
    k = pl.program_id(1)      # adjacency column panel (reduction axis)

    # one-time init: DMA the layer-0 embedding (x_sc reused as landing buffer)
    @pl.when((l == 0) & (k == 0))
    def _init():
        pltpu.sync_copy(emb0_hbm, x_sc)
        emb0 = x_sc[...]
        out_item_ref[...] = emb0                       # layer-0 term (raw f32)
        emb_sc[...] = emb0.astype(jnp.bfloat16)
        out_hs_ref[...] = jnp.zeros_like(out_hs_ref)

    @pl.when(k == 0)
    def _zero_x():
        x_sc[...] = jnp.zeros_like(x_sc)

    # x += adjacency[:, panel] @ (emb[panel, :] @ W_item[l])  (bf16 MXU, f32 acc)
    start = pl.multiple_of(k * col_tile, col_tile)
    emb_panel = emb_sc[pl.ds(start, col_tile), :]                   # bf16
    y_panel = jnp.dot(emb_panel, w_item_ref[...],
                      preferred_element_type=jnp.float32)
    x_sc[...] += jnp.dot(adj_ref[...], y_panel.astype(jnp.bfloat16),
                         preferred_element_type=jnp.float32)

    # rest of the layer: runs once per layer, fully in VMEM, row-chunked
    @pl.when(k == n_col_tiles - 1)
    def _finish_layer():
        w_i1 = w_i1_ref[...]
        w_i2 = w_i2_ref[...]

        def _h1_softmax(xc):
            h1 = jnp.dot(xc.astype(jnp.bfloat16), w_i1,
                         preferred_element_type=jnp.float32) + xc
            h1 = jnp.maximum(h1, 0.0)
            logits = jnp.dot(h1.astype(jnp.bfloat16), w_i2,
                             preferred_element_type=jnp.float32)    # (C, K)
            m = jnp.max(logits, axis=1, keepdims=True)
            e = jnp.exp(logits - m)
            return e * pl.reciprocal(jnp.sum(e, axis=1, keepdims=True),
                                     approx=True)

        h_sc[...] = jnp.zeros_like(h_sc)

        # pass 1: h = (column-normalised H1.T * adj) @ x   accumulated in (K, d)
        def _p1(c, carry):
            r = pl.multiple_of(c * row_chunk, row_chunk)
            xc = x_sc[pl.ds(r, row_chunk), :]
            h1s = _h1_softmax(xc)
            w = h1s * adjT_ref[pl.ds(r, row_chunk), :]              # (C, K)
            s = jnp.sum(w, axis=1, keepdims=True)
            # exact reciprocal: this normalisation feeds two more matmuls.
            # max(.,tiny) keeps zero-padded rows finite (real zero columns
            # would be inf/NaN in the torch reference too).
            w = w / jnp.maximum(s, 1e-30)
            h_sc[...] += lax.dot_general(
                w.astype(jnp.bfloat16), xc.astype(jnp.bfloat16),
                (((0,), (0,)), ((), ())),
                preferred_element_type=jnp.float32)                 # (K, d)
            return carry
        lax.fori_loop(0, n_row_chunks, _p1, 0)

        h = h_sc[...].astype(jnp.bfloat16)

        # pass 2: hh = H1 @ h, residual, per-layer l2 norms into output sums.
        # H1 is recomputed (cheap vs. the n^2*d adjacency matmul) so no
        # lane-padded (n, K) buffer has to live across the two passes.
        def _p2(c, carry):
            r = pl.multiple_of(c * row_chunk, row_chunk)
            rows = pl.ds(r, row_chunk)
            xc = x_sc[rows, :]
            h1s = _h1_softmax(xc)
            hh = jnp.dot(h1s.astype(jnp.bfloat16), h,
                         preferred_element_type=jnp.float32)        # (C, d)
            emb_new = hh + xc
            emb_sc[rows, :] = emb_new.astype(jnp.bfloat16)
            out_item_ref[rows, :] += _l2n(emb_new)
            out_hs_ref[rows, :] += _l2n(hh)
            return carry
        lax.fori_loop(0, n_row_chunks, _p2, 0)

    # finalize: averaging + the trailing F.normalize (fused, row-chunked)
    @pl.when((l == n_layers - 1) & (k == n_col_tiles - 1))
    def _finalize():
        def _fin(c, carry):
            r = pl.multiple_of(c * row_chunk, row_chunk)
            rows = pl.ds(r, row_chunk)
            item = out_item_ref[rows, :] * (1.0 / (n_layers + 1.0))
            out_item_ref[rows, :] = _l2n(item)
            out_hs_ref[rows, :] = out_hs_ref[rows, :] * (1.0 / n_layers)
            return carry
        lax.fori_loop(0, n_row_chunks, _fin, 0)


def item_graph(adj_t, adjacency_bf16, embedding, w_item_stack, w_i1, w_i2):
    """One ItemConv channel, all layers in one pallas_call.

    adj_t:          (n_pad, K)   f32   (adj.T, zero rows for padded nodes)
    adjacency_bf16: (n_pad, n_pad) bf16
    embedding:      (n_pad, d_pad) f32 (layer-0 embedding)
    w_*:            bf16 weights in matmul (in, out) layout
    Returns (l2-normalised averaged item embeddings, hs), both (n_pad, d_pad).
    """
    n_pad, d_pad = embedding.shape
    kdim = adj_t.shape[1]
    n_layers = w_item_stack.shape[0]
    lane = 128

    cap = _vmem_capacity()
    # fixed resident footprint (emb carry bf16, x acc f32, two f32 outputs,
    # adj.T block, weights), counted conservatively
    resident = (n_pad * d_pad * (2 + 4 + 4 + 4)
                + 2 * n_pad * max(kdim, lane) * 4
                + 4 * d_pad * d_pad * 2
                + 2 * d_pad * max(kdim, lane) * 2)
    margin = 12 * 1024 * 1024          # epilogue temporaries + compiler scratch
    panel_budget = max(2 * 2 * n_pad * lane * 2,
                       int(cap * 0.85) - resident - margin)
    col_tile = _pick_adj_col_tile(n_pad, panel_budget)
    n_col_tiles = n_pad // col_tile
    row_chunk = _pick_row_chunk(n_pad)
    n_row_chunks = n_pad // row_chunk

    kernel = functools.partial(_item_graph_kernel, n_layers=n_layers,
                               n_col_tiles=n_col_tiles, col_tile=col_tile,
                               row_chunk=row_chunk, n_row_chunks=n_row_chunks)

    return pl.pallas_call(
        kernel,
        grid=(n_layers, n_col_tiles),
        in_specs=[
            pl.BlockSpec((n_pad, kdim), lambda l, k: (0, 0)),       # adj.T
            pl.BlockSpec((n_pad, col_tile), lambda l, k: (0, k)),   # adjacency
            pl.BlockSpec(memory_space=pl.ANY),                      # layer-0 emb
            pl.BlockSpec((None, d_pad, d_pad), lambda l, k: (l, 0, 0)),  # W_item
            pl.BlockSpec((d_pad, d_pad), lambda l, k: (0, 0)),      # W_i1[c]
            pl.BlockSpec((d_pad, kdim), lambda l, k: (0, 0)),       # W_i2[c]
        ],
        out_specs=(pl.BlockSpec((n_pad, d_pad), lambda l, k: (0, 0)),
                   pl.BlockSpec((n_pad, d_pad), lambda l, k: (0, 0))),
        out_shape=(jax.ShapeDtypeStruct((n_pad, d_pad), jnp.float32),
                   jax.ShapeDtypeStruct((n_pad, d_pad), jnp.float32)),
        scratch_shapes=[pltpu.VMEM((n_pad, d_pad), jnp.bfloat16),   # emb carry
                        pltpu.VMEM((n_pad, d_pad), jnp.float32),    # x acc
                        pltpu.VMEM((kdim, d_pad), jnp.float32)],    # h (K, d)
        compiler_params=pltpu.CompilerParams(
            dimension_semantics=("arbitrary", "arbitrary"),
            vmem_limit_bytes=int(cap * 0.92)),
    )(adj_t, adjacency_bf16, embedding, w_item_stack, w_i1, w_i2)


# ----------------------------------------------------------------------------
# cross-view channel attention (row-tiled, parallel)
# ----------------------------------------------------------------------------
def _cross_view_kernel(h1_ref, h2_ref, h3_ref, v_ref, out_ref):
    h1, h2, h3 = h1_ref[...], h2_ref[...], h3_ref[...]
    v = v_ref[...]                                             # (d, 1)
    w1 = jnp.dot(h1, v, preferred_element_type=jnp.float32)    # (TM, 1)
    w2 = jnp.dot(h2, v, preferred_element_type=jnp.float32)
    w3 = jnp.dot(h3, v, preferred_element_type=jnp.float32)
    m = jnp.maximum(jnp.maximum(w1, w2), w3)
    e1 = jnp.exp(w1 - m)
    e2 = jnp.exp(w2 - m)
    e3 = jnp.exp(w3 - m)
    inv = pl.reciprocal(e1 + e2 + e3, approx=True)
    out_ref[...] = (e1 * h1 + e2 * h2 + e3 * h3) * inv


def cross_view(h1, h2, h3, attention, attention_mat):
    n_pad, d_pad = h1.shape
    # sum(attention * (h @ A), 1) == h @ (A @ attention^T): one (d,1) vector.
    v = attention_mat @ attention.T
    tm = _pick_row_tile(n_pad)
    row_spec = pl.BlockSpec((tm, d_pad), lambda i: (i, 0))
    vmem_limit = min(64 * 1024 * 1024, _vmem_capacity() // 2)
    return pl.pallas_call(
        _cross_view_kernel,
        grid=(n_pad // tm,),
        in_specs=[row_spec, row_spec, row_spec,
                  pl.BlockSpec((d_pad, 1), lambda i: (0, 0))],
        out_specs=pl.BlockSpec((tm, d_pad), lambda i: (i, 0)),
        out_shape=jax.ShapeDtypeStruct((n_pad, d_pad), jnp.float32),
        compiler_params=pltpu.CompilerParams(
            dimension_semantics=("parallel",),
            vmem_limit_bytes=vmem_limit),
    )(h1, h2, h3, v)


# ----------------------------------------------------------------------------
# positional soft-attention session pooling (batch-tiled, parallel)
# w_k * F.normalize fused into the epilogue (so scores doesn't redo it)
# ----------------------------------------------------------------------------
def _sess_emb_kernel(wk_ref, seq_ref, slen_ref, mask_ref, pos_ref, w1p_ref,
                     w1s_ref, g1w_ref, g1b_ref, g2w_ref, g2b_ref, w2_ref,
                     out_ref):
    seq = seq_ref[...]                                          # (TB, L, D)
    tb, L, d = seq.shape
    hs = jnp.sum(seq, axis=1) / slen_ref[...]                   # (TB, D)
    pos_part = jnp.dot(pos_ref[...], w1p_ref[...],
                       preferred_element_type=jnp.float32)      # (L, D)
    # (TB, L, D) -> (TB*L, D) is layout-preserving because L % 8 == 0 (padded).
    seq2 = seq.reshape(tb * L, d)
    seq_part = jnp.dot(seq2, w1s_ref[...], preferred_element_type=jnp.float32)
    nh = jnp.tanh(pos_part[None, :, :] + seq_part.reshape(tb, L, d))
    g1 = jnp.dot(nh.reshape(tb * L, d), g1w_ref[...],
                 preferred_element_type=jnp.float32) + g1b_ref[...]
    g2 = jnp.dot(hs, g2w_ref[...],
                 preferred_element_type=jnp.float32) + g2b_ref[...]
    nh = jax.nn.sigmoid(g1.reshape(tb, L, d) + g2[:, None, :])
    beta = jnp.sum(nh * w2_ref[...][None, :, :], axis=-1, keepdims=True)
    beta = beta * mask_ref[...]
    sel = jnp.sum(beta * seq, axis=1)                           # (TB, D)
    out_ref[...] = wk_ref[0] * _l2n(sel)                        # w_k * normalize


def sess_emb(w_k, seq_h, session_len, mask3, pos_emb, w1_pos, w1_seq,
             glu1_w, glu1_b, glu2_w, glu2_b, w_2_row):
    b, L, d = seq_h.shape
    tb = _pick_batch_tile(b)
    wk = jnp.asarray([w_k], dtype=jnp.float32)
    vmem_limit = min(64 * 1024 * 1024, _vmem_capacity() // 2)
    return pl.pallas_call(
        _sess_emb_kernel,
        grid=(b // tb,),
        in_specs=[pl.BlockSpec(memory_space=pltpu.MemorySpace.SMEM),   # w_k
                  pl.BlockSpec((tb, L, d), lambda i: (i, 0, 0)),
                  pl.BlockSpec((tb, 1), lambda i: (i, 0)),
                  pl.BlockSpec((tb, L, 1), lambda i: (i, 0, 0)),
                  _const_spec((L, d)),
                  _const_spec((d, d)), _const_spec((d, d)),
                  _const_spec((d, d)), _const_spec((1, d)),
                  _const_spec((d, d)), _const_spec((1, d)),
                  _const_spec((1, d))],
        out_specs=pl.BlockSpec((tb, d), lambda i: (i, 0)),
        out_shape=jax.ShapeDtypeStruct((b, d), jnp.float32),
        compiler_params=pltpu.CompilerParams(
            dimension_semantics=("parallel",),
            vmem_limit_bytes=vmem_limit),
    )(wk, seq_h, session_len, mask3, pos_emb, w1_pos, w1_seq,
      glu1_w, glu1_b, glu2_w, glu2_b, w_2_row)


# ----------------------------------------------------------------------------
# scores: L2-normalize items + (w_k * normalized sess) @ item^T, item-row tiled
# ----------------------------------------------------------------------------
def _scores_kernel(sess_ref, item_ref, out_ref):
    item_n = _l2n(item_ref[...], axis=1)
    out_ref[...] = lax.dot_general(
        sess_ref[...], item_n, (((1,), (1,)), ((), ())),
        preferred_element_type=jnp.float32)


def scores_matmul(sess_wk, item):
    b, d_pad = sess_wk.shape
    n_pad = item.shape[0]
    tn = _pick_row_tile(n_pad)
    vmem_limit = min(64 * 1024 * 1024, _vmem_capacity() // 2)
    return pl.pallas_call(
        _scores_kernel,
        grid=(n_pad // tn,),
        in_specs=[pl.BlockSpec((b, d_pad), lambda i: (0, 0)),
                  pl.BlockSpec((tn, d_pad), lambda i: (i, 0))],
        out_specs=pl.BlockSpec((b, tn), lambda i: (0, i)),
        out_shape=jax.ShapeDtypeStruct((b, n_pad), jnp.float32),
        compiler_params=pltpu.CompilerParams(
            dimension_semantics=("parallel",),
            vmem_limit_bytes=vmem_limit),
    )(sess_wk, item)


# ----------------------------------------------------------------------------
# MDHG forward (orchestration; mirrors the PyTorch module)
# ----------------------------------------------------------------------------
def mdhg_forward(params, data, cfg, train=True, perm_key=None):
    layers, w_k, lam = cfg['layers'], cfg['w_k'], cfg['lam']
    n_node, batch_size = cfg['n_node'], cfg['batch_size']
    d = params['embedding1'].shape[1]
    n_pad = _round_up(n_node, 128)
    d_pad = _round_up(d, 128)
    bf16 = jnp.bfloat16

    # ---- pad + cast graph tensors and parameters (once per forward) --------
    # TODO(synk): in a real train loop, pre-pad / pre-cast these once outside
    #             the step instead of once per forward.
    adjacency   = _pad_to(data['adjacency'],   (n_pad, n_pad)).astype(bf16)
    adjacency_T = _pad_to(data['adjacency_T'], (n_pad, n_pad)).astype(bf16)
    adjacency1  = _pad_to(data['adjacency1'],  (n_pad, n_pad)).astype(bf16)
    adjT1 = _pad_to(data['adj1'], (data['adj1'].shape[0], n_pad)).T   # (n_pad,K1)
    adjT2 = _pad_to(data['adj2'], (data['adj2'].shape[0], n_pad)).T
    adjT3 = _pad_to(data['R1'],   (data['R1'].shape[0],   n_pad)).T

    emb1 = _pad_to(params['embedding1'], (n_pad, d_pad))
    emb2 = _pad_to(params['embedding2'], (n_pad, d_pad))
    emb3 = _pad_to(params['embedding3'], (n_pad, d_pad))

    w_item = jnp.stack([_pad_to(w, (d_pad, d_pad)) for w in params['w_item']],
                       axis=0).astype(bf16)
    w_i1 = [_pad_to(w, (d_pad, d_pad)).astype(bf16) for w in params['w_i1']]
    w_i2 = [_pad_to(w, (d_pad, w.shape[1])).astype(bf16) for w in params['w_i2']]

    # ---- ItemConv: one fused kernel per channel ----------------------------
    # TODO(synk): on v7x, put the 3 channels on a CORE_PARALLEL grid axis.
    ie1, h1 = item_graph(adjT1, adjacency,   emb1, w_item, w_i1[0], w_i2[0])
    ie2, h2 = item_graph(adjT2, adjacency_T, emb2, w_item, w_i1[1], w_i2[1])
    ie3, h3 = item_graph(adjT3, adjacency1,  emb3, w_item, w_i1[2], w_i2[2])
    # ie* already include the trailing F.normalize (fused in-kernel).

    attn   = _pad_to(params['attention'],     (1, d_pad))
    attn_m = _pad_to(params['attention_mat'], (d_pad, d_pad))
    item_embeddings_i = cross_view(ie1, ie2, ie3, attn, attn_m)

    # --- session embedding (non-'Tmall' path: with positional embedding) ----
    L = data['reversed_sess_item'].shape[1]
    L_pad = _round_up(L, 8)
    rev = _pad_to(data['reversed_sess_item'], (batch_size, L_pad))
    mask3 = _pad_to(data['mask'].astype(jnp.float32),
                    (batch_size, L_pad))[:, :, None]
    padded_items = jnp.concatenate(
        [jnp.zeros((1, d_pad), jnp.float32), item_embeddings_i], axis=0)
    seq_h = jnp.take(padded_items, rev, axis=0)           # XLA gather (glue)
    pos_emb = _pad_to(params['pos_embedding'][:L], (L_pad, d_pad))
    w1p = _pad_to(params['w_1'][:d, :], (d_pad, d_pad))
    w1s = _pad_to(params['w_1'][d:, :], (d_pad, d_pad))
    g1w = _pad_to(params['glu1_w'], (d_pad, d_pad))
    g1b = _pad_to(params['glu1_b'], (1, d_pad))
    g2w = _pad_to(params['glu2_w'], (d_pad, d_pad))
    g2b = _pad_to(params['glu2_b'], (1, d_pad))
    w2r = _pad_to(params['w_2'].T,  (1, d_pad))

    sess_wk = sess_emb(w_k, seq_h, data['session_len'], mask3, pos_emb,
                       w1p, w1s, g1w, g1b, g2w, g2b, w2r)   # w_k*normalize fused

    scores_full = scores_matmul(sess_wk, item_embeddings_i)
    scores_item = scores_full[:, :n_node]

    # cross-entropy (mean reduction), scalar assembly in plain JAX
    tar = data['tar']
    m = jnp.max(scores_item, axis=1)
    lse = m + jnp.log(jnp.sum(jnp.exp(scores_item - m[:, None]), axis=1))
    loss_item = jnp.mean(lse - scores_item[jnp.arange(batch_size), tar])

    if train:
        idx = data['session_item'] - 1
        idx = jnp.where(idx < 0, idx + n_node, idx)      # torch wraps index -1
        gh1 = h1[idx][..., :d]                           # slice padded lanes so
        gh2 = h2[idx][..., :d]                           # the mean matches torch
        gh3 = h3[idx][..., :d]

        def sc(a, b):
            return jnp.mean((a - b) ** 2)

        # TODO(synk): torch.randperm is nondeterministic; fixed-seed perms here.
        k1, k2, k3 = jax.random.split(perm_key, 3)

        def shuf(x, k):
            return x[jax.random.permutation(k, batch_size)]

        pos = sc(gh1, gh2); neg = sc(shuf(gh1, k1), gh2)
        l1 = jnp.sum(-jnp.log(jax.nn.sigmoid(pos - neg)))
        pos = sc(gh2, gh3); neg = sc(shuf(gh2, k2), gh3)
        l2_ = jnp.sum(-jnp.log(jax.nn.sigmoid(pos - neg)))
        pos = sc(gh1, gh3); neg = sc(shuf(gh1, k3), gh3)
        l3 = jnp.sum(-jnp.log(jax.nn.sigmoid(pos - neg)))
        con_loss = lam * (l1 + l2_ + l3)
    else:
        con_loss = jnp.float32(0.0)

    return con_loss, loss_item, scores_item, 0


# ----------------------------------------------------------------------------
# deterministic parameter / input construction
# ----------------------------------------------------------------------------
def init_params(key, n_node, emb_size, layers, K1, K2, K3, pos_len):
    stdv = 1.0 / math.sqrt(emb_size)
    keys = iter(jax.random.split(key, 32))

    def u(shape):
        return jax.random.uniform(next(keys), shape, jnp.float32, -stdv, stdv)

    return {
        'embedding1': u((n_node, emb_size)),
        'embedding2': u((n_node, emb_size)),
        'embedding3': u((n_node, emb_size)),
        'pos_embedding': u((pos_len, emb_size)),
        # linear weights stored in matmul layout (in, out)
        'w_item': [u((emb_size, emb_size)) for _ in range(layers)],
        'w_i1': [u((emb_size, emb_size)) for _ in range(3)],
        'w_i2': [u((emb_size, K)) for K in (K1, K2, K3)],
        'w_1': u((2 * emb_size, emb_size)),
        'w_2': u((emb_size, 1)),
        'glu1_w': u((emb_size, emb_size)),
        'glu1_b': u((1, emb_size)),
        'glu2_w': u((emb_size, emb_size)),
        'glu2_b': u((1, emb_size)),
        'attention': u((1, emb_size)),
        'attention_mat': u((emb_size, emb_size)),
    }


def make_data(key, n_node, batch_size, seq_len, K1, K2, K3):
    ks = jax.random.split(key, 10)

    def row_norm(a):
        return a / jnp.sum(a, axis=1, keepdims=True)

    adjacency = row_norm(jax.random.uniform(ks[0], (n_node, n_node), jnp.float32,
                                            0.1, 1.0))
    adjacency_T = adjacency.T
    adjacency1 = row_norm(jax.random.uniform(ks[1], (n_node, n_node), jnp.float32,
                                             0.1, 1.0))
    adj1 = jax.random.uniform(ks[2], (K1, n_node), jnp.float32, 0.1, 1.0)
    adj2 = jax.random.uniform(ks[3], (K2, n_node), jnp.float32, 0.1, 1.0)
    R1 = jax.random.uniform(ks[4], (K3, n_node), jnp.float32, 0.1, 1.0)

    lens = jax.random.randint(ks[5], (batch_size,), 3, seq_len + 1)
    pos = jnp.arange(seq_len)[None, :]
    mask = (pos < lens[:, None]).astype(jnp.float32)
    items = jax.random.randint(ks[6], (batch_size, seq_len), 1, n_node + 1)
    session_item = jnp.where(mask > 0, items, 0).astype(jnp.int32)
    # reversed within the valid prefix, left-aligned, zero-padded
    rev_pos = jnp.clip(lens[:, None] - 1 - pos, 0, seq_len - 1)
    reversed_sess_item = jnp.where(
        mask > 0, jnp.take_along_axis(session_item, rev_pos, axis=1), 0
    ).astype(jnp.int32)
    session_len = lens.astype(jnp.float32)[:, None]
    tar = jax.random.randint(ks[7], (batch_size,), 0, n_node)

    return {
        'adjacency': adjacency, 'adjacency_T': adjacency_T,
        'adjacency1': adjacency1,
        'adj1': adj1, 'adj2': adj2, 'R1': R1,
        'session_item': session_item, 'reversed_sess_item': reversed_sess_item,
        'session_len': session_len, 'mask': mask, 'tar': tar,
    }


# ----------------------------------------------------------------------------
if __name__ == "__main__":
    cfg = dict(n_node=64, emb_size=32, batch_size=8, seq_len=8,
               layers=2, K1=8, K2=16, K3=8, w_k=10, lam=0.005, pos_len=200)

    key = jax.random.PRNGKey(0)
    k_params, k_data, k_perm = jax.random.split(key, 3)

    params = init_params(k_params, cfg['n_node'], cfg['emb_size'], cfg['layers'],
                         cfg['K1'], cfg['K2'], cfg['K3'], cfg['pos_len'])
    data = make_data(k_data, cfg['n_node'], cfg['batch_size'], cfg['seq_len'],
                     cfg['K1'], cfg['K2'], cfg['K3'])

    con_loss, loss_item, scores_item, _ = mdhg_forward(
        params, data, cfg, train=True, perm_key=k_perm)

    jax.block_until_ready((con_loss, loss_item, scores_item))
    print("KERNEL_OK")
</pallas_src>

<mosaic_0001>
module attributes {stable_mosaic.version = 11 : i64} {
  func.func @_item_graph_kernel(%arg0: i32, %arg1: i32, %arg2: memref<128x8xf32, #tpu.memory_space<vmem>>, %arg3: memref<128x128xbf16, #tpu.memory_space<vmem>>, %arg4: memref<128x128xf32, #tpu.memory_space<any>>, %arg5: memref<1x128x128xbf16, #tpu.memory_space<vmem>>, %arg6: memref<128x128xbf16, #tpu.memory_space<vmem>>, %arg7: memref<128x8xbf16, #tpu.memory_space<vmem>>, %arg8: memref<128x128xf32, #tpu.memory_space<vmem>>, %arg9: memref<128x128xf32, #tpu.memory_space<vmem>>, %arg10: memref<128x128xbf16, #tpu.memory_space<vmem>>, %arg11: memref<128x128xf32, #tpu.memory_space<vmem>>, %arg12: memref<8x128xf32, #tpu.memory_space<vmem>>) attributes {dimension_semantics = [#tpu.dimension_semantics<arbitrary>, #tpu.dimension_semantics<arbitrary>], iteration_bounds = array<i64: 2, 1>, scalar_prefetch = 0 : i64, scratch_operands = 3 : i64, tpu.core_type = #tpu.core_type<tc>, window_params = [{pipeline_mode = #tpu.pipeline_mode<synchronous>, transform_indices = @transform_0, window_bounds = array<i64: 128, 8>}, {transform_indices = @transform_1, window_bounds = array<i64: 128, 128>}, {}, {transform_indices = @transform_3, window_bounds = array<i64: 1, 128, 128>}, {pipeline_mode = #tpu.pipeline_mode<synchronous>, transform_indices = @transform_4, window_bounds = array<i64: 128, 128>}, {pipeline_mode = #tpu.pipeline_mode<synchronous>, transform_indices = @transform_5, window_bounds = array<i64: 128, 8>}, {pipeline_mode = #tpu.pipeline_mode<synchronous>, transform_indices = @transform_6, window_bounds = array<i64: 128, 128>}, {pipeline_mode = #tpu.pipeline_mode<synchronous>, transform_indices = @transform_7, window_bounds = array<i64: 128, 128>}]} {
    %c0_i32 = arith.constant 0 : i32
    %0 = arith.cmpi eq, %arg0, %c0_i32 : i32
    %c0_i32_0 = arith.constant 0 : i32
    %1 = arith.cmpi eq, %arg1, %c0_i32_0 : i32
    %2 = arith.andi %0, %1 : i1
    %3 = arith.extui %2 : i1 to i32
    %c0_i32_1 = arith.constant 0 : i32
    %4 = arith.cmpi ne, %3, %c0_i32_1 : i32
    scf.if %4 {
      "tpu.region"() ({
        %35 = tpu.sem_alloc : memref<!tpu.dma_semaphore, #tpu.memory_space<semaphore_mem>>
        tpu.enqueue_dma source(%arg4 : memref<128x128xf32, #tpu.memory_space<any>>) target(%arg11 : memref<128x128xf32, #tpu.memory_space<vmem>>) target_semaphore(%35 : memref<!tpu.dma_semaphore, #tpu.memory_space<semaphore_mem>>)
        tpu.wait_dma2 semaphore(%35 : memref<!tpu.dma_semaphore, #tpu.memory_space<semaphore_mem>>) src(%arg4 : memref<128x128xf32, #tpu.memory_space<any>>) dst(%arg11 : memref<128x128xf32, #tpu.memory_space<vmem>>)
        tpu.yield
      }) : () -> ()
      %c0_18 = arith.constant 0 : index
      %c0_19 = arith.constant 0 : index
      %29 = vector.load %arg11[%c0_18, %c0_19] : memref<128x128xf32, #tpu.memory_space<vmem>>, vector<128x128xf32>
      %c0_20 = arith.constant 0 : index
      %c0_21 = arith.constant 0 : index
      %30 = vector.load %arg8[%c0_20, %c0_21] : memref<128x128xf32, #tpu.memory_space<vmem>>, vector<128x128xf32>
      tpu.vector_store %arg8[%c0_20, %c0_21], %29 {strides = array<i32>} : memref<128x128xf32, #tpu.memory_space<vmem>>, vector<128x128xf32>,
      %31 = arith.truncf %29 : vector<128x128xf32> to vector<128x128xbf16>
      %c0_22 = arith.constant 0 : index
      %c0_23 = arith.constant 0 : index
      %32 = vector.load %arg10[%c0_22, %c0_23] : memref<128x128xbf16, #tpu.memory_space<vmem>>, vector<128x128xbf16>
      tpu.vector_store %arg10[%c0_22, %c0_23], %31 {strides = array<i32>} : memref<128x128xbf16, #tpu.memory_space<vmem>>, vector<128x128xbf16>,
      %cst_24 = arith.constant 0.000000e+00 : f32
      %33 = vector.broadcast %cst_24 : f32 to vector<128x128xf32>
      %c0_25 = arith.constant 0 : index
      %c0_26 = arith.constant 0 : index
      %34 = vector.load %arg9[%c0_25, %c0_26] : memref<128x128xf32, #tpu.memory_space<vmem>>, vector<128x128xf32>
      tpu.vector_store %arg9[%c0_25, %c0_26], %33 {strides = array<i32>} : memref<128x128xf32, #tpu.memory_space<vmem>>, vector<128x128xf32>,
    } else {
    }
    %c0_i32_2 = arith.constant 0 : i32
    %5 = arith.cmpi eq, %arg1, %c0_i32_2 : i32
    %6 = arith.extui %5 : i1 to i32
    %c0_i32_3 = arith.constant 0 : i32
    %7 = arith.cmpi ne, %6, %c0_i32_3 : i32
    scf.if %7 {
      %cst_18 = arith.constant 0.000000e+00 : f32
      %29 = vector.broadcast %cst_18 : f32 to vector<128x128xf32>
      %c0_19 = arith.constant 0 : index
      %c0_20 = arith.constant 0 : index
      %30 = vector.load %arg11[%c0_19, %c0_20] : memref<128x128xf32, #tpu.memory_space<vmem>>, vector<128x128xf32>
      tpu.vector_store %arg11[%c0_19, %c0_20], %29 {strides = array<i32>} : memref<128x128xf32, #tpu.memory_space<vmem>>, vector<128x128xf32>,
    } else {
    }
    %c128_i32 = arith.constant 128 : i32
    %8 = arith.muli %arg1, %c128_i32 : i32
    %9 = tpu.assume_multiple %8, 128 : i32
    %10 = arith.index_cast %9 : i32 to index
    %c0 = arith.constant 0 : index
    %11 = vector.load %arg10[%10, %c0] : memref<128x128xbf16, #tpu.memory_space<vmem>>, vector<128x128xbf16>
    %c0_4 = arith.constant 0 : index
    %c0_5 = arith.constant 0 : index
    %c0_6 = arith.constant 0 : index
    %12 = vector.load %arg5[%c0_4, %c0_5, %c0_6] : memref<1x128x128xbf16, #tpu.memory_space<vmem>>, vector<1x128x128xbf16>
    %13 = vector.shape_cast %12 : vector<1x128x128xbf16> to vector<128x128xbf16>
    %cst = arith.constant dense<0.000000e+00> : vector<128x128xf32>
    %14 = tpu.matmul %11, %13, %cst {dimension_numbers = #tpu.dot_dimension_numbers<[1], [0], [0], [1], [0, 0, 1, 1], [], []>} : vector<128x128xbf16>, vector<128x128xbf16>, vector<128x128xf32> -> vector<128x128xf32>
    %c0_7 = arith.constant 0 : index
    %c0_8 = arith.constant 0 : index
    %15 = vector.load %arg11[%c0_7, %c0_8] : memref<128x128xf32, #tpu.memory_space<vmem>>, vector<128x128xf32>
    %c0_9 = arith.constant 0 : index
    %c0_10 = arith.constant 0 : index
    %16 = vector.load %arg3[%c0_9, %c0_10] : memref<128x128xbf16, #tpu.memory_space<vmem>>, vector<128x128xbf16>
    %17 = arith.truncf %14 : vector<128x128xf32> to vector<128x128xbf16>
    %cst_11 = arith.constant dense<0.000000e+00> : vector<128x128xf32>
    %18 = tpu.matmul %16, %17, %cst_11 {dimension_numbers = #tpu.dot_dimension_numbers<[1], [0], [0], [1], [0, 0, 1, 1], [], []>} : vector<128x128xbf16>, vector<128x128xbf16>, vector<128x128xf32> -> vector<128x128xf32>
    %19 = arith.addf %15, %18 : vector<128x128xf32>
    %c0_12 = arith.constant 0 : index
    %c0_13 = arith.constant 0 : index
    %20 = vector.load %arg11[%c0_12, %c0_13] : memref<128x128xf32, #tpu.memory_space<vmem>>, vector<128x128xf32>
    tpu.vector_store %arg11[%c0_12, %c0_13], %19 {strides = array<i32>} : memref<128x128xf32, #tpu.memory_space<vmem>>, vector<128x128xf32>,
    %c0_i32_14 = arith.constant 0 : i32
    %21 = arith.cmpi eq, %arg1, %c0_i32_14 : i32
    %22 = arith.extui %21 : i1 to i32
    %c0_i32_15 = arith.constant 0 : i32
    %23 = arith.cmpi ne, %22, %c0_i32_15 : i32
    scf.if %23 {
      %c0_18 = arith.constant 0 : index
      %c0_19 = arith.constant 0 : index
      %29 = vector.load %arg6[%c0_18, %c0_19] : memref<128x128xbf16, #tpu.memory_space<vmem>>, vector<128x128xbf16>
      %c0_20 = arith.constant 0 : index
      %c0_21 = arith.constant 0 : index
      %30 = vector.load %arg7[%c0_20, %c0_21] : memref<128x8xbf16, #tpu.memory_space<vmem>>, vector<128x8xbf16>
      %cst_22 = arith.constant 0.000000e+00 : f32
      %31 = vector.broadcast %cst_22 : f32 to vector<8x128xf32>
      %c0_23 = arith.constant 0 : index
      %c0_24 = arith.constant 0 : index
      %32 = vector.load %arg12[%c0_23, %c0_24] : memref<8x128xf32, #tpu.memory_space<vmem>>, vector<8x128xf32>
      tpu.vector_store %arg12[%c0_23, %c0_24], %31 {strides = array<i32>} : memref<8x128xf32, #tpu.memory_space<vmem>>, vector<8x128xf32>,
      %c0_i32_25 = arith.constant 0 : i32
      %c128_i32_26 = arith.constant 128 : i32
      %33 = arith.muli %c0_i32_25, %c128_i32_26 : i32
      %34 = tpu.assume_multiple %33, 128 : i32
      %35 = arith.index_cast %34 : i32 to index
      %c0_27 = arith.constant 0 : index
      %36 = vector.load %arg11[%35, %c0_27] : memref<128x128xf32, #tpu.memory_space<vmem>>, vector<128x128xf32>
      %37 = arith.truncf %36 : vector<128x128xf32> to vector<128x128xbf16>
      %cst_28 = arith.constant dense<0.000000e+00> : vector<128x128xf32>
      %38 = tpu.matmul %37, %29, %cst_28 {dimension_numbers = #tpu.dot_dimension_numbers<[1], [0], [0], [1], [0, 0, 1, 1], [], []>} : vector<128x128xbf16>, vector<128x128xbf16>, vector<128x128xf32> -> vector<128x128xf32>
      %39 = arith.addf %38, %36 : vector<128x128xf32>
      %cst_29 = arith.constant 0.000000e+00 : f32
      %40 = vector.broadcast %cst_29 : f32 to vector<128x128xf32>
      %41 = arith.maximumf %39, %40 : vector<128x128xf32>
      %42 = arith.truncf %41 : vector<128x128xf32> to vector<128x128xbf16>
      %cst_30 = arith.constant dense<0.000000e+00> : vector<128x8xf32>
      %43 = tpu.matmul %42, %30, %cst_30 {dimension_numbers = #tpu.dot_dimension_numbers<[1], [0], [0], [1], [0, 0, 1, 1], [], []>} : vector<128x128xbf16>, vector<128x8xbf16>, vector<128x8xf32> -> vector<128x8xf32>
      %cst_31 = arith.constant dense<0xFF800000> : vector<128xf32>
      %44 = vector.multi_reduction <maximumf>, %43, %cst_31 [1] : vector<128x8xf32> to vector<128xf32>
      %45 = vector.shape_cast %44 : vector<128xf32> to vector<128x1xf32>
      %46 = vector.broadcast %45 : vector<128x1xf32> to vector<128x8xf32>
      %47 = arith.subf %43, %46 : vector<128x8xf32>
      %48 = math.exp %47 : vector<128x8xf32>
      %cst_32 = arith.constant dense<0.000000e+00> : vector<128xf32>
      %49 = vector.multi_reduction <add>, %48, %cst_32 [1] : vector<128x8xf32> to vector<128xf32>
      %50 = vector.shape_cast %49 : vector<128xf32> to vector<128x1xf32>
      %51 = tpu.reciprocal %50 {approx = true} : vector<128x1xf32> -> vector<128x1xf32>
      %52 = vector.broadcast %51 : vector<128x1xf32> to vector<128x8xf32>
      %53 = arith.mulf %48, %52 : vector<128x8xf32>
      %54 = arith.index_cast %34 : i32 to index
      %c0_33 = arith.constant 0 : index
      %55 = vector.load %arg2[%54, %c0_33] : memref<128x8xf32, #tpu.memory_space<vmem>>, vector<128x8xf32>
      %56 = arith.mulf %53, %55 : vector<128x8xf32>
      %cst_34 = arith.constant dense<0.000000e+00> : vector<128xf32>
      %57 = vector.multi_reduction <add>, %56, %cst_34 [1] : vector<128x8xf32> to vector<128xf32>
      %58 = vector.shape_cast %57 : vector<128xf32> to vector<128x1xf32>
      %cst_35 = arith.constant 1.000000e-30 : f32
      %59 = vector.broadcast %cst_35 : f32 to vector<128x1xf32>
      %60 = arith.maximumf %58, %59 : vector<128x1xf32>
      %61 = vector.broadcast %60 : vector<128x1xf32> to vector<128x8xf32>
      %62 = arith.divf %56, %61 : vector<128x8xf32>
      %c0_36 = arith.constant 0 : index
      %c0_37 = arith.constant 0 : index
      %63 = vector.load %arg12[%c0_36, %c0_37] : memref<8x128xf32, #tpu.memory_space<vmem>>, vector<8x128xf32>
      %64 = arith.truncf %62 : vector<128x8xf32> to vector<128x8xbf16>
      %65 = arith.truncf %36 : vector<128x128xf32> to vector<128x128xbf16>
      %cst_38 = arith.constant dense<0.000000e+00> : vector<8x128xf32>
      %66 = tpu.matmul %64, %65, %cst_38 {dimension_numbers = #tpu.dot_dimension_numbers<[0], [0], [1], [1], [0, 1, 1, 1], [], []>} : vector<128x8xbf16>, vector<128x128xbf16>, vector<8x128xf32> -> vector<8x128xf32>
      %67 = arith.addf %63, %66 : vector<8x128xf32>
      %c0_39 = arith.constant 0 : index
      %c0_40 = arith.constant 0 : index
      %68 = vector.load %arg12[%c0_39, %c0_40] : memref<8x128xf32, #tpu.memory_space<vmem>>, vector<8x128xf32>
      tpu.vector_store %arg12[%c0_39, %c0_40], %67 {strides = array<i32>} : memref<8x128xf32, #tpu.memory_space<vmem>>, vector<8x128xf32>,
      %c1_i32_41 = arith.constant 1 : i32
      %c0_42 = arith.constant 0 : index
      %c0_43 = arith.constant 0 : index
      %69 = vector.load %arg12[%c0_42, %c0_43] : memref<8x128xf32, #tpu.memory_space<vmem>>, vector<8x128xf32>
      %70 = arith.truncf %69 : vector<8x128xf32> to vector<8x128xbf16>
      %c0_i32_44 = arith.constant 0 : i32
      %c128_i32_45 = arith.constant 128 : i32
      %71 = arith.muli %c0_i32_44, %c128_i32_45 : i32
      %72 = tpu.assume_multiple %71, 128 : i32
      %73 = arith.index_cast %72 : i32 to index
      %c0_46 = arith.constant 0 : index
      %74 = vector.load %arg11[%73, %c0_46] : memref<128x128xf32, #tpu.memory_space<vmem>>, vector<128x128xf32>
      %75 = arith.truncf %74 : vector<128x128xf32> to vector<128x128xbf16>
      %cst_47 = arith.constant dense<0.000000e+00> : vector<128x128xf32>
      %76 = tpu.matmul %75, %29, %cst_47 {dimension_numbers = #tpu.dot_dimension_numbers<[1], [0], [0], [1], [0, 0, 1, 1], [], []>} : vector<128x128xbf16>, vector<128x128xbf16>, vector<128x128xf32> -> vector<128x128xf32>
      %77 = arith.addf %76, %74 : vector<128x128xf32>
      %cst_48 = arith.constant 0.000000e+00 : f32
      %78 = vector.broadcast %cst_48 : f32 to vector<128x128xf32>
      %79 = arith.maximumf %77, %78 : vector<128x128xf32>
      %80 = arith.truncf %79 : vector<128x128xf32> to vector<128x128xbf16>
      %cst_49 = arith.constant dense<0.000000e+00> : vector<128x8xf32>
      %81 = tpu.matmul %80, %30, %cst_49 {dimension_numbers = #tpu.dot_dimension_numbers<[1], [0], [0], [1], [0, 0, 1, 1], [], []>} : vector<128x128xbf16>, vector<128x8xbf16>, vector<128x8xf32> -> vector<128x8xf32>
      %cst_50 = arith.constant dense<0xFF800000> : vector<128xf32>
      %82 = vector.multi_reduction <maximumf>, %81, %cst_50 [1] : vector<128x8xf32> to vector<128xf32>
      %83 = vector.shape_cast %82 : vector<128xf32> to vector<128x1xf32>
      %84 = vector.broadcast %83 : vector<128x1xf32> to vector<128x8xf32>
      %85 = arith.subf %81, %84 : vector<128x8xf32>
      %86 = math.exp %85 : vector<128x8xf32>
      %cst_51 = arith.constant dense<0.000000e+00> : vector<128xf32>
      %87 = vector.multi_reduction <add>, %86, %cst_51 [1] : vector<128x8xf32> to vector<128xf32>
      %88 = vector.shape_cast %87 : vector<128xf32> to vector<128x1xf32>
      %89 = tpu.reciprocal %88 {approx = true} : vector<128x1xf32> -> vector<128x1xf32>
      %90 = vector.broadcast %89 : vector<128x1xf32> to vector<128x8xf32>
      %91 = arith.mulf %86, %90 : vector<128x8xf32>
      %92 = arith.truncf %91 : vector<128x8xf32> to vector<128x8xbf16>
      %cst_52 = arith.constant dense<0.000000e+00> : vector<128x128xf32>
      %93 = tpu.matmul %92, %70, %cst_52 {dimension_numbers = #tpu.dot_dimension_numbers<[1], [0], [0], [1], [0, 0, 1, 1], [], []>} : vector<128x8xbf16>, vector<8x128xbf16>, vector<128x128xf32> -> vector<128x128xf32>
      %94 = arith.addf %93, %74 : vector<128x128xf32>
      %95 = arith.truncf %94 : vector<128x128xf32> to vector<128x128xbf16>
      %96 = arith.index_cast %72 : i32 to index
      %c0_53 = arith.constant 0 : index
      %97 = vector.load %arg10[%96, %c0_53] : memref<128x128xbf16, #tpu.memory_space<vmem>>, vector<128x128xbf16>
      tpu.vector_store %arg10[%96, %c0_53], %95 {strides = array<i32>} : memref<128x128xbf16, #tpu.memory_space<vmem>>, vector<128x128xbf16>,
      %98 = arith.index_cast %72 : i32 to index
      %c0_54 = arith.constant 0 : index
      %99 = vector.load %arg8[%98, %c0_54] : memref<128x128xf32, #tpu.memory_space<vmem>>, vector<128x128xf32>
      %100 = arith.mulf %94, %94 : vector<128x128xf32>
      %cst_55 = arith.constant dense<0.000000e+00> : vector<128xf32>
      %101 = vector.multi_reduction <add>, %100, %cst_55 [1] : vector<128x128xf32> to vector<128xf32>
      %102 = vector.shape_cast %101 : vector<128xf32> to vector<128x1xf32>
      %cst_56 = arith.constant 1.000000e-24 : f32
      %103 = vector.broadcast %cst_56 : f32 to vector<128x1xf32>
      %104 = arith.maximumf %102, %103 : vector<128x1xf32>
      %105 = math.rsqrt %104 : vector<128x1xf32>
      %106 = vector.broadcast %105 : vector<128x1xf32> to vector<128x128xf32>
      %107 = arith.mulf %94, %106 : vector<128x128xf32>
      %108 = arith.addf %99, %107 : vector<128x128xf32>
      %109 = arith.index_cast %72 : i32 to index
      %c0_57 = arith.constant 0 : index
      %110 = vector.load %arg8[%109, %c0_57] : memref<128x128xf32, #tpu.memory_space<vmem>>, vector<128x128xf32>
      tpu.vector_store %arg8[%109, %c0_57], %108 {strides = array<i32>} : memref<128x128xf32, #tpu.memory_space<vmem>>, vector<128x128xf32>,
      %111 = arith.index_cast %72 : i32 to index
      %c0_58 = arith.constant 0 : index
      %112 = vector.load %arg9[%111, %c0_58] : memref<128x128xf32, #tpu.memory_space<vmem>>, vector<128x128xf32>
      %113 = arith.mulf %93, %93 : vector<128x128xf32>
      %cst_59 = arith.constant dense<0.000000e+00> : vector<128xf32>
      %114 = vector.multi_reduction <add>, %113, %cst_59 [1] : vector<128x128xf32> to vector<128xf32>
      %115 = vector.shape_cast %114 : vector<128xf32> to vector<128x1xf32>
      %cst_60 = arith.constant 1.000000e-24 : f32
      %116 = vector.broadcast %cst_60 : f32 to vector<128x1xf32>
      %117 = arith.maximumf %115, %116 : vector<128x1xf32>
      %118 = math.rsqrt %117 : vector<128x1xf32>
      %119 = vector.broadcast %118 : vector<128x1xf32> to vector<128x128xf32>
      %120 = arith.mulf %93, %119 : vector<128x128xf32>
      %121 = arith.addf %112, %120 : vector<128x128xf32>
      %122 = arith.index_cast %72 : i32 to index
      %c0_61 = arith.constant 0 : index
      %123 = vector.load %arg9[%122, %c0_61] : memref<128x128xf32, #tpu.memory_space<vmem>>, vector<128x128xf32>
      tpu.vector_store %arg9[%122, %c0_61], %121 {strides = array<i32>} : memref<128x128xf32, #tpu.memory_space<vmem>>, vector<128x128xf32>,
      %c1_i32_62 = arith.constant 1 : i32
    } else {
    }
    %c1_i32 = arith.constant 1 : i32
    %24 = arith.cmpi eq, %arg0, %c1_i32 : i32
    %c0_i32_16 = arith.constant 0 : i32
    %25 = arith.cmpi eq, %arg1, %c0_i32_16 : i32
    %26 = arith.andi %24, %25 : i1
    %27 = arith.extui %26 : i1 to i32
    %c0_i32_17 = arith.constant 0 : i32
    %28 = arith.cmpi ne, %27, %c0_i32_17 : i32
    scf.if %28 {
      %c0_i32_18 = arith.constant 0 : i32
      %c128_i32_19 = arith.constant 128 : i32
      %29 = arith.muli %c0_i32_18, %c128_i32_19 : i32
      %30 = tpu.assume_multiple %29, 128 : i32
      %31 = arith.index_cast %30 : i32 to index
      %c0_20 = arith.constant 0 : index
      %32 = vector.load %arg8[%31, %c0_20] : memref<128x128xf32, #tpu.memory_space<vmem>>, vector<128x128xf32>
      %cst_21 = arith.constant 0.333333343 : f32
      %33 = vector.broadcast %cst_21 : f32 to vector<128x128xf32>
      %34 = arith.mulf %32, %33 : vector<128x128xf32>
      %35 = arith.mulf %34, %34 : vector<128x128xf32>
      %cst_22 = arith.constant dense<0.000000e+00> : vector<128xf32>
      %36 = vector.multi_reduction <add>, %35, %cst_22 [1] : vector<128x128xf32> to vector<128xf32>
      %37 = vector.shape_cast %36 : vector<128xf32> to vector<128x1xf32>
      %cst_23 = arith.constant 1.000000e-24 : f32
      %38 = vector.broadcast %cst_23 : f32 to vector<128x1xf32>
      %39 = arith.maximumf %37, %38 : vector<128x1xf32>
      %40 = math.rsqrt %39 : vector<128x1xf32>
      %41 = vector.broadcast %40 : vector<128x1xf32> to vector<128x128xf32>
      %42 = arith.mulf %34, %41 : vector<128x128xf32>
      %43 = arith.index_cast %30 : i32 to index
      %c0_24 = arith.constant 0 : index
      %44 = vector.load %arg8[%43, %c0_24] : memref<128x128xf32, #tpu.memory_space<vmem>>, vector<128x128xf32>
      tpu.vector_store %arg8[%43, %c0_24], %42 {strides = array<i32>} : memref<128x128xf32, #tpu.memory_space<vmem>>, vector<128x128xf32>,
      %45 = arith.index_cast %30 : i32 to index
      %c0_25 = arith.constant 0 : index
      %46 = vector.load %arg9[%45, %c0_25] : memref<128x128xf32, #tpu.memory_space<vmem>>, vector<128x128xf32>
      %cst_26 = arith.constant 5.000000e-01 : f32
      %47 = vector.broadcast %cst_26 : f32 to vector<128x128xf32>
      %48 = arith.mulf %46, %47 : vector<128x128xf32>
      %49 = arith.index_cast %30 : i32 to index
      %c0_27 = arith.constant 0 : index
      %50 = vector.load %arg9[%49, %c0_27] : memref<128x128xf32, #tpu.memory_space<vmem>>, vector<128x128xf32>
      tpu.vector_store %arg9[%49, %c0_27], %48 {strides = array<i32>} : memref<128x128xf32, #tpu.memory_space<vmem>>, vector<128x128xf32>,
      %c1_i32_28 = arith.constant 1 : i32
    } else {
    }
    return
  }
  func.func @transform_0(%arg0: i32, %arg1: i32) -> (i32, i32) {
    %c0_i32 = arith.constant 0 : i32
    %c0_i32_0 = arith.constant 0 : i32
    %c0_i32_1 = arith.constant 0 : i32
    return %c0_i32, %c0_i32_0 : i32, i32
  }
  func.func @transform_1(%arg0: i32, %arg1: i32) -> (i32, i32) {
    %c0_i32 = arith.constant 0 : i32
    %c0_i32_0 = arith.constant 0 : i32
    return %c0_i32, %arg1 : i32, i32
  }
  func.func @transform_3(%arg0: i32, %arg1: i32) -> (i32, i32, i32) {
    %c0_i32 = arith.constant 0 : i32
    %c0_i32_0 = arith.constant 0 : i32
    %c0_i32_1 = arith.constant 0 : i32
    return %arg0, %c0_i32, %c0_i32_0 : i32, i32, i32
  }
  func.func @transform_4(%arg0: i32, %arg1: i32) -> (i32, i32) {
    %c0_i32 = arith.constant 0 : i32
    %c0_i32_0 = arith.constant 0 : i32
    %c0_i32_1 = arith.constant 0 : i32
    return %c0_i32, %c0_i32_0 : i32, i32
  }
  func.func @transform_5(%arg0: i32, %arg1: i32) -> (i32, i32) {
    %c0_i32 = arith.constant 0 : i32
    %c0_i32_0 = arith.constant 0 : i32
    %c0_i32_1 = arith.constant 0 : i32
    return %c0_i32, %c0_i32_0 : i32, i32
  }
  func.func @transform_6(%arg0: i32, %arg1: i32) -> (i32, i32) {
    %c0_i32 = arith.constant 0 : i32
    %c0_i32_0 = arith.constant 0 : i32
    %c0_i32_1 = arith.constant 0 : i32
    return %c0_i32, %c0_i32_0 : i32, i32
  }
  func.func @transform_7(%arg0: i32, %arg1: i32) -> (i32, i32) {
    %c0_i32 = arith.constant 0 : i32
    %c0_i32_0 = arith.constant 0 : i32
    %c0_i32_1 = arith.constant 0 : i32
    return %c0_i32, %c0_i32_0 : i32, i32
  }
}

</mosaic_0001>

<bundles_post_ra>
// kernel: tpu_custom_call.1
= control target key start
LH: loop header
LB: loop body
LE: loop exit
PB: predicated region body
PF: predicated region fallthrough
CT: control target
= control target key end

     0   :  { %s6042_s0 = inlined_call_operand.vmem [shape: f32[128,8], index: 0, kind: input, shape index: {}]   ;;  %s6043_s1 = inlined_call_operand.vmem [shape: bf16[128,128], index: 1, kind: input, shape index: {}]   ;;  %s6044_s2 = inlined_call_operand.vmem [shape: f32[128,128], index: 2, kind: input, shape index: {}]   ;;  %s6045_s3 = inlined_call_operand.hbm [shape: bf16[2,128,128], index: 3, kind: input, shape index: {}]   ;;  %s6046_s4 = inlined_call_operand.hbm [shape: bf16[128,128], index: 4, kind: input, shape index: {}]   ;;  %s6047_s5 = inlined_call_operand.vmem [shape: bf16[128,8], index: 5, kind: input, shape index: {}]   ;;  %s6048_s6 = inlined_call_operand.hbm [shape: f32[128,128], index: 6, kind: output, shape index: {0}]   ;;  %s6049_s7 = inlined_call_operand.hbm [shape: f32[128,128], index: 7, kind: output, shape index: {1}]  }
   0x1   :  { %6053 = sst [smem:[#allocation22_spill]] %s6046_s4 }
   0x2   :  { %6054 = sst [smem:[#allocation23_spill]] %s6049_s7 }
   0x3   :  { %13 = vsyncpa [#allocation6], 0 }
   0x4   :  { %15 = vsyncpa [#allocation6 + $0x1], 0 }
   0x5   :  { %16 = vsyncpa [#allocation9], 0 }
   0x6   :  { %17 = vsyncpa [#allocation7], 0 }
   0x7   :  { %18 = vsyncpa [#allocation12], 0  ;;  %s4090_s24 = smov 0   ;;  %s4092_s25 = smov 0  }
   0x8   :  { %s4094_s26 = smov 0   ;;  %s4096_s27 = smov 0  }
   0x9   :  { %s4098_s28 = smov 0   ;;  %s4100_s29 = smov 0  }
   0xa LB: > { %6055 = sst [smem:[#allocation20_spill]] %s4035_s28  ;;  %s6050_s30 = sadd.s32 4294967295, %s4039_s29   ;;  %s4039_s29 = sphi %s4100_s29, %s24_s29   ;;  %s4035_s28 = sphi %s4098_s28, %s6090_s28   ;;  %s4031_s27 = sphi %s4096_s27, %s6089_s27   ;;  %s4027_s26 = sphi %s4094_s26, %s6093_s26   ;;  %s4023_s25 = sphi %s4092_s25, %s6092_s25   ;;  %s4019_s24 = sphi %s4090_s24, %s6091_s24  }
   0xb   : > { %p103_p0 = scmp.ne.s32.totalorder %s4023_s25, %s4019_s24  ;;  %p4122_p1 = scmp.eq.s32.totalorder %s6050_s30, 0 }
   0xc   : > { %p3147_p2 = scmp.ge.s32.totalorder %s4039_s29, 1  ;;  %p198_p3 = scmp.lt.s32.totalorder %s4039_s29, 3 }
   0xd   : > { %p4130_p4 = por %p4122_p1, %p103_p0  ;;  %s6058_s4 = sld [smem:[#allocation22_spill]] }
   0xe   : > { %p4137_p5 = pnand %p3147_p2, %p198_p3  ;;  %s4041_s14 = smov [#allocation8]  }
   0xf   : > { %s221_s15 = sshll.u32 %s4041_s14, 4  ;;  %s4042_s16 = smov 64   ;;  %s222_s15 = int_to_ptr.vmem [resolvable:$true] %s221_s15 }
  0x10   : > { %p3515_p6 = pneg %p4137_p5  ;;  %s4043_s17 = smov 4  }
  0x11   : > { %s36_s18 = sadd.s32 1, %s4035_s28  ;;  %p97_p9 = scmp.ne.s32.totalorder %s4027_s26, %s4023_s25 }
  0x12   : > { %p3516_p7 = pnand %p3515_p6, %p4122_p1  ;;  %p38_p8 = scmp.ge.s32.totalorder %s36_s18, 2 }
  0x13   : > { %s219_s12 = sshll.u32 %s6058_s4, 4  ;;  %p98_p10 = scmp.eq.s32.totalorder %s4039_s29, 0  ;;  %s220_s12 = int_to_ptr.hbm [resolvable:$true] %s219_s12 }
  0x14   : > { %3518 = dma.hbm_to_vmem [thread:$0]  (!%p3516_p7), %s220_s12, 1024, %s222_s15, [#allocation9], %s4042_s16, %s4042_s16, %s4043_s17  }
  0x15   : > { %s6095_s18 = smov (%p38_p8, %s36_s18), 0  ;;  %s90_s19 = sadd.s32 1, %s4027_s26 }
  0x16   : > { %6060 = sst [smem:[#allocation21_spill]] %s6095_s18  ;;  %p4152_p11 = por %p98_p10, %p97_p9 }
  0x17   : > { %s87_s21 = ssub.s32 %s4035_s28, %s6095_s18  ;;  %s238_s22 = sand.u32 1, %s4027_s26  }
  0x18   : > { %p88_p12 = scmp.eq.s32.totalorder %s87_s21, 0  ;;  %p3524_p13 = scmp.lt.s32.totalorder %s4039_s29, 2 }
  0x19   : > { %s3151_s23 = sshll.u32 %s238_s22, 6  ;;  %s3333_s24 = sshll.u32 %s4035_s28, 6 }
  0x1a   : > { %s4162_s10 = scalar_select %p88_p12, %s4027_s26, %s90_s19  }
  0x1b   : > { %s247_s14 = scalar_lea.hbm %s6045_s3, %s3333_s24  ;;  %s242_s30 = scalar_lea.vmem [#allocation5], %s3151_s23 }
  0x1c   : > { %s248_s15 = sshll.u32 %s247_s14, 4  ;;  %s250_s4 = sshll.u32 %s242_s30, 4  ;;  %s249_s15 = int_to_ptr.hbm [resolvable:$true] %s248_s15  ;;  %s251_s4 = int_to_ptr.vmem [resolvable:$true] %s250_s4 }
  0x1d   : > { %p3520_p0 = pnand %p3524_p13, %p4152_p11  ;;  %s239_s7 = scalar_lea.sflag [#allocation6], %s238_s22 }
  0x1e   : > { %262 = sbr.rel (%p4137_p5) target bundleno = 2730 (0xaaa), region = 40  ;;  %s264_s19 = sand.u32 (!%p4137_p5), 1, %s4023_s25  }
  0x1f   : > { %3522 = dma.hbm_to_vmem [thread:$0]  (!%p3520_p0), %s249_s15, 1024, %s251_s4, %s239_s7, %s4042_s16, %s4042_s16, %s4043_s17  }
  0x20   : > { %s3155_s21 = sshll.u32 (!%p4137_p5), %s264_s19, 6  ;;  %s265_s18 = scalar_lea.sflag (!%p4137_p5), [#allocation6], %s264_s19 }
  0x21   : > { %s4172_s28 = scalar_lea.vmem (!%p4137_p5), [#allocation5], %s3155_s21 }
  0x23   : > { %4000 = dma.done.wait (%p4130_p4), %s265_s18, 1024  }
  0x24   : > { %4002 = vsyncadd (%p4130_p4), %s265_s18, 4294966272 }
  0x25   : > { %4004 = dma.done.wait (%p4122_p1), [#allocation9], 1024  }
  0x26   : > { %4006 = vsyncadd (%p4122_p1), [#allocation9], 4294966272  ;;  %p307_p2 = scmp.eq.s32.totalorder %s4031_s27, 0 }
  0x28   : > { %312 = sbr.rel (!%p307_p2) target bundleno = 105 (0x69), region = 52 }
  0x2d   : > { %v323_v0 = vld [vmem:[%s6044_s2] sm:$0xff]  ;;  %v325_v1 = vld [vmem:[%s6044_s2 + $0x8] sm:$0xff]  ;;  %v327_v2 = vld [vmem:[%s6044_s2 + $0x10] sm:$0xff] }
  0x2e   : > { %324 = vst [vmem:[#allocation3] sm:$0xff] %v323_v0  ;;  %v329_v3 = vld [vmem:[%s6044_s2 + $0x18] sm:$0xff]  ;;  %v331_v4 = vld [vmem:[%s6044_s2 + $0x20] sm:$0xff]  ;;  %v333_v5 = vld [vmem:[%s6044_s2 + $0x28] sm:$0xff] }
  0x2f   : > { %326 = vst [vmem:[#allocation3 + $0x18] sm:$0xff] %v325_v1  ;;  %v335_v6 = vld [vmem:[%s6044_s2 + $0x30] sm:$0xff]  ;;  %v337_v7 = vld [vmem:[%s6044_s2 + $0x38] sm:$0xff]  ;;  %v339_v8 = vld [vmem:[%s6044_s2 + $0x40] sm:$0xff] }
  0x30   : > { %328 = vst [vmem:[#allocation3 + $0x50] sm:$0xff] %v327_v2  ;;  %v341_v9 = vld [vmem:[%s6044_s2 + $0x48] sm:$0xff]  ;;  %v343_v10 = vld [vmem:[%s6044_s2 + $0x50] sm:$0xff]  ;;  %v345_v11 = vld [vmem:[%s6044_s2 + $0x58] sm:$0xff] }
  0x31   : > { %330 = vst [vmem:[#allocation3 + $0x60] sm:$0xff] %v329_v3  ;;  %v347_v12 = vld [vmem:[%s6044_s2 + $0x60] sm:$0xff]  ;;  %v349_v13 = vld [vmem:[%s6044_s2 + $0x68] sm:$0xff]  ;;  %v351_v14 = vld [vmem:[%s6044_s2 + $0x70] sm:$0xff] }
  0x32   : > { %332 = vst [vmem:[#allocation3 + $0x68] sm:$0xff] %v331_v4  ;;  %v353_v15 = vld [vmem:[%s6044_s2 + $0x78] sm:$0xff] }
  0x33   : > { %334 = vst [vmem:[#allocation3 + $0x20] sm:$0xff] %v333_v5 }
  0x34   : > { %336 = vst [vmem:[#allocation3 + $0x70] sm:$0xff] %v335_v6 }
  0x35   : > { %338 = vst [vmem:[#allocation3 + $0x10] sm:$0xff] %v337_v7 }
  0x36   : > { %340 = vst [vmem:[#allocation3 + $0x28] sm:$0xff] %v339_v8 }
  0x37   : > { %342 = vst [vmem:[#allocation3 + $0x40] sm:$0xff] %v341_v9 }
  0x38   : > { %344 = vst [vmem:[#allocation3 + $0x38] sm:$0xff] %v343_v10 }
  0x39   : > { %346 = vst [vmem:[#allocation3 + $0x8] sm:$0xff] %v345_v11 }
  0x3a   : > { %348 = vst [vmem:[#allocation3 + $0x58] sm:$0xff] %v347_v12 }
  0x3b   : > { %350 = vst [vmem:[#allocation3 + $0x48] sm:$0xff] %v349_v13 }
  0x3c   : > { %352 = vst [vmem:[#allocation3 + $0x78] sm:$0xff] %v351_v14 }
  0x3d   : > { %354 = vst [vmem:[#allocation3 + $0x30] sm:$0xff] %v353_v15 }
  0x3e   : > { %360 = vsyncadd [#allocation13], 2048 }
  0x3f   : > { %4007 = dma.done.wait [#allocation13], 2048 }
  0x40   : > { %4008 = vsyncadd [#allocation13], 4294965248  ;;  %v364_v16 = vld [vmem:[#allocation3] sm:$0xff]  ;;  %v365_v17 = vld [vmem:[#allocation3 + $0x18] sm:$0xff]  ;;  %v4044_v40 = vmov 0.0  }
  0x41   : > { %380 = vst [vmem:[#allocation10] sm:$0xff] %v364_v16  ;;  %v366_v18 = vld [vmem:[#allocation3 + $0x50] sm:$0xff]  ;;  %v367_v19 = vld [vmem:[#allocation3 + $0x60] sm:$0xff]  ;;  %v368_v20 = vld [vmem:[#allocation3 + $0x68] sm:$0xff]  ;;  %v3379_v30 = vpack.c.bf16 %v365_v17, %v364_v16 }
  0x42   : > { %381 = vst [vmem:[#allocation10 + $0x8] sm:$0xff] %v365_v17  ;;  %v369_v21 = vld [vmem:[#allocation3 + $0x20] sm:$0xff]  ;;  %v370_v22 = vld [vmem:[#allocation3 + $0x70] sm:$0xff]  ;;  %v372_v24 = vld [vmem:[#allocation3 + $0x28] sm:$0xff]  ;;  %v3384_v32 = vpack.c.bf16 %v367_v19, %v366_v18 }
  0x43   : > { %382 = vst [vmem:[#allocation10 + $0x10] sm:$0xff] %v366_v18  ;;  %v371_v23 = vld [vmem:[#allocation3 + $0x10] sm:$0xff]  ;;  %v373_v25 = vld [vmem:[#allocation3 + $0x40] sm:$0xff]  ;;  %v374_v26 = vld [vmem:[#allocation3 + $0x38] sm:$0xff]  ;;  %v3389_v34 = vpack.c.bf16 %v369_v21, %v368_v20 }
  0x44   : > { %383 = vst [vmem:[#allocation10 + $0x18] sm:$0xff] %v367_v19  ;;  %v375_v27 = vld [vmem:[#allocation3 + $0x8] sm:$0xff]  ;;  %v376_v28 = vld [vmem:[#allocation3 + $0x58] sm:$0xff]  ;;  %v379_v33 = vld [vmem:[#allocation3 + $0x30] sm:$0xff]  ;;  %v3394_v35 = vpack.c.bf16 %v371_v23, %v370_v22  ;;  %v3399_v36 = vpack.c.bf16 %v373_v25, %v372_v24 }
  0x45   : > { %384 = vst [vmem:[#allocation10 + $0x20] sm:$0xff] %v368_v20  ;;  %v377_v29 = vld [vmem:[#allocation3 + $0x48] sm:$0xff]  ;;  %v378_v31 = vld [vmem:[#allocation3 + $0x78] sm:$0xff]  ;;  %v3404_v37 = vpack.c.bf16 %v375_v27, %v374_v26 }
  0x46   : > { %385 = vst [vmem:[#allocation10 + $0x28] sm:$0xff] %v369_v21  ;;  %v3409_v38 = vpack.c.bf16 %v377_v29, %v376_v28  ;;  %v3414_v39 = vpack.c.bf16 %v379_v33, %v378_v31 }
  0x47   : > { %386 = vst [vmem:[#allocation10 + $0x30] sm:$0xff] %v370_v22 }
  0x48   : > { %387 = vst [vmem:[#allocation10 + $0x38] sm:$0xff] %v371_v23 }
  0x49   : > { %388 = vst [vmem:[#allocation10 + $0x40] sm:$0xff] %v372_v24 }
  0x4a   : > { %389 = vst [vmem:[#allocation10 + $0x48] sm:$0xff] %v373_v25 }
  0x4b   : > { %390 = vst [vmem:[#allocation10 + $0x50] sm:$0xff] %v374_v26 }
  0x4c   : > { %391 = vst [vmem:[#allocation10 + $0x58] sm:$0xff] %v375_v27 }
  0x4d   : > { %392 = vst [vmem:[#allocation10 + $0x60] sm:$0xff] %v376_v28 }
  0x4e   : > { %393 = vst [vmem:[#allocation10 + $0x68] sm:$0xff] %v377_v29 }
  0x4f   : > { %394 = vst [vmem:[#allocation10 + $0x70] sm:$0xff] %v378_v31 }
  0x50   : > { %395 = vst [vmem:[#allocation10 + $0x78] sm:$0xff] %v379_v33 }
  0x51   : > { %3380 = vst [vmem:[#allocation2 + $0x30] sm:$0xff] %v3379_v30  }
  0x52   : > { %3456 = vst [vmem:[#allocation2] sm:$0xff] %v3384_v32  }
  0x53   : > { %3457 = vst [vmem:[#allocation2 + $0x18] sm:$0xff] %v3389_v34  }
  0x54   : > { %3458 = vst [vmem:[#allocation2 + $0x10] sm:$0xff] %v3394_v35  }
  0x55   : > { %3459 = vst [vmem:[#allocation2 + $0x8] sm:$0xff] %v3399_v36  }
  0x56   : > { %3460 = vst [vmem:[#allocation2 + $0x20] sm:$0xff] %v3404_v37  }
  0x57   : > { %3461 = vst [vmem:[#allocation2 + $0x28] sm:$0xff] %v3409_v38  }
  0x58   : > { %3462 = vst [vmem:[#allocation2 + $0x38] sm:$0xff] %v3414_v39  }
  0x59   : > { %428 = vst [vmem:[#allocation11] sm:$0xff] %v4044_v40 }
  0x5a   : > { %429 = vst [vmem:[#allocation11 + $0x8] sm:$0xff] %v4044_v40 }
  0x5b   : > { %430 = vst [vmem:[#allocation11 + $0x10] sm:$0xff] %v4044_v40 }
  0x5c   : > { %431 = vst [vmem:[#allocation11 + $0x18] sm:$0xff] %v4044_v40 }
  0x5d   : > { %432 = vst [vmem:[#allocation11 + $0x20] sm:$0xff] %v4044_v40 }
  0x5e   : > { %433 = vst [vmem:[#allocation11 + $0x28] sm:$0xff] %v4044_v40 }
  0x5f   : > { %434 = vst [vmem:[#allocation11 + $0x30] sm:$0xff] %v4044_v40 }
  0x60   : > { %435 = vst [vmem:[#allocation11 + $0x38] sm:$0xff] %v4044_v40 }
  0x61   : > { %436 = vst [vmem:[#allocation11 + $0x40] sm:$0xff] %v4044_v40 }
  0x62   : > { %437 = vst [vmem:[#allocation11 + $0x48] sm:$0xff] %v4044_v40 }
  0x63   : > { %438 = vst [vmem:[#allocation11 + $0x50] sm:$0xff] %v4044_v40 }
  0x64   : > { %439 = vst [vmem:[#allocation11 + $0x58] sm:$0xff] %v4044_v40 }
  0x65   : > { %440 = vst [vmem:[#allocation11 + $0x60] sm:$0xff] %v4044_v40 }
  0x66   : > { %441 = vst [vmem:[#allocation11 + $0x68] sm:$0xff] %v4044_v40 }
  0x67   : > { %442 = vst [vmem:[#allocation11 + $0x70] sm:$0xff] %v4044_v40 }
  0x68   : > { %443 = vst [vmem:[#allocation11 + $0x78] sm:$0xff] %v4044_v40 }
  0x69 PF: > { %v3350_v41 = vld [vmem:[%s4172_s28 + $0x38] sm:$0xff]  ;;  %v3349_v42 = vld [vmem:[%s4172_s28 + $0x30] sm:$0xff]  ;;  %v3348_v43 = vld [vmem:[%s4172_s28 + $0x28] sm:$0xff]  ;;  %vm1092_vm0 = vcmask 64512   ;;  %p2678_p1 = scmp.eq.s32.totalorder %s4031_s27, 1 }
  0x6a   : > { %596 = vmatpush.bf16.msra.mxu0 %v3350_v41  ;;  %v3347_v44 = vld [vmem:[%s4172_s28 + $0x20] sm:$0xff]  ;;  %v3346_v45 = vld [vmem:[%s4172_s28 + $0x18] sm:$0xff]  ;;  %v3345_v46 = vld [vmem:[%s4172_s28 + $0x10] sm:$0xff] }
  0x6b   : > { %v3344_v47 = vld [vmem:[%s4172_s28 + $0x8] sm:$0xff]  ;;  %v3343_v48 = vld [vmem:[%s4172_s28] sm:$0xff]  ;;  %v3335_v49 = vld [vmem:[#allocation2 + $0x30] sm:$0xff] }
  0x6c   : > { %v3336_v50 = vld [vmem:[#allocation2] sm:$0xff]  ;;  %v3337_v51 = vld [vmem:[#allocation2 + $0x18] sm:$0xff]  ;;  %v3338_v52 = vld [vmem:[#allocation2 + $0x10] sm:$0xff] }
  0x6d   : > { %v3339_v53 = vld [vmem:[#allocation2 + $0x8] sm:$0xff]  ;;  %v3340_v54 = vld [vmem:[#allocation2 + $0x20] sm:$0xff]  ;;  %v3342_v56 = vld [vmem:[#allocation2 + $0x38] sm:$0xff] }
  0x6e   : > { %597 = vmatpush.bf16.msra.mxu0 %v3349_v42  ;;  %v3341_v55 = vld [vmem:[#allocation2 + $0x28] sm:$0xff]  ;;  %v3351_v17 = vld [vmem:[%s6043_s1] sm:$0xff]  ;;  %v3357_v19 = vld [vmem:[%s6043_s1 + $0x30] sm:$0xff] }
  0x6f   : > { %v3352_v18 = vld [vmem:[%s6043_s1 + $0x8] sm:$0xff]  ;;  %v3353_v20 = vld [vmem:[%s6043_s1 + $0x10] sm:$0xff]  ;;  %v3358_v21 = vld [vmem:[%s6043_s1 + $0x38] sm:$0xff] }
  0x70   : > { %v3354_v22 = vld [vmem:[%s6043_s1 + $0x18] sm:$0xff]  ;;  %v3365_v24 = vld [vmem:[#allocation8 + $0x30] sm:$0xff]  ;;  %v3364_v25 = vld [vmem:[#allocation8 + $0x28] sm:$0xff] }
  0x71   : > { %v3366_v23 = vld [vmem:[#allocation8 + $0x38] sm:$0xff]  ;;  %v3355_v26 = vld [vmem:[%s6043_s1 + $0x20] sm:$0xff]  ;;  %v3356_v27 = vld [vmem:[%s6043_s1 + $0x28] sm:$0xff] }
  0x72   : > { %598 = vmatpush.bf16.msra.mxu0 %v3348_v43  ;;  %922 = vmatpush.bf16.msra.mxu2 %v3366_v23  ;;  %v3363_v28 = vld [vmem:[#allocation8 + $0x20] sm:$0xff]  ;;  %v3362_v29 = vld [vmem:[#allocation8 + $0x18] sm:$0xff]  ;;  %v3361_v30 = vld [vmem:[#allocation8 + $0x10] sm:$0xff] }
  0x73   : > { %v3360_v31 = vld [vmem:[#allocation8 + $0x8] sm:$0xff]  ;;  %v3359_v32 = vld [vmem:[#allocation8] sm:$0xff] }
  0x76   : > { %599 = vmatpush.bf16.msra.mxu0 %v3347_v44  ;;  %923 = vmatpush.bf16.msra.mxu2 %v3365_v24 }
  0x7a   : > { %600 = vmatpush.bf16.msra.mxu0 %v3346_v45  ;;  %924 = vmatpush.bf16.msra.mxu2 %v3364_v25 }
  0x7e   : > { %601 = vmatpush.bf16.msra.mxu0 %v3345_v46  ;;  %925 = vmatpush.bf16.msra.mxu2 %v3363_v28 }
  0x82   : > { %602 = vmatpush.bf16.msra.mxu0 %v3344_v47  ;;  %926 = vmatpush.bf16.msra.mxu2 %v3362_v29 }
  0x86   : > { %603 = vmatpush.bf16.msra.mxu0 %v3343_v48  ;;  %927 = vmatpush.bf16.msra.mxu2 %v3361_v30 }
  0x89   : > { %604 = vmatmul.bf16.vlgmr.msra.gmra.mxu0 %v3335_v49 }
  0x8a   : > { %928 = vmatpush.bf16.msra.mxu2 %v3360_v31 }
  0x8e   : > { %929 = vmatpush.bf16.msra.mxu2 %v3359_v32 }
  0x99   : > { %609 = vmatmul.bf16.gmra.mxu0 %v3336_v50 }
  0xa9   : > { %614 = vmatmul.bf16.gmra.mxu0 %v3337_v51 }
  0xb9   : > { %619 = vmatmul.bf16.gmra.mxu0 %v3338_v52 }
  0xc9   : > { %624 = vmatmul.bf16.gmra.mxu0 %v3339_v53 }
  0xd9   : > { %629 = vmatmul.bf16.gmra.mxu0 %v3340_v54 }
  0xe9   : > { %634 = vmatmul.bf16.gmra.mxu0 %v3341_v55 }
  0xf9   : > { %639 = vmatmul.bf16.gmra.mxu0 %v3342_v56 }
 0x106   : > { %v605_v57 = vpop.f32.mrf.mxu0 }
 0x10e   : > { %v607_v58 = vpop.f32.mrf.mxu0 }
 0x10f   : > { %v677_v16 = vpack.c.bf16 %v607_v58, %v605_v57  ;;  %v3374_v57 = vld [vmem:[%s6047_s5 + $0x38] sm:$0xff]  ;;  %v3373_v58 = vld [vmem:[%s6047_s5 + $0x30] sm:$0xff] }
 0x110   : > { %1043 = vmatpush.bf16.msra.mxu3 %v3374_v57  ;;  %3478 = vmatpush.bf16.msrb.mxu2 %v3374_v57 }
 0x114   : > { %1044 = vmatpush.bf16.msra.mxu3 %v3373_v58  ;;  %3479 = vmatpush.bf16.msrb.mxu2 %v3373_v58 }
 0x116   : > { %v610_v59 = vpop.f32.mrf.mxu0 }
 0x11e   : > { %v612_v60 = vpop.f32.mrf.mxu0 }
 0x11f   : > { %v678_v15 = vpack.c.bf16 %v612_v60, %v610_v59  ;;  %v3372_v59 = vld [vmem:[%s6047_s5 + $0x28] sm:$0xff]  ;;  %v3371_v60 = vld [vmem:[%s6047_s5 + $0x20] sm:$0xff] }
 0x120   : > { %1045 = vmatpush.bf16.msra.mxu3 %v3372_v59  ;;  %3480 = vmatpush.bf16.msrb.mxu2 %v3372_v59 }
 0x124   : > { %1046 = vmatpush.bf16.msra.mxu3 %v3371_v60  ;;  %3481 = vmatpush.bf16.msrb.mxu2 %v3371_v60 }
 0x126   : > { %v615_v61 = vpop.f32.mrf.mxu0 }
 0x12e   : > { %v617_v62 = vpop.f32.mrf.mxu0 }
 0x12f   : > { %v679_v63 = vpack.c.bf16 %v617_v62, %v615_v61  ;;  %v3370_v61 = vld [vmem:[%s6047_s5 + $0x18] sm:$0xff]  ;;  %v3369_v62 = vld [vmem:[%s6047_s5 + $0x10] sm:$0xff] }
 0x130   : > { %1047 = vmatpush.bf16.msra.mxu3 %v3370_v61  ;;  %3482 = vmatpush.bf16.msrb.mxu2 %v3370_v61 }
 0x134   : > { %1048 = vmatpush.bf16.msra.mxu3 %v3369_v62  ;;  %3483 = vmatpush.bf16.msrb.mxu2 %v3369_v62 }
 0x136   : > { %v620_v0 = vpop.f32.mrf.mxu0 }
 0x13e   : > { %v622_v1 = vpop.f32.mrf.mxu0 }
 0x13f   : > { %v680_v2 = vpack.c.bf16 %v622_v1, %v620_v0  ;;  %v3367_v0 = vld [vmem:[%s6047_s5] sm:$0xff] }
 0x146   : > { %v625_v3 = vpop.f32.mrf.mxu0 }
 0x14e   : > { %v627_v4 = vpop.f32.mrf.mxu0 }
 0x14f   : > { %v681_v14 = vpack.c.bf16 %v627_v4, %v625_v3 }
 0x156   : > { %v630_v5 = vpop.f32.mrf.mxu0 }
 0x15e   : > { %v632_v6 = vpop.f32.mrf.mxu0 }
 0x15f   : > { %v682_v13 = vpack.c.bf16 %v632_v6, %v630_v5 }
 0x166   : > { %v635_v7 = vpop.f32.mrf.mxu0 }
 0x16e   : > { %v637_v8 = vpop.f32.mrf.mxu0 }
 0x16f   : > { %v683_v12 = vpack.c.bf16 %v637_v8, %v635_v7 }
 0x176   : > { %v640_v9 = vpop.f32.mrf.mxu0 }
 0x17e   : > { %v642_v10 = vpop.f32.mrf.mxu0 }
 0x17f   : > { %v684_v11 = vpack.c.bf16 %v642_v10, %v640_v9 }
 0x181   : > { %733 = vmatpush.bf16.msrb.mxu0 %v684_v11  ;;  %3470 = vmatpush.bf16.msra.mxu1 %v684_v11 }
 0x185   : > { %734 = vmatpush.bf16.msrb.mxu0 %v683_v12  ;;  %3471 = vmatpush.bf16.msra.mxu1 %v683_v12 }
 0x189   : > { %735 = vmatpush.bf16.msrb.mxu0 %v682_v13  ;;  %3472 = vmatpush.bf16.msra.mxu1 %v682_v13 }
 0x18d   : > { %736 = vmatpush.bf16.msrb.mxu0 %v681_v14  ;;  %3473 = vmatpush.bf16.msra.mxu1 %v681_v14 }
 0x191   : > { %737 = vmatpush.bf16.msrb.mxu0 %v680_v2  ;;  %3474 = vmatpush.bf16.msra.mxu1 %v680_v2 }
 0x195   : > { %738 = vmatpush.bf16.msrb.mxu0 %v679_v63  ;;  %3475 = vmatpush.bf16.msra.mxu1 %v679_v63  ;;  %v3368_v63 = vld [vmem:[%s6047_s5 + $0x8] sm:$0xff] }
 0x196   : > { %1049 = vmatpush.bf16.msra.mxu3 %v3368_v63  ;;  %3484 = vmatpush.bf16.msrb.mxu2 %v3368_v63 }
 0x199   : > { %739 = vmatpush.bf16.msrb.mxu0 %v678_v15  ;;  %3476 = vmatpush.bf16.msra.mxu1 %v678_v15 }
 0x19a   : > { %1050 = vmatpush.bf16.msra.mxu3 %v3367_v0  ;;  %3485 = vmatpush.bf16.msrb.mxu2 %v3367_v0 }
 0x19d   : > { %740 = vmatpush.bf16.msrb.mxu0 %v677_v16  ;;  %3477 = vmatpush.bf16.msra.mxu1 %v677_v16 }
 0x1a0   : > { %741 = vmatmul.bf16.vlgmr.msrb.gmra.mxu0 %v3351_v17  ;;  %771 = vmatmul.bf16.vlgmr.msra.gmra.mxu1 %v3357_v19 }
 0x1b0   : > { %746 = vmatmul.bf16.gmra.mxu0 %v3352_v18  ;;  %776 = vmatmul.bf16.gmra.mxu1 %v3358_v21 }
 0x1c0   : > { %751 = vmatmul.bf16.gmra.mxu0 %v3353_v20 }
 0x1d0   : > { %756 = vmatmul.bf16.gmra.mxu0 %v3354_v22 }
 0x1e0   : > { %761 = vmatmul.bf16.gmra.mxu0 %v3355_v26 }
 0x1f0   : > { %766 = vmatmul.bf16.gmra.mxu0 %v3356_v27 }
 0x21d   : > { %v4263_v33 = vpop.f32.mrf.mxu0  ;;  %v4279_v38 = vpop.f32.mrf.mxu1 }
 0x21e   : > { %798 = vst [vmem:[#allocation3] sm:$0xff] %v4263_v33 }
 0x21f   : > { %810 = vst [vmem:[#allocation3 + $0x58] sm:$0xff] %v4279_v38 }
 0x225   : > { %v4266_v34 = vpop.f32.mrf.mxu0  ;;  %v4287_v41 = vpop.f32.mrf.mxu1 }
 0x226   : > { %799 = vst [vmem:[#allocation3 + $0x18] sm:$0xff] %v4266_v34  ;;  %v4271_v35 = vpack.c.bf16 %v4266_v34, %v4263_v33  ;;  %v872_v48 = vpack.c.bf16 %v4287_v41, %v4279_v38 }
 0x227   : > { %811 = vst [vmem:[#allocation3 + $0x48] sm:$0xff] %v4287_v41 }
 0x228   : > { %930 = vmatmul.bf16.vlgmr.msra.gmra.mxu2 %v4271_v35 }
 0x22d   : > { %v4274_v36 = vpop.f32.mrf.mxu0  ;;  %v4293_v43 = vpop.f32.mrf.mxu1 }
 0x22e   : > { %800 = vst [vmem:[#allocation3 + $0x50] sm:$0xff] %v4274_v36 }
 0x22f   : > { %812 = vst [vmem:[#allocation3 + $0x78] sm:$0xff] %v4293_v43 }
 0x235   : > { %v4277_v37 = vpop.f32.mrf.mxu0  ;;  %v4301_v46 = vpop.f32.mrf.mxu1 }
 0x236   : > { %801 = vst [vmem:[#allocation3 + $0x60] sm:$0xff] %v4277_v37  ;;  %v867_v39 = vpack.c.bf16 %v4277_v37, %v4274_v36  ;;  %v873_v47 = vpack.c.bf16 %v4301_v46, %v4293_v43 }
 0x237   : > { %813 = vst [vmem:[#allocation3 + $0x30] sm:$0xff] %v4301_v46 }
 0x238   : > { %935 = vmatmul.bf16.gmra.mxu2 %v867_v39  ;;  %1630 = vmatpush.bf16.msra.mxu1 %v873_v47 }
 0x23c   : > { %1631 = vmatpush.bf16.msra.mxu1 %v872_v48 }
 0x23d   : > { %v4285_v40 = vpop.f32.mrf.mxu0 }
 0x23e   : > { %802 = vst [vmem:[#allocation3 + $0x68] sm:$0xff] %v4285_v40 }
 0x245   : > { %v4291_v42 = vpop.f32.mrf.mxu0 }
 0x246   : > { %803 = vst [vmem:[#allocation3 + $0x20] sm:$0xff] %v4291_v42  ;;  %v868_v44 = vpack.c.bf16 %v4291_v42, %v4285_v40 }
 0x248   : > { %940 = vmatmul.bf16.gmra.mxu2 %v868_v44 }
 0x24d   : > { %v4299_v45 = vpop.f32.mrf.mxu0 }
 0x24e   : > { %804 = vst [vmem:[#allocation3 + $0x70] sm:$0xff] %v4299_v45 }
 0x255   : > { %v4309_v49 = vpop.f32.mrf.mxu0 }
 0x256   : > { %805 = vst [vmem:[#allocation3 + $0x10] sm:$0xff] %v4309_v49  ;;  %v869_v50 = vpack.c.bf16 %v4309_v49, %v4299_v45 }
 0x258   : > { %945 = vmatmul.bf16.gmra.mxu2 %v869_v50 }
 0x25d   : > { %v4314_v51 = vpop.f32.mrf.mxu0 }
 0x25e   : > { %806 = vst [vmem:[#allocation3 + $0x28] sm:$0xff] %v4314_v51 }
 0x265   : > { %v4317_v52 = vpop.f32.mrf.mxu0 }
 0x266   : > { %807 = vst [vmem:[#allocation3 + $0x40] sm:$0xff] %v4317_v52  ;;  %v870_v53 = vpack.c.bf16 %v4317_v52, %v4314_v51 }
 0x268   : > { %950 = vmatmul.bf16.gmra.mxu2 %v870_v53 }
 0x26d   : > { %v4322_v54 = vpop.f32.mrf.mxu0 }
 0x26e   : > { %808 = vst [vmem:[#allocation3 + $0x38] sm:$0xff] %v4322_v54 }
 0x275   : > { %v4325_v55 = vpop.f32.mrf.mxu0 }
 0x276   : > { %809 = vst [vmem:[#allocation3 + $0x8] sm:$0xff] %v4325_v55  ;;  %v871_v56 = vpack.c.bf16 %v4325_v55, %v4322_v54 }
 0x278   : > { %955 = vmatmul.bf16.gmra.mxu2 %v871_v56  ;;  %1632 = vmatpush.bf16.msra.mxu1 %v871_v56 }
 0x27c   : > { %1633 = vmatpush.bf16.msra.mxu1 %v870_v53 }
 0x280   : > { %1634 = vmatpush.bf16.msra.mxu1 %v869_v50 }
 0x284   : > { %1635 = vmatpush.bf16.msra.mxu1 %v868_v44 }
 0x288   : > { %960 = vmatmul.bf16.gmra.mxu2 %v872_v48  ;;  %1636 = vmatpush.bf16.msra.mxu1 %v867_v39 }
 0x28c   : > { %1637 = vmatpush.bf16.msra.mxu1 %v4271_v35 }
 0x298   : > { %965 = vmatmul.bf16.gmra.mxu2 %v873_v47 }
 0x2ab   : > { %v931_v1 = vpop.f32.mrf.mxu2 }
 0x2ac   : > { %v932_v2 = vadd.f32 %v931_v1, %v4263_v33 }
 0x2ae   : > { %v971_v5 = vmax.f32 %v932_v2, 0.0 }
 0x2b3   : > { %v933_v3 = vpop.f32.mrf.mxu2 }
 0x2b4   : > { %v934_v4 = vadd.f32 %v933_v3, %v4266_v34 }
 0x2b6   : > { %v972_v6 = vmax.f32 %v934_v4, 0.0 }
 0x2b8   : > { %v987_v7 = vpack.c.bf16 %v972_v6, %v971_v5 }
 0x2ba   : > { %1051 = vmatmul.bf16.vlgmr.msra.gmra.mxu3 %v987_v7 }
 0x2bb   : > { %v936_v8 = vpop.f32.mrf.mxu2 }
 0x2bc   : > { %v937_v9 = vadd.f32 %v936_v8, %v4274_v36 }
 0x2be   : > { %v973_v12 = vmax.f32 %v937_v9, 0.0 }
 0x2c3   : > { %v938_v10 = vpop.f32.mrf.mxu2 }
 0x2c4   : > { %v939_v11 = vadd.f32 %v938_v10, %v4277_v37 }
 0x2c6   : > { %v974_v13 = vmax.f32 %v939_v11, 0.0 }
 0x2c8   : > { %v988_v14 = vpack.c.bf16 %v974_v13, %v973_v12 }
 0x2ca   : > { %1056 = vmatmul.bf16.gmra.mxu3 %v988_v14 }
 0x2cb   : > { %v941_v15 = vpop.f32.mrf.mxu2 }
 0x2cc   : > { %v942_v16 = vadd.f32 %v941_v15, %v4285_v40 }
 0x2ce   : > { %v975_v19 = vmax.f32 %v942_v16, 0.0 }
 0x2d3   : > { %v943_v17 = vpop.f32.mrf.mxu2 }
 0x2d4   : > { %v944_v18 = vadd.f32 %v943_v17, %v4291_v42 }
 0x2d6   : > { %v976_v20 = vmax.f32 %v944_v18, 0.0 }
 0x2d8   : > { %v989_v21 = vpack.c.bf16 %v976_v20, %v975_v19 }
 0x2da   : > { %1061 = vmatmul.bf16.gmra.mxu3 %v989_v21 }
 0x2db   : > { %v946_v22 = vpop.f32.mrf.mxu2 }
 0x2dc   : > { %v947_v23 = vadd.f32 %v946_v22, %v4299_v45 }
 0x2de   : > { %v977_v26 = vmax.f32 %v947_v23, 0.0 }
 0x2e3   : > { %v948_v24 = vpop.f32.mrf.mxu2 }
 0x2e4   : > { %v949_v25 = vadd.f32 %v948_v24, %v4309_v49 }
 0x2e6   : > { %v978_v27 = vmax.f32 %v949_v25, 0.0 }
 0x2e8   : > { %v990_v28 = vpack.c.bf16 %v978_v27, %v977_v26 }
 0x2ea   : > { %1066 = vmatmul.bf16.gmra.mxu3 %v990_v28 }
 0x2eb   : > { %v951_v29 = vpop.f32.mrf.mxu2 }
 0x2ec   : > { %v952_v30 = vadd.f32 %v951_v29, %v4314_v51 }
 0x2ee   : > { %v979_v33 = vmax.f32 %v952_v30, 0.0 }
 0x2f3   : > { %v953_v31 = vpop.f32.mrf.mxu2 }
 0x2f4   : > { %v954_v32 = vadd.f32 %v953_v31, %v4317_v52 }
 0x2f6   : > { %v980_v34 = vmax.f32 %v954_v32, 0.0 }
 0x2f8   : > { %v991_v35 = vpack.c.bf16 %v980_v34, %v979_v33 }
 0x2fa   : > { %1071 = vmatmul.bf16.gmra.mxu3 %v991_v35 }
 0x2fb   : > { %v956_v36 = vpop.f32.mrf.mxu2 }
 0x2fc   : > { %v957_v37 = vadd.f32 %v956_v36, %v4322_v54 }
 0x2fe   : > { %v981_v42 = vmax.f32 %v957_v37, 0.0 }
 0x303   : > { %v958_v39 = vpop.f32.mrf.mxu2 }
 0x304   : > { %v959_v40 = vadd.f32 %v958_v39, %v4325_v55 }
 0x306   : > { %v982_v44 = vmax.f32 %v959_v40, 0.0 }
 0x308   : > { %v992_v45 = vpack.c.bf16 %v982_v44, %v981_v42 }
 0x30a   : > { %1076 = vmatmul.bf16.gmra.mxu3 %v992_v45 }
 0x30b   : > { %v961_v47 = vpop.f32.mrf.mxu2 }
 0x30c   : > { %v962_v48 = vadd.f32 %v961_v47, %v4279_v38 }
 0x30e   : > { %v983_v51 = vmax.f32 %v962_v48, 0.0 }
 0x313   : > { %v963_v49 = vpop.f32.mrf.mxu2 }
 0x314   : > { %v964_v50 = vadd.f32 %v963_v49, %v4287_v41 }
 0x316   : > { %v984_v52 = vmax.f32 %v964_v50, 0.0 }
 0x318   : > { %v993_v53 = vpack.c.bf16 %v984_v52, %v983_v51 }
 0x31a   : > { %1081 = vmatmul.bf16.gmra.mxu3 %v993_v53 }
 0x31b   : > { %v966_v56 = vpop.f32.mrf.mxu2 }
 0x31c   : > { %v967_v54 = vadd.f32 %v966_v56, %v4293_v43 }
 0x31e   : > { %v985_v58 = vmax.f32 %v967_v54, 0.0 }
 0x323   : > { %v968_v57 = vpop.f32.mrf.mxu2 }
 0x324   : > { %v969_v55 = vadd.f32 %v968_v57, %v4301_v46 }
 0x326   : > { %v986_v59 = vmax.f32 %v969_v55, 0.0 }
 0x328   : > { %v994_v60 = vpack.c.bf16 %v986_v59, %v985_v58 }
 0x32a   : > { %1086 = vmatmul.bf16.gmra.mxu3 %v994_v60 }
 0x33d   : > { %v4371_v61 = vpop.f32.mrf.mxu3 }
 0x33e   : > { %v1093_v14 = vsel %vm1092_vm0, %v4371_v61, -inf }
 0x345   : > { %v4373_v38 = vpop.f32.mrf.mxu3 }
 0x346   : > { %v1096_v24 = vsel %vm1092_vm0, %v4373_v38, -inf }
 0x34d   : > { %v4375_v62 = vpop.f32.mrf.mxu3 }
 0x34e   : > { %v1099_v23 = vsel %vm1092_vm0, %v4375_v62, -inf }
 0x355   : > { %v4377_v41 = vpop.f32.mrf.mxu3 }
 0x356   : > { %v1102_v20 = vsel %vm1092_vm0, %v4377_v41, -inf }
 0x35d   : > { %v4379_v63 = vpop.f32.mrf.mxu3 }
 0x35e   : > { %v1105_v18 = vsel %vm1092_vm0, %v4379_v63, -inf }
 0x365   : > { %v4381_v0 = vpop.f32.mrf.mxu3 }
 0x366   : > { %v1108_v11 = vsel %vm1092_vm0, %v4381_v0, -inf }
 0x36d   : > { %v4383_v43 = vpop.f32.mrf.mxu3 }
 0x36e   : > { %v1111_v8 = vsel %vm1092_vm0, %v4383_v43, -inf }
 0x375   : > { %v4385_v1 = vpop.f32.mrf.mxu3 }
 0x376   : > { %v1114_v22 = vsel %vm1092_vm0, %v4385_v1, -inf }
 0x37d   : > { %v4387_v46 = vpop.f32.mrf.mxu3 }
 0x37e   : > { %v1117_v21 = vsel %vm1092_vm0, %v4387_v46, -inf }
 0x385   : > { %v4389_v2 = vpop.f32.mrf.mxu3 }
 0x386   : > { %v1120_v15 = vsel %vm1092_vm0, %v4389_v2, -inf }
 0x38d   : > { %v1077_v3 = vpop.f32.mrf.mxu3 }
 0x38e   : > { %v1123_v4 = vsel %vm1092_vm0, %v1077_v3, -inf }
 0x38f   : > { %1124 = vmax.xlane.f32.xlu2 %v1123_v4 }
 0x395   : > { %v1079_v5 = vpop.f32.mrf.mxu3 }
 0x396   : > { %v1126_v6 = vsel %vm1092_vm0, %v1079_v5, -inf }
 0x397   : > { %1127 = vmax.xlane.f32.xlu2 %v1126_v6 }
 0x39d   : > { %v1082_v7 = vpop.f32.mrf.mxu3 }
 0x39e   : > { %v1129_v9 = vsel %vm1092_vm0, %v1082_v7, -inf }
 0x39f   : > { %1112 = vmax.xlane.f32.xlu2 %v1111_v8  ;;  %1130 = vmax.xlane.f32.xlu1 %v1129_v9 }
 0x3a5   : > { %v1084_v10 = vpop.f32.mrf.mxu3 }
 0x3a6   : > { %v1132_v12 = vsel %vm1092_vm0, %v1084_v10, -inf }
 0x3a7   : > { %1109 = vmax.xlane.f32.xlu2 %v1108_v11  ;;  %1133 = vmax.xlane.f32.xlu1 %v1132_v12 }
 0x3ad   : > { %v1087_v13 = vpop.f32.mrf.mxu3 }
 0x3ae   : > { %v1135_v16 = vsel %vm1092_vm0, %v1087_v13, -inf }
 0x3af   : > { %1094 = vmax.xlane.f32.xlu2 %v1093_v14  ;;  %1121 = vmax.xlane.f32.xlu1 %v1120_v15 }
 0x3b0   : > { %1136 = vmax.xlane.f32.xlu0 %v1135_v16 }
 0x3b5   : > { %v4404_v17 = vpop.f32.mrf.mxu3 }
 0x3b6   : > { %v1138_v19 = vsel %vm1092_vm0, %v4404_v17, -inf }
 0x3b7   : > { %1106 = vmax.xlane.f32.xlu1 %v1105_v18 }
 0x3b8   : > { %1139 = vmax.xlane.f32.xlu0 %v1138_v19 }
 0x3bf   : > { %1103 = vmax.xlane.f32.xlu1 %v1102_v20 }
 0x3c0   : > { %1118 = vmax.xlane.f32.xlu0 %v1117_v21 }
 0x3c8   : > { %1115 = vmax.xlane.f32.xlu0 %v1114_v22 }
 0x3d0   : > { %1100 = vmax.xlane.f32.xlu0 %v1099_v23 }
 0x3d8   : > { %1097 = vmax.xlane.f32.xlu0 %v1096_v24 }
 0x402   : > { %v1125_v25 = vpop.xlane.xlu2 %1124 }
 0x403   : > { %v1151_v26 = vsub.f32 %v1077_v3, %v1125_v25 }
 0x405   : > { %v1177_v27 = vmul.f32 1.442695, %v1151_v26 }
 0x407   : > { %3587 = vpow2.f32 %v1177_v27 }
 0x40a   : > { %v1128_v28 = vpop.xlane.xlu2 %1127 }
 0x40b   : > { %v1152_v29 = vsub.f32 %v1079_v5, %v1128_v28 }
 0x40d   : > { %v4420_v30 = vpop.eup %3587  ;;  %v1179_v31 = vmul.f32 1.442695, %v1152_v29 }
 0x40e   : > { %v1219_v32 = vsel %vm1092_vm0, %v4420_v30, 0.0 }
 0x40f   : > { %3589 = vpow2.f32 %v1179_v31  ;;  %1220 = vadd.xlane.f32.xlu2 %v1219_v32 }
 0x412   : > { %v1113_v33 = vpop.xlane.xlu2 %1112  ;;  %v1131_v34 = vpop.xlane.xlu1 %1130 }
 0x413   : > { %v1153_v35 = vsub.f32 %v1082_v7, %v1131_v34  ;;  %v1147_v39 = vsub.f32 %v4383_v43, %v1113_v33 }
 0x415   : > { %v4424_v36 = vpop.eup %3589  ;;  %v1181_v37 = vmul.f32 1.442695, %v1153_v35  ;;  %v1169_v42 = vmul.f32 1.442695, %v1147_v39 }
 0x416   : > { %v1222_v40 = vsel %vm1092_vm0, %v4424_v36, 0.0 }
 0x417   : > { %1223 = vadd.xlane.f32.xlu0 %v1222_v40  ;;  %3591 = vpow2.f32 %v1181_v37 }
 0x418   : > { %3593 = vpow2.f32 %v1169_v42 }
 0x41a   : > { %v1110_v44 = vpop.xlane.xlu2 %1109  ;;  %v1134_v45 = vpop.xlane.xlu1 %1133 }
 0x41b   : > { %v1154_v47 = vsub.f32 %v1084_v10, %v1134_v45  ;;  %v1146_v50 = vsub.f32 %v4381_v0, %v1110_v44 }
 0x41d   : > { %v1183_v48 = vmul.f32 1.442695, %v1154_v47  ;;  %v4429_v49 = vpop.eup %3591  ;;  %v1167_v52 = vmul.f32 1.442695, %v1146_v50  ;;  %v1279_v50 = vld [vmem:[%s6042_s0 + $0x50] sm:$0xff] }
 0x41e   : > { %v1225_v51 = vsel %vm1092_vm0, %v4429_v49, 0.0  ;;  %v4434_v54 = vpop.eup %3593 }
 0x41f   : > { %3595 = vpow2.f32 %v1183_v48  ;;  %1226 = vadd.xlane.f32.xlu0 %v1225_v51  ;;  %v1207_v43 = vsel %vm1092_vm0, %v4434_v54, 0.0 }
 0x420   : > { %3597 = vpow2.f32 %v1167_v52 }
 0x422   : > { %v1095_v53 = vpop.xlane.xlu2 %1094  ;;  %v1122_v60 = vpop.xlane.xlu1 %1121 }
 0x423   : > { %v1137_v56 = vpop.xlane.xlu0 %1136  ;;  %v1141_v58 = vsub.f32 %v4371_v61, %v1095_v53  ;;  %v1150_v61 = vsub.f32 %v4389_v2, %v1122_v60 }
 0x424   : > { %v1155_v57 = vsub.f32 %v1087_v13, %v1137_v56 }
 0x425   : > { %v4436_v55 = vpop.eup %3595  ;;  %v1157_v3 = vmul.f32 1.442695, %v1141_v58  ;;  %v1175_v12 = vmul.f32 1.442695, %v1150_v61  ;;  %v1280_v58 = vld [vmem:[%s6042_s0 + $0x58] sm:$0xff] }
 0x426   : > { %v1185_v59 = vmul.f32 1.442695, %v1155_v57  ;;  %v1228_v0 = vsel %vm1092_vm0, %v4436_v55, 0.0  ;;  %v4443_v5 = vpop.eup %3597 }
 0x427   : > { %1229 = vadd.xlane.f32.xlu1 %v1228_v0  ;;  %1208 = vadd.xlane.f32.xlu0 %v1207_v43  ;;  %v1204_v9 = vsel %vm1092_vm0, %v4443_v5, 0.0 }
 0x428   : > { %3599 = vpow2.f32 %v1185_v59 }
 0x429   : > { %3601 = vpow2.f32 %v1157_v3  ;;  %v1281_v3 = vld [vmem:[%s6042_s0 + $0x60] sm:$0xff] }
 0x42a   : > { %v1107_v11 = vpop.xlane.xlu1 %1106 }
 0x42b   : > { %v1140_v4 = vpop.xlane.xlu0 %1139  ;;  %v1145_v16 = vsub.f32 %v4379_v63, %v1107_v11 }
 0x42c   : > { %v1156_v6 = vsub.f32 %v4404_v17, %v1140_v4 }
 0x42d   : > { %v1165_v20 = vmul.f32 1.442695, %v1145_v16 }
 0x42e   : > { %v1187_v7 = vmul.f32 1.442695, %v1156_v6  ;;  %v4447_v8 = vpop.eup %3599 }
 0x42f   : > { %v1231_v10 = vsel %vm1092_vm0, %v4447_v8, 0.0  ;;  %1205 = vadd.xlane.f32.xlu0 %v1204_v9  ;;  %v4453_v14 = vpop.eup %3601 }
 0x430   : > { %3603 = vpow2.f32 %v1187_v7  ;;  %1232 = vadd.xlane.f32.xlu1 %v1231_v10  ;;  %v1189_v18 = vsel %vm1092_vm0, %v4453_v14, 0.0  ;;  %v1282_v10 = vld [vmem:[%s6042_s0 + $0x68] sm:$0xff] }
 0x431   : > { %3605 = vpow2.f32 %v1175_v12 }
 0x432   : > { %v1104_v21 = vpop.xlane.xlu1 %1103 }
 0x433   : > { %v1119_v13 = vpop.xlane.xlu0 %1118  ;;  %v1144_v63 = vsub.f32 %v4377_v41, %v1104_v21  ;;  %v1274_v21 = vld [vmem:[%s6042_s0 + $0x28] sm:$0xff] }
 0x434   : > { %v1149_v15 = vsub.f32 %v4387_v46, %v1119_v13 }
 0x435   : > { %v1163_v28 = vmul.f32 1.442695, %v1144_v63  ;;  %v1283_v63 = vld [vmem:[%s6042_s0 + $0x70] sm:$0xff] }
 0x436   : > { %v4456_v2 = vpop.eup %3603  ;;  %v1173_v17 = vmul.f32 1.442695, %v1149_v15 }
 0x437   : > { %v1234_v19 = vsel %vm1092_vm0, %v4456_v2, 0.0  ;;  %1190 = vadd.xlane.f32.xlu0 %v1189_v18  ;;  %v4463_v23 = vpop.eup %3605 }
 0x438   : > { %3607 = vpow2.f32 %v1173_v17  ;;  %1235 = vadd.xlane.f32.xlu2 %v1234_v19  ;;  %v1216_v26 = vsel %vm1092_vm0, %v4463_v23, 0.0 }
 0x439   : > { %3609 = vpow2.f32 %v1165_v20 }
 0x43b   : > { %v1116_v22 = vpop.xlane.xlu0 %1115 }
 0x43c   : > { %v1148_v46 = vsub.f32 %v4385_v1, %v1116_v22 }
 0x43e   : > { %v4466_v24 = vpop.eup %3607  ;;  %v1171_v25 = vmul.f32 1.442695, %v1148_v46 }
 0x43f   : > { %v1213_v27 = vsel %vm1092_vm0, %v4466_v24, 0.0  ;;  %v4473_v31 = vpop.eup %3609 }
 0x440   : > { %3611 = vpow2.f32 %v1171_v25  ;;  %1217 = vadd.xlane.f32.xlu2 %v1216_v26  ;;  %1214 = vadd.xlane.f32.xlu1 %v1213_v27  ;;  %v1201_v33 = vsel %vm1092_vm0, %v4473_v31, 0.0 }
 0x441   : > { %3613 = vpow2.f32 %v1163_v28 }
 0x443   : > { %v1101_v29 = vpop.xlane.xlu0 %1100 }
 0x444   : > { %v1143_v1 = vsub.f32 %v4375_v62, %v1101_v29 }
 0x446   : > { %v4476_v32 = vpop.eup %3611  ;;  %v1161_v41 = vmul.f32 1.442695, %v1143_v1 }
 0x447   : > { %v1210_v34 = vsel %vm1092_vm0, %v4476_v32, 0.0  ;;  %v4482_v37 = vpop.eup %3613 }
 0x448   : > { %3615 = vpow2.f32 %v1161_v41  ;;  %1202 = vadd.xlane.f32.xlu2 %v1201_v33  ;;  %1211 = vadd.xlane.f32.xlu1 %v1210_v34  ;;  %v1198_v42 = vsel %vm1092_vm0, %v4482_v37, 0.0 }
 0x44b   : > { %v1098_v35 = vpop.xlane.xlu0 %1097 }
 0x44c   : > { %v1142_v39 = vsub.f32 %v4373_v38, %v1098_v35 }
 0x44e   : > { %v4485_v40 = vpop.eup %3615  ;;  %v1159_v62 = vmul.f32 1.442695, %v1142_v39  ;;  %v1269_v39 = vld [vmem:[%s6042_s0] sm:$0xff] }
 0x44f   : > { %v1195_v44 = vsel %vm1092_vm0, %v4485_v40, 0.0 }
 0x450   : > { %3617 = vpow2.f32 %v1159_v62  ;;  %1199 = vadd.xlane.f32.xlu2 %v1198_v42  ;;  %1196 = vadd.xlane.f32.xlu1 %v1195_v44 }
 0x456   : > { %v4491_v45 = vpop.eup %3617 }
 0x457   : > { %v1192_v47 = vsel %vm1092_vm0, %v4491_v45, 0.0 }
 0x458   : > { %1193 = vadd.xlane.f32.xlu1 %v1192_v47 }
 0x482   : > { %v1221_v48 = vpop.xlane.xlu2 %1220 }
 0x483   : > { %3619 = vrcp.f32 %v1221_v48 }
 0x489   : > { %v3620_v38 = vpop.eup %3619 }
 0x48a   : > { %v1224_v51 = vpop.xlane.xlu0 %1223  ;;  %v1263_v52 = vmul.f32 %v3620_v38, %v4420_v30  ;;  %v1278_v38 = vld [vmem:[%s6042_s0 + $0x48] sm:$0xff] }
 0x48b   : > { %3621 = vrcp.f32 %v1224_v51 }
 0x48c   : > { %v4499_v53 = vmul.f32 %v1279_v50, %v1263_v52 }
 0x48e   : > { %v1331_v56 = vsel %vm1092_vm0, %v4499_v53, 0.0 }
 0x48f   : > { %1332 = vadd.xlane.f32.xlu0 %v1331_v56  ;;  %v1277_v56 = vld [vmem:[%s6042_s0 + $0x40] sm:$0xff] }
 0x491   : > { %v3622_v57 = vpop.eup %3621 }
 0x492   : > { %v1264_v59 = vmul.f32 %v3622_v57, %v4424_v36  ;;  %v1227_v60 = vpop.xlane.xlu0 %1226 }
 0x493   : > { %3623 = vrcp.f32 %v1227_v60 }
 0x494   : > { %v4507_v0 = vmul.f32 %v1280_v58, %v1264_v59 }
 0x496   : > { %v1334_v30 = vsel %vm1092_vm0, %v4507_v0, 0.0 }
 0x497   : > { %1335 = vadd.xlane.f32.xlu1 %v1334_v30 }
 0x499   : > { %v3624_v43 = vpop.eup %3623 }
 0x49a   : > { %v1230_v4 = vpop.xlane.xlu1 %1229  ;;  %v1209_v6 = vpop.xlane.xlu0 %1208  ;;  %v1265_v61 = vmul.f32 %v3624_v43, %v4429_v49  ;;  %v1275_v49 = vld [vmem:[%s6042_s0 + $0x30] sm:$0xff]  ;;  %v1273_v43 = vld [vmem:[%s6042_s0 + $0x20] sm:$0xff] }
 0x49b   : > { %3625 = vrcp.f32 %v1230_v4 }
 0x49c   : > { %3627 = vrcp.f32 %v1209_v6  ;;  %v4515_v36 = vmul.f32 %v1281_v3, %v1265_v61  ;;  %v1276_v61 = vld [vmem:[%s6042_s0 + $0x38] sm:$0xff] }
 0x49e   : > { %v1337_v7 = vsel %vm1092_vm0, %v4515_v36, 0.0 }
 0x49f   : > { %1338 = vadd.xlane.f32.xlu1 %v1337_v7 }
 0x4a1   : > { %v3626_v9 = vpop.eup %3625 }
 0x4a2   : > { %v3628_v11 = vpop.eup %3627  ;;  %v1206_v12 = vpop.xlane.xlu0 %1205  ;;  %v1266_v13 = vmul.f32 %v3626_v9, %v4436_v55 }
 0x4a3   : > { %v1233_v15 = vpop.xlane.xlu1 %1232  ;;  %3629 = vrcp.f32 %v1206_v12  ;;  %v1259_v16 = vmul.f32 %v3628_v11, %v4434_v54 }
 0x4a4   : > { %3631 = vrcp.f32 %v1233_v15  ;;  %v4527_v17 = vmul.f32 %v1282_v10, %v1266_v13  ;;  %v1272_v13 = vld [vmem:[%s6042_s0 + $0x18] sm:$0xff] }
 0x4a5   : > { %v4529_v18 = vmul.f32 %v1275_v49, %v1259_v16  ;;  %v1271_v16 = vld [vmem:[%s6042_s0 + $0x10] sm:$0xff] }
 0x4a6   : > { %v1340_v19 = vsel %vm1092_vm0, %v4527_v17, 0.0 }
 0x4a7   : > { %1341 = vadd.xlane.f32.xlu2 %v1340_v19  ;;  %v1319_v55 = vsel %vm1092_vm0, %v4529_v18, 0.0 }
 0x4a8   : > { %1320 = vadd.xlane.f32.xlu1 %v1319_v55 }
 0x4a9   : > { %v3630_v20 = vpop.eup %3629 }
 0x4aa   : > { %v3632_v22 = vpop.eup %3631  ;;  %v1191_v46 = vpop.xlane.xlu0 %1190  ;;  %v1258_v25 = vmul.f32 %v3630_v20, %v4443_v5  ;;  %v1284_v5 = vld [vmem:[%s6042_s0 + $0x78] sm:$0xff] }
 0x4ab   : > { %v1236_v54 = vpop.xlane.xlu2 %1235  ;;  %v1267_v26 = vmul.f32 %v3632_v22, %v4447_v8 }
 0x4ac   : > { %3633 = vrcp.f32 %v1236_v54  ;;  %v4543_v27 = vmul.f32 %v1274_v21, %v1258_v25  ;;  %v1270_v54 = vld [vmem:[%s6042_s0 + $0x8] sm:$0xff] }
 0x4ad   : > { %3635 = vrcp.f32 %v1191_v46  ;;  %v4545_v28 = vmul.f32 %v1283_v63, %v1267_v26 }
 0x4ae   : > { %v1316_v29 = vsel %vm1092_vm0, %v4543_v27, 0.0 }
 0x4af   : > { %v1343_v1 = vsel %vm1092_vm0, %v4545_v28, 0.0 }
 0x4b0   : > { %1344 = vadd.xlane.f32.xlu2 %v1343_v1  ;;  %1317 = vadd.xlane.f32.xlu1 %v1316_v29 }
 0x4b2   : > { %v3634_v41 = vpop.eup %3633 }
 0x4b3   : > { %v3636_v33 = vpop.eup %3635  ;;  %v1218_v8 = vpop.xlane.xlu2 %1217  ;;  %v1268_v35 = vmul.f32 %v3634_v41, %v4456_v2 }
 0x4b4   : > { %v1215_v34 = vpop.xlane.xlu1 %1214  ;;  %3637 = vrcp.f32 %v1218_v8  ;;  %v1253_v62 = vmul.f32 %v3636_v33, %v4453_v14 }
 0x4b5   : > { %3639 = vrcp.f32 %v1215_v34  ;;  %v4559_v42 = vmul.f32 %v1284_v5, %v1268_v35 }
 0x4b6   : > { %v4561_v44 = vmul.f32 %v1269_v39, %v1253_v62 }
 0x4b7   : > { %v1346_v47 = vsel %vm1092_vm0, %v4559_v42, 0.0 }
 0x4b8   : > { %1347 = vadd.xlane.f32.xlu0 %v1346_v47  ;;  %v1301_v48 = vsel %vm1092_vm0, %v4561_v44, 0.0 }
 0x4b9   : > { %1302 = vadd.xlane.f32.xlu1 %v1301_v48 }
 0x4ba   : > { %v3638_v2 = vpop.eup %3637 }
 0x4bb   : > { %v3640_v50 = vpop.eup %3639  ;;  %v1203_v14 = vpop.xlane.xlu2 %1202  ;;  %v1262_v52 = vmul.f32 %v3638_v2, %v4463_v23 }
 0x4bc   : > { %v1212_v51 = vpop.xlane.xlu1 %1211  ;;  %3641 = vrcp.f32 %v1203_v14  ;;  %v1261_v57 = vmul.f32 %v3640_v50, %v4466_v24 }
 0x4bd   : > { %3643 = vrcp.f32 %v1212_v51  ;;  %v4575_v58 = vmul.f32 %v1278_v38, %v1262_v52 }
 0x4be   : > { %v4577_v59 = vmul.f32 %v1277_v56, %v1261_v57 }
 0x4bf   : > { %v1328_v60 = vsel %vm1092_vm0, %v4575_v58, 0.0 }
 0x4c0   : > { %1329 = vadd.xlane.f32.xlu0 %v1328_v60  ;;  %v1325_v30 = vsel %vm1092_vm0, %v4577_v59, 0.0 }
 0x4c1   : > { %1326 = vadd.xlane.f32.xlu2 %v1325_v30 }
 0x4c2   : > { %v3642_v23 = vpop.eup %3641 }
 0x4c3   : > { %v3644_v3 = vpop.eup %3643  ;;  %v1200_v24 = vpop.xlane.xlu2 %1199  ;;  %v1257_v6 = vmul.f32 %v3642_v23, %v4473_v31 }
 0x4c4   : > { %v1197_v4 = vpop.xlane.xlu1 %1196  ;;  %3645 = vrcp.f32 %v1200_v24  ;;  %v1260_v7 = vmul.f32 %v3644_v3, %v4476_v32 }
 0x4c5   : > { %3647 = vrcp.f32 %v1197_v4  ;;  %v4591_v9 = vmul.f32 %v1273_v43, %v1257_v6 }
 0x4c6   : > { %v4593_v10 = vmul.f32 %v1276_v61, %v1260_v7 }
 0x4c7   : > { %v1313_v11 = vsel %vm1092_vm0, %v4591_v9, 0.0 }
 0x4c8   : > { %1314 = vadd.xlane.f32.xlu0 %v1313_v11  ;;  %v1322_v12 = vsel %vm1092_vm0, %v4593_v10, 0.0 }
 0x4c9   : > { %1323 = vadd.xlane.f32.xlu2 %v1322_v12 }
 0x4ca   : > { %v3646_v31 = vpop.eup %3645 }
 0x4cb   : > { %v3648_v49 = vpop.eup %3647  ;;  %v1256_v15 = vmul.f32 %v3646_v31, %v4482_v37 }
 0x4cc   : > { %v1194_v32 = vpop.xlane.xlu1 %1193  ;;  %v1255_v19 = vmul.f32 %v3648_v49, %v4485_v40 }
 0x4cd   : > { %3649 = vrcp.f32 %v1194_v32  ;;  %v4607_v55 = vmul.f32 %v1272_v13, %v1256_v15 }
 0x4ce   : > { %v4609_v20 = vmul.f32 %v1271_v16, %v1255_v19 }
 0x4cf   : > { %v1310_v21 = vsel %vm1092_vm0, %v4607_v55, 0.0 }
 0x4d0   : > { %1311 = vadd.xlane.f32.xlu0 %v1310_v21  ;;  %v1307_v22 = vsel %vm1092_vm0, %v4609_v20, 0.0 }
 0x4d1   : > { %1308 = vadd.xlane.f32.xlu2 %v1307_v22 }
 0x4d3   : > { %v3650_v37 = vpop.eup %3649 }
 0x4d4   : > { %v1254_v46 = vmul.f32 %v3650_v37, %v4491_v45 }
 0x4d6   : > { %v4619_v40 = vmul.f32 %v1270_v54, %v1254_v46 }
 0x4d8   : > { %v1304_v63 = vsel %vm1092_vm0, %v4619_v40, 0.0 }
 0x4d9   : > { %1305 = vadd.xlane.f32.xlu2 %v1304_v63 }
 0x502   : > { %v1333_v25 = vpop.xlane.xlu0 %1332 }
 0x503   : > { %v1359_v26 = vmax.f32 %v1333_v25, 1e-30 }
 0x505   : > { %3651 = vrcp.f32 %v1359_v26  ;;  %vm1520_vm2 = vweird.f32 %v1359_v26  ;;  %v1524_v23 = vand.u32 2147483647, %v1359_v26  ;;  %v1526_v43 = vand.u32 2147483648, %v1359_v26 }
 0x507   : > { %v1527_v16 = vor.u32 1.1754944e-38, %v1526_v43  ;;  %vm1525_vm7 = vcmp.eq.f32.partialorder %v1524_v23, 8.507059e+37 }
 0x50a   : > { %v1336_v29 = vpop.xlane.xlu1 %1335 }
 0x50b   : > { %v1360_v1 = vmax.f32 %v1336_v29, 1e-30  ;;  %v3652_v41 = vpop.eup %3651 }
 0x50c   : > { %v1516_v34 = vmul.f32 %v3652_v41, %v1359_v26  ;;  %vm1521_vm1 = vweird.f32 %v3652_v41 }
 0x50d   : > { %3653 = vrcp.f32 %v1360_v1  ;;  %v1541_v3 = vand.u32 2147483648, %v1360_v1  ;;  %vm4644_vm4 = vmor %vm1520_vm2, %vm1521_vm1  ;;  %vm1535_vm5 = vweird.f32 %v1360_v1  ;;  %v1539_v11 = vand.u32 2147483647, %v1360_v1 }
 0x50e   : > { %v1517_v45 = vsub.f32 1.0, %v1516_v34 }
 0x50f   : > { %v1542_v19 = vor.u32 1.1754944e-38, %v1541_v3  ;;  %vm1540_vm8 = vcmp.eq.f32.partialorder %v1539_v11, 8.507059e+37 }
 0x510   : > { %v1518_v50 = vmul.f32 %v3652_v41, %v1517_v45 }
 0x512   : > { %v1339_v5 = vpop.xlane.xlu1 %1338  ;;  %v1519_v52 = vadd.f32 %v3652_v41, %v1518_v50 }
 0x513   : > { %v3654_v33 = vpop.eup %3653  ;;  %v4623_v8 = vmax.f32 %v1339_v5, 1e-30 }
 0x514   : > { %v1531_v35 = vmul.f32 %v3654_v33, %v1360_v1  ;;  %vm1536_vm3 = vweird.f32 %v3654_v33  ;;  %v1523_v12 = vsel %vm4644_vm4, %v3652_v41, %v1519_v52 }
 0x515   : > { %3655 = vrcp.f32 %v4623_v8  ;;  %vm1537_vm6 = vmor %vm1535_vm5, %vm1536_vm3  ;;  %v1528_v22 = vsel %vm1525_vm7, %v1527_v16, %v1523_v12  ;;  %vm1550_vm9 = vweird.f32 %v4623_v8  ;;  %v1554_v63 = vand.u32 2147483647, %v4623_v8 }
 0x516   : > { %v1532_v39 = vsub.f32 1.0, %v1531_v35  ;;  %v1556_v25 = vand.u32 2147483648, %v4623_v8 }
 0x517   : > { %vm1555_vm13 = vcmp.eq.f32.partialorder %v1554_v63, 8.507059e+37 }
 0x518   : > { %v1533_v14 = vmul.f32 %v3654_v33, %v1532_v39 }
 0x51a   : > { %v1342_v62 = vpop.xlane.xlu2 %1341  ;;  %v1534_v56 = vadd.f32 %v3654_v33, %v1533_v14 }
 0x51b   : > { %v4626_v47 = vmax.f32 %v1342_v62, 1e-30  ;;  %v1321_v48 = vpop.xlane.xlu1 %1320  ;;  %v4628_v2 = vpop.eup %3655 }
 0x51c   : > { %v4630_v38 = vmax.f32 %v1321_v48, 1e-30  ;;  %v1546_v51 = vmul.f32 %v4628_v2, %v4623_v8  ;;  %v1538_v49 = vsel %vm1537_vm6, %v3654_v33, %v1534_v56  ;;  %vm1551_vm10 = vweird.f32 %v4628_v2 }
 0x51d   : > { %3657 = vrcp.f32 %v4626_v47  ;;  %v1543_v37 = vsel %vm1540_vm8, %v1542_v19, %v1538_v49  ;;  %v1569_v41 = vand.u32 2147483647, %v4626_v47  ;;  %v1571_v5 = vand.u32 2147483648, %v4626_v47  ;;  %vm4681_vm12 = vmor %vm1550_vm9, %vm1551_vm10 }
 0x51e   : > { %3659 = vrcp.f32 %v4630_v38  ;;  %v1547_v60 = vsub.f32 1.0, %v1546_v51  ;;  %v4671_v33 = vmul.f32 %v1543_v37, %v4507_v0  ;;  %v1466_v34 = vand.u32 2147483648, %v4630_v38 }
 0x51f   : > { %v4686_v0 = vmul.f32 %v1528_v22, %v4499_v53  ;;  %v1464_v48 = vand.u32 2147483647, %v4630_v38  ;;  %vm1565_vm14 = vweird.f32 %v4626_v47  ;;  %v1557_v51 = vor.u32 1.1754944e-38, %v1556_v25 }
 0x520   : > { %v1548_v15 = vmul.f32 %v4628_v2, %v1547_v60  ;;  %vm4698_vm1 = vcmp.eq.f32.partialorder %v1569_v41, 8.507059e+37  ;;  %v1572_v56 = vor.u32 1.1754944e-38, %v1571_v5  ;;  %vm1460_vm2 = vweird.f32 %v4630_v38 }
 0x521   : > { %v1467_v23 = vor.u32 1.1754944e-38, %v1466_v34  ;;  %vm4714_vm4 = vcmp.eq.f32.partialorder %v1464_v48, 8.507059e+37 }
 0x522   : > { %v1549_v29 = vadd.f32 %v4628_v2, %v1548_v15 }
 0x523   : > { %v4636_v57 = vpop.eup %3657  ;;  %v1345_v30 = vpop.xlane.xlu2 %1344 }
 0x524   : > { %v4638_v24 = vpop.eup %3659  ;;  %v1561_v4 = vmul.f32 %v4636_v57, %v4626_v47  ;;  %v4642_v6 = vmax.f32 %v1345_v30, 1e-30  ;;  %v1318_v61 = vpop.xlane.xlu1 %1317  ;;  %vm1566_vm11 = vweird.f32 %v4636_v57  ;;  %v1553_v14 = vsel %vm4681_vm12, %v4628_v2, %v1549_v29 }
 0x525   : > { %v1456_v13 = vmul.f32 %v4638_v24, %v4630_v38  ;;  %v4654_v32 = vmax.f32 %v1318_v61, 1e-30  ;;  %vm4694_vm15 = vmor %vm1565_vm14, %vm1566_vm11  ;;  %v1611_v30 = vpack.c.bf16 %v4671_v33, %v4686_v0  ;;  %vm1461_vm3 = vweird.f32 %v4638_v24 }
 0x526   : > { %v1562_v31 = vsub.f32 1.0, %v1561_v4  ;;  %3661 = vrcp.f32 %v4642_v6  ;;  %v1586_v3 = vand.u32 2147483648, %v4642_v6  ;;  %v1558_v4 = vsel %vm1555_vm13, %v1557_v51, %v1553_v14  ;;  %vm4753_vm8 = vmor %vm1460_vm2, %vm1461_vm3 }
 0x527   : > { %v1457_v54 = vsub.f32 1.0, %v1456_v13  ;;  %3663 = vrcp.f32 %v4654_v32  ;;  %vm1580_vm6 = vweird.f32 %v4642_v6  ;;  %v1451_v22 = vand.u32 2147483648, %v4654_v32 }
 0x528   : > { %v1563_v21 = vmul.f32 %v4636_v57, %v1562_v31 }
 0x529   : > { %v1458_v62 = vmul.f32 %v4638_v24, %v1457_v54 }
 0x52a   : > { %v1564_v45 = vadd.f32 %v4636_v57, %v1563_v21  ;;  %v1584_v21 = vand.u32 2147483647, %v4642_v6 }
 0x52b   : > { %v1348_v46 = vpop.xlane.xlu0 %1347  ;;  %v1459_v61 = vadd.f32 %v4638_v24, %v1458_v62 }
 0x52c   : > { %v4662_v26 = vmax.f32 %v1348_v46, 1e-30  ;;  %v4666_v1 = vpop.eup %3661  ;;  %v1303_v8 = vpop.xlane.xlu1 %1302  ;;  %v1568_v47 = vsel %vm4694_vm15, %v4636_v57, %v1564_v45  ;;  %v1587_v46 = vor.u32 1.1754944e-38, %v1586_v3  ;;  %vm1585_vm10 = vcmp.eq.f32.partialorder %v1584_v21, 8.507059e+37 }
 0x52d   : > { %v1576_v35 = vmul.f32 %v4666_v1, %v4642_v6  ;;  %v4703_v60 = vpop.eup %3663  ;;  %v4718_v12 = vmax.f32 %v1303_v8, 1e-30  ;;  %vm1581_vm5 = vweird.f32 %v4666_v1  ;;  %v1573_v19 = vsel %vm4698_vm1, %v1572_v56, %v1568_v47 }
 0x52e   : > { %3665 = vrcp.f32 %v4662_v26  ;;  %v1441_v49 = vmul.f32 %v4703_v60, %v4654_v32  ;;  %vm4736_vm7 = vmor %vm1580_vm6, %vm1581_vm5  ;;  %v1599_v63 = vand.u32 2147483647, %v4662_v26  ;;  %v1601_v6 = vand.u32 2147483648, %v4662_v26 }
 0x52f   : > { %v1577_v50 = vsub.f32 1.0, %v1576_v35  ;;  %v4747_v29 = vmul.f32 %v1573_v19, %v4527_v17  ;;  %v4761_v35 = vmul.f32 %v1558_v4, %v4515_v36  ;;  %v1449_v17 = vand.u32 2147483647, %v4654_v32 }
 0x530   : > { %v1442_v5 = vsub.f32 1.0, %v1441_v49  ;;  %v4764_v45 = vor.u32 1.1754944e-38, %v1451_v22  ;;  %vm1595_vm11 = vweird.f32 %v4662_v26  ;;  %vm4767_vm12 = vcmp.eq.f32.partialorder %v1599_v63, 8.507059e+37 }
 0x531   : > { %v1578_v2 = vmul.f32 %v4666_v1, %v1577_v50  ;;  %v1602_v36 = vor.u32 1.1754944e-38, %v1601_v6  ;;  %v1612_v8 = vpack.c.bf16 %v4747_v29, %v4761_v35  ;;  %vm1446_vm14 = vweird.f32 %v4703_v60 }
 0x532   : > { %vm1445_vm15 = vweird.f32 %v4654_v32  ;;  %vm4802_vm3 = vcmp.eq.f32.partialorder %v1449_v17, 8.507059e+37 }
 0x533   : > { %v1330_v43 = vpop.xlane.xlu0 %1329  ;;  %v1579_v13 = vadd.f32 %v4666_v1, %v1578_v2  ;;  %v1443_v2 = vmul.f32 %v4703_v60, %v1442_v5 }
 0x534   : > { %v3666_v11 = vpop.eup %3665  ;;  %v1327_v57 = vpop.xlane.xlu2 %1326  ;;  %v4720_v31 = vmax.f32 %v1330_v43, 1e-30 }
 0x535   : > { %v1591_v15 = vmul.f32 %v3666_v11, %v4662_v26  ;;  %v4727_v16 = vmax.f32 %v1327_v57, 1e-30  ;;  %v1583_v25 = vsel %vm4736_vm7, %v4666_v1, %v1579_v13  ;;  %vm1596_vm9 = vweird.f32 %v3666_v11 }
 0x536   : > { %3667 = vrcp.f32 %v4720_v31  ;;  %v1463_v1 = vsel %vm4753_vm8, %v4638_v24, %v1459_v61  ;;  %v1588_v39 = vsel %vm1585_vm10, %v1587_v46, %v1583_v25  ;;  %vm1597_vm13 = vmor %vm1595_vm11, %vm1596_vm9  ;;  %v1511_v13 = vand.u32 2147483648, %v4720_v31 }
 0x537   : > { %v1592_v37 = vsub.f32 1.0, %v1591_v15  ;;  %3669 = vrcp.f32 %v4727_v16  ;;  %v1468_v51 = vsel %vm4714_vm4, %v1467_v23, %v1463_v1  ;;  %v1589_v3 = vmul.f32 %v1588_v39, %v4545_v28  ;;  %vm4831_vm10 = vmor %vm1445_vm15, %vm1446_vm14 }
 0x538   : > { %3671 = vrcp.f32 %v4718_v12  ;;  %v1494_v7 = vand.u32 2147483647, %v4727_v16  ;;  %v1496_v57 = vand.u32 2147483648, %v4727_v16  ;;  %v4796_v49 = vmul.f32 %v1468_v51, %v4529_v18 }
 0x539   : > { %v1593_v34 = vmul.f32 %v3666_v11, %v1592_v37  ;;  %v1509_v19 = vand.u32 2147483647, %v4720_v31  ;;  %vm1490_vm4 = vweird.f32 %v4727_v16  ;;  %vm1505_vm6 = vweird.f32 %v4720_v31 }
 0x53a   : > { %vm4807_vm5 = vcmp.eq.f32.partialorder %v1494_v7, 8.507059e+37  ;;  %v1497_v41 = vor.u32 1.1754944e-38, %v1496_v57  ;;  %v1512_v5 = vor.u32 1.1754944e-38, %v1511_v13 }
 0x53b   : > { %v1315_v38 = vpop.xlane.xlu0 %1314  ;;  %v1594_v62 = vadd.f32 %v3666_v11, %v1593_v34  ;;  %vm1510_vm9 = vcmp.eq.f32.partialorder %v1509_v19, 8.507059e+37 }
 0x53c   : > { %v3668_v50 = vpop.eup %3667  ;;  %v1324_v14 = vpop.xlane.xlu2 %1323  ;;  %v4771_v24 = vmax.f32 %v1315_v38, 1e-30 }
 0x53d   : > { %v3670_v52 = vpop.eup %3669  ;;  %v1501_v26 = vmul.f32 %v3668_v50, %v4720_v31  ;;  %v4779_v53 = vmax.f32 %v1324_v14, 1e-30  ;;  %v1598_v56 = vsel %vm1597_vm13, %v3666_v11, %v1594_v62  ;;  %vm1506_vm1 = vweird.f32 %v3668_v50 }
 0x53e   : > { %v4782_v47 = vpop.eup %3671  ;;  %v1486_v43 = vmul.f32 %v3670_v52, %v4727_v16  ;;  %3673 = vrcp.f32 %v4771_v24  ;;  %v1603_v23 = vsel %vm4767_vm12, %v1602_v36, %v1598_v56  ;;  %vm1491_vm2 = vweird.f32 %v3670_v52  ;;  %vm1507_vm7 = vmor %vm1505_vm6, %vm1506_vm1 }
 0x53f   : > { %v1502_v4 = vsub.f32 1.0, %v1501_v26  ;;  %3675 = vrcp.f32 %v4779_v53  ;;  %v1604_v61 = vmul.f32 %v1603_v23, %v4559_v42  ;;  %v1366_v21 = vmul.f32 %v4782_v47, %v4718_v12  ;;  %vm1492_vm8 = vmor %vm1490_vm4, %vm1491_vm2 }
 0x540   : > { %v1487_v11 = vsub.f32 1.0, %v1486_v43  ;;  %v1444_v42 = vadd.f32 %v4703_v60, %v1443_v2  ;;  %v1481_v36 = vand.u32 2147483648, %v4779_v53  ;;  %v1436_v51 = vand.u32 2147483648, %v4771_v24 }
 0x541   : > { %v1613_v28 = vpack.c.bf16 %v1604_v61, %v1589_v3  ;;  %v1503_v15 = vmul.f32 %v3668_v50, %v1502_v4  ;;  %v1367_v39 = vsub.f32 1.0, %v1366_v21  ;;  %v1479_v2 = vand.u32 2147483647, %v4779_v53 }
 0x542   : > { %v1488_v22 = vmul.f32 %v3670_v52, %v1487_v11  ;;  %v1434_v43 = vand.u32 2147483647, %v4771_v24  ;;  %vm1430_vm13 = vweird.f32 %v4771_v24  ;;  %vm1475_vm14 = vweird.f32 %v4779_v53 }
 0x543   : > { %3490 = vmatpush.lsf.bf16.msrb.mxu1 %v1613_v28  ;;  %v1312_v54 = vpop.xlane.xlu0 %1311  ;;  %v1504_v46 = vadd.f32 %v3668_v50, %v1503_v15  ;;  %v1482_v61 = vor.u32 1.1754944e-38, %v1481_v36  ;;  %v1437_v0 = vor.u32 1.1754944e-38, %v1436_v51  ;;  %vm1480_vm2 = vcmp.eq.f32.partialorder %v1479_v2, 8.507059e+37 }
 0x544   : > { %v4812_v63 = vpop.eup %3673  ;;  %v1309_v25 = vpop.xlane.xlu2 %1308  ;;  %v4814_v6 = vmax.f32 %v1312_v54, 1e-30  ;;  %v1489_v29 = vadd.f32 %v3670_v52, %v1488_v22 }
 0x545   : > { %v3676_v34 = vpop.eup %3675  ;;  %v1426_v16 = vmul.f32 %v4812_v63, %v4771_v24  ;;  %v4819_v1 = vmax.f32 %v1309_v25, 1e-30  ;;  %v1508_v35 = vsel %vm1507_vm7, %v3668_v50, %v1504_v46  ;;  %vm1431_vm11 = vweird.f32 %v4812_v63 }
 0x546   : > { %v1471_v31 = vmul.f32 %v3676_v34, %v4779_v53  ;;  %3677 = vrcp.f32 %v4814_v6  ;;  %v1493_v17 = vsel %vm1492_vm8, %v3670_v52, %v1489_v29  ;;  %v1513_v38 = vsel %vm1510_vm9, %v1512_v5, %v1508_v35  ;;  %vm4858_vm15 = vmor %vm1430_vm13, %vm1431_vm11 }
 0x547   : > { %v1427_v62 = vsub.f32 1.0, %v1426_v16  ;;  %3679 = vrcp.f32 %v4819_v1  ;;  %3491 = vmatpush.lsf.bf16.msrb.mxu1 %v1612_v8  ;;  %v1498_v48 = vsel %vm4807_vm5, %v1497_v41, %v1493_v17  ;;  %v1448_v8 = vsel %vm4831_vm10, %v4703_v60, %v1444_v42 }
 0x548   : > { %v1472_v14 = vsub.f32 1.0, %v1471_v31  ;;  %v1499_v52 = vmul.f32 %v1498_v48, %v4577_v59  ;;  %v1514_v26 = vmul.f32 %v1513_v38, %v4575_v58  ;;  %vm1476_vm12 = vweird.f32 %v3676_v34 }
 0x549   : > { %v1428_v56 = vmul.f32 %v4812_v63, %v1427_v62  ;;  %v1453_v58 = vsel %vm4802_vm3, %v4764_v45, %v1448_v8  ;;  %v1368_v59 = vmul.f32 %v4782_v47, %v1367_v39  ;;  %vm1477_vm1 = vmor %vm1475_vm14, %vm1476_vm12  ;;  %vm1435_vm3 = vcmp.eq.f32.partialorder %v1434_v43, 8.507059e+37  ;;  %v3811_v43 = vld [vmem:[#allocation8 + $0x38] sm:$0xff] }
 0x54a   : > { %v1473_v32 = vmul.f32 %v3676_v34, %v1472_v14  ;;  %v1610_v45 = vpack.c.bf16 %v1514_v26, %v1499_v52  ;;  %v1404_v22 = vand.u32 2147483647, %v4819_v1  ;;  %v1421_v42 = vand.u32 2147483648, %v4814_v6 }
 0x54b   : > { %3492 = vmatpush.lsf.bf16.msrb.mxu1 %v1611_v30  ;;  %v1429_v60 = vadd.f32 %v4812_v63, %v1428_v56  ;;  %v1406_v37 = vand.u32 2147483648, %v4819_v1  ;;  %v1419_v18 = vand.u32 2147483647, %v4814_v6  ;;  %v1454_v29 = vmul.f32 %v1453_v58, %v4543_v27  ;;  %v3813_v58 = vld [vmem:[#allocation8 + $0x28] sm:$0xff] }
 0x54c   : > { %v3678_v3 = vpop.eup %3677  ;;  %v1306_v23 = vpop.xlane.xlu2 %1305  ;;  %v1474_v4 = vadd.f32 %v3676_v34, %v1473_v32  ;;  %vm1415_vm6 = vweird.f32 %v4814_v6  ;;  %vm1400_vm7 = vweird.f32 %v4819_v1  ;;  %vm1371_vm9 = vweird.f32 %v4782_v47 }
 0x54d   : > { %v3680_v30 = vpop.eup %3679  ;;  %v1411_v24 = vmul.f32 %v3678_v3, %v4814_v6  ;;  %v4863_v7 = vmax.f32 %v1306_v23, 1e-30  ;;  %v1433_v53 = vsel %vm4858_vm15, %v4812_v63, %v1429_v60  ;;  %vm1416_vm4 = vweird.f32 %v3678_v3  ;;  %v3812_v60 = vld [vmem:[#allocation8 + $0x30] sm:$0xff] }
 0x54e   : > { %v1396_v11 = vmul.f32 %v3680_v30, %v4819_v1  ;;  %v1478_v57 = vsel %vm1477_vm1, %v3676_v34, %v1474_v4  ;;  %v1438_v15 = vsel %vm1435_vm3, %v1437_v0, %v1433_v53  ;;  %vm1401_vm5 = vweird.f32 %v3680_v30  ;;  %vm1417_vm8 = vmor %vm1415_vm6, %vm1416_vm4  ;;  %v3816_v23 = vld [vmem:[#allocation8 + $0x10] sm:$0xff]  ;;  %v3818_v4 = vld [vmem:[#allocation8] sm:$0xff] }
 0x54f   : > { %v1412_v13 = vsub.f32 1.0, %v1411_v24  ;;  %3681 = vrcp.f32 %v4863_v7  ;;  %3493 = vmatpush.lsf.bf16.msrb.mxu1 %v1610_v45  ;;  %v1483_v28 = vsel %vm1480_vm2, %v1482_v61, %v1478_v57  ;;  %v1439_v63 = vmul.f32 %v1438_v15, %v4591_v9  ;;  %vm1402_vm10 = vmor %vm1400_vm7, %vm1401_vm5  ;;  %v4899_v61 = vld [vmem:[#allocation3] sm:$0xff]  ;;  %v3819_v0 = vld [vmem:[%s6047_s5 + $0x38] sm:$0xff] }
 0x550   : > { %v1397_v19 = vsub.f32 1.0, %v1396_v11  ;;  %v1484_v21 = vmul.f32 %v1483_v28, %v4593_v10  ;;  %v1369_v10 = vadd.f32 %v4782_v47, %v1368_v59  ;;  %v1422_v34 = vor.u32 1.1754944e-38, %v1421_v42  ;;  %v3814_v59 = vld [vmem:[#allocation8 + $0x20] sm:$0xff]  ;;  %v3821_v24 = vld [vmem:[%s6047_s5 + $0x28] sm:$0xff]  ;;  %v4914_v45 = vld [vmem:[#allocation3 + $0x50] sm:$0xff] }
 0x551   : > { %v1413_v54 = vmul.f32 %v3678_v3, %v1412_v13  ;;  %vm1405_vm11 = vcmp.eq.f32.partialorder %v1404_v22, 8.507059e+37  ;;  %v1407_v9 = vor.u32 1.1754944e-38, %v1406_v37  ;;  %vm1420_vm12 = vcmp.eq.f32.partialorder %v1419_v18, 8.507059e+37  ;;  %v3822_v53 = vld [vmem:[%s6047_s5 + $0x20] sm:$0xff]  ;;  %v3823_v57 = vld [vmem:[%s6047_s5 + $0x18] sm:$0xff]  ;;  %v3824_v13 = vld [vmem:[%s6047_s5 + $0x10] sm:$0xff] }
 0x552   : > { %v1609_v46 = vpack.c.bf16 %v1484_v21, %v4796_v49  ;;  %v1398_v25 = vmul.f32 %v3680_v30, %v1397_v19  ;;  %v1608_v35 = vpack.c.bf16 %v1454_v29, %v1439_v63  ;;  %vm1370_vm13 = vweird.f32 %v4718_v12  ;;  %v3825_v28 = vld [vmem:[%s6047_s5 + $0x8] sm:$0xff]  ;;  %v4930_v15 = vld [vmem:[#allocation3 + $0x20] sm:$0xff]  ;;  %v4939_v42 = vld [vmem:[#allocation3 + $0x10] sm:$0xff] }
 0x553   : > { %v1414_v41 = vadd.f32 %v3678_v3, %v1413_v54  ;;  %v1376_v1 = vand.u32 2147483648, %v4718_v12  ;;  %vm1372_vm14 = vmor %vm1370_vm13, %vm1371_vm9  ;;  %v1374_v48 = vand.u32 2147483647, %v4718_v12  ;;  %v1391_v14 = vand.u32 2147483648, %v4863_v7  ;;  %v4932_v19 = vld [vmem:[#allocation3 + $0x68] sm:$0xff]  ;;  %v3826_v21 = vld [vmem:[%s6047_s5] sm:$0xff] }
 0x554   : > { %3494 = vmatpush.lsf.bf16.msrb.mxu1 %v1609_v46  ;;  %v1399_v5 = vadd.f32 %v3680_v30, %v1398_v25  ;;  %v1373_v50 = vsel %vm1372_vm14, %v4782_v47, %v1369_v10  ;;  %vm1385_vm2 = vweird.f32 %v4863_v7  ;;  %v1665_v22 = vpack.c.bf16 %v4930_v15, %v4932_v19  ;;  %v4941_v37 = vld [vmem:[#allocation3 + $0x70] sm:$0xff]  ;;  %v4945_v18 = vld [vmem:[#allocation3 + $0x40] sm:$0xff]  ;;  %v4947_v46 = vld [vmem:[#allocation3 + $0x28] sm:$0xff] }
 0x555   : > { %v3682_v49 = vpop.eup %3681  ;;  %v1418_v16 = vsel %vm1417_vm8, %v3678_v3, %v1414_v41  ;;  %v1377_v8 = vor.u32 1.1754944e-38, %v1376_v1  ;;  %vm1375_vm1 = vcmp.eq.f32.partialorder %v1374_v48, 8.507059e+37  ;;  %v1392_v26 = vor.u32 1.1754944e-38, %v1391_v14  ;;  %v3815_v3 = vld [vmem:[#allocation8 + $0x18] sm:$0xff]  ;;  %v4951_v25 = vld [vmem:[#allocation3 + $0x8] sm:$0xff] }
 0x556   : > { %v1381_v27 = vmul.f32 %v3682_v49, %v4863_v7  ;;  %v1403_v6 = vsel %vm1402_vm10, %v3680_v30, %v1399_v5  ;;  %v1423_v31 = vsel %vm1420_vm12, %v1422_v34, %v1418_v16  ;;  %vm1386_vm15 = vweird.f32 %v3682_v49  ;;  %v3820_v30 = vld [vmem:[%s6047_s5 + $0x30] sm:$0xff]  ;;  %v4953_v29 = vld [vmem:[#allocation3 + $0x38] sm:$0xff]  ;;  %v4959_v5 = vld [vmem:[#allocation3 + $0x48] sm:$0xff] }
 0x557   : > { %v1408_v17 = vsel %vm1405_vm11, %v1407_v9, %v1403_v6  ;;  %v1424_v38 = vmul.f32 %v1423_v31, %v4607_v55  ;;  %v1389_v55 = vand.u32 2147483647, %v4863_v7  ;;  %vm1387_vm3 = vmor %vm1385_vm2, %vm1386_vm15  ;;  %v4912_v7 = vld [vmem:[#allocation3 + $0x60] sm:$0xff]  ;;  %v1666_v54 = vpack.c.bf16 %v4939_v42, %v4941_v37  ;;  %v4957_v10 = vld [vmem:[#allocation3 + $0x58] sm:$0xff] }
 0x558   : > { %v1382_v39 = vsub.f32 1.0, %v1381_v27  ;;  %3495 = vmatpush.lsf.bf16.msrb.mxu1 %v1608_v35  ;;  %v1409_v62 = vmul.f32 %v1408_v17, %v4609_v20  ;;  %v1378_v20 = vsel %vm1375_vm1, %v1377_v8, %v1373_v50  ;;  %v1664_v11 = vpack.c.bf16 %v4912_v7, %v4914_v45  ;;  %v4963_v35 = vld [vmem:[#allocation3 + $0x78] sm:$0xff]  ;;  %v4965_v6 = vld [vmem:[#allocation3 + $0x30] sm:$0xff] }
 0x559   : > { %vm1390_vm4 = vcmp.eq.f32.partialorder %v1389_v55, 8.507059e+37  ;;  %v1379_v47 = vmul.f32 %v1378_v20, %v4561_v44  ;;  %v3817_v44 = vld [vmem:[#allocation8 + $0x8] sm:$0xff]  ;;  %v1667_v63 = vpack.c.bf16 %v4945_v18, %v4947_v46  ;;  %v1668_v41 = vpack.c.bf16 %v4951_v25, %v4953_v29 }
 0x55a   : > { %v1607_v36 = vpack.c.bf16 %v1424_v38, %v1409_v62  ;;  %v1383_v51 = vmul.f32 %v3682_v49, %v1382_v39  ;;  %vm2001_vm5 = vcmask 1043456   ;;  %v1670_v31 = vpack.c.bf16 %v4965_v6, %v4963_v35 }
 0x55c   : > { %3496 = vmatpush.lsf.bf16.msrb.mxu1 %v1607_v36  ;;  %v1384_v52 = vadd.f32 %v3682_v49, %v1383_v51 }
 0x55e   : > { %v1388_v56 = vsel %vm1387_vm3, %v3682_v49, %v1384_v52  ;;  %v1669_v49 = vpack.c.bf16 %v4959_v5, %v4957_v10 }
 0x55f   : > { %v1393_v12 = vsel %vm1390_vm4, %v1392_v26, %v1388_v56 }
 0x560   : > { %v1394_v32 = vmul.f32 %v1393_v12, %v4619_v40  ;;  %v4897_v40 = vld [vmem:[#allocation3 + $0x18] sm:$0xff] }
 0x561   : > { %v1663_v33 = vpack.c.bf16 %v4897_v40, %v4899_v61 }
 0x562   : > { %v1606_v2 = vpack.c.bf16 %v1394_v32, %v1379_v47 }
 0x564   : > { %3497 = vmatpush.lsf.bf16.msrb.mxu1 %v1606_v2 }
 0x566   : > { %3498 = vllmr.2.mxu1 }
 0x587   : > { %3499 = vmatmul.lmr.bf16.vlgmr.msra.gmra.2.mxu1 }
 0x588   : > { %1671 = vmatpush.bf16.msra.mxu1 %v3811_v43 }
 0x58c   : > { %1672 = vmatpush.bf16.msra.mxu1 %v3812_v60 }
 0x58f   : > { %3500 = vmatmul.lmr.bf16.gmra.2.mxu1 }
 0x590   : > { %1673 = vmatpush.bf16.msra.mxu1 %v3813_v58 }
 0x594   : > { %1674 = vmatpush.bf16.msra.mxu1 %v3814_v59 }
 0x598   : > { %1675 = vmatpush.bf16.msra.mxu1 %v3815_v3 }
 0x59c   : > { %1676 = vmatpush.bf16.msra.mxu1 %v3816_v23 }
 0x5a0   : > { %1677 = vmatpush.bf16.msra.mxu1 %v3817_v44 }
 0x5a4   : > { %1678 = vmatpush.bf16.msra.mxu1 %v3818_v4 }
 0x5a7   : > { %1679 = vmatmul.bf16.vlgmr.msra.gmra.mxu1 %v1663_v33 }
 0x5a8   : > { %1744 = vmatpush.bf16.msra.mxu1 %v3819_v0 }
 0x5ac   : > { %1745 = vmatpush.bf16.msra.mxu1 %v3820_v30 }
 0x5b0   : > { %1746 = vmatpush.bf16.msra.mxu1 %v3821_v24 }
 0x5b4   : > { %1747 = vmatpush.bf16.msra.mxu1 %v3822_v53 }
 0x5b7   : > { %1684 = vmatmul.bf16.gmra.mxu1 %v1664_v11 }
 0x5b8   : > { %1748 = vmatpush.bf16.msra.mxu1 %v3823_v57 }
 0x5bc   : > { %1749 = vmatpush.bf16.msra.mxu1 %v3824_v13 }
 0x5c0   : > { %1750 = vmatpush.bf16.msra.mxu1 %v3825_v28 }
 0x5c4   : > { %1751 = vmatpush.bf16.msra.mxu1 %v3826_v21 }
 0x5c7   : > { %1689 = vmatmul.bf16.gmra.mxu1 %v1665_v22 }
 0x5d7   : > { %1694 = vmatmul.bf16.gmra.mxu1 %v1666_v54 }
 0x5e7   : > { %1699 = vmatmul.bf16.gmra.mxu1 %v1667_v63 }
 0x5f7   : > { %1704 = vmatmul.bf16.gmra.mxu1 %v1668_v41 }
 0x604   : > { %v1639_v34 = vpop.f32.mrf.mxu1 }
 0x605   : > { %v1646_v9 = vpack.c.bf16 %v1639_v34, %v1639_v34 }
 0x607   : > { %1709 = vmatmul.bf16.gmra.mxu1 %v1669_v49  ;;  %v2003_v16 = vsel %vm2001_vm5, %v1646_v9, 0 }
 0x608   : > { %3486 = vmatpush.bf16.msrb.mxu3 %v2003_v16 }
 0x60c   : > { %v1641_v27 = vpop.f32.mrf.mxu1 }
 0x617   : > { %1714 = vmatmul.bf16.gmra.mxu1 %v1670_v31 }
 0x624   : > { %v1680_v17 = vpop.f32.mrf.mxu1 }
 0x625   : > { %v1681_v38 = vadd.f32 %v1680_v17, %v4899_v61 }
 0x627   : > { %v1720_v62 = vmax.f32 %v1681_v38, 0.0 }
 0x62c   : > { %v1682_v1 = vpop.f32.mrf.mxu1 }
 0x62d   : > { %v1683_v39 = vadd.f32 %v1682_v1, %v4897_v40 }
 0x62f   : > { %v1721_v48 = vmax.f32 %v1683_v39, 0.0 }
 0x631   : > { %v1736_v50 = vpack.c.bf16 %v1721_v48, %v1720_v62 }
 0x633   : > { %1752 = vmatmul.bf16.vlgmr.msra.gmra.mxu1 %v1736_v50 }
 0x634   : > { %v1685_v14 = vpop.f32.mrf.mxu1  ;;  %2012 = vmatpush.bf16.msra.mxu1 %v2003_v16 }
 0x635   : > { %v1686_v36 = vadd.f32 %v1685_v14, %v4914_v45 }
 0x637   : > { %v1722_v8 = vmax.f32 %v1686_v36, 0.0 }
 0x63c   : > { %v1687_v51 = vpop.f32.mrf.mxu1 }
 0x63d   : > { %v1688_v55 = vadd.f32 %v1687_v51, %v4912_v7 }
 0x63f   : > { %v1723_v52 = vmax.f32 %v1688_v55, 0.0 }
 0x641   : > { %v1737_v20 = vpack.c.bf16 %v1723_v52, %v1722_v8 }
 0x643   : > { %1757 = vmatmul.bf16.vlgmr.msrb.gmra.mxu2 %v1737_v20 }
 0x644   : > { %v1690_v26 = vpop.f32.mrf.mxu1 }
 0x645   : > { %v1691_v56 = vadd.f32 %v1690_v26, %v4932_v19 }
 0x647   : > { %v1724_v32 = vmax.f32 %v1691_v56, 0.0 }
 0x64c   : > { %v1692_v12 = vpop.f32.mrf.mxu1 }
 0x64d   : > { %v1693_v47 = vadd.f32 %v1692_v12, %v4930_v15 }
 0x64f   : > { %v1725_v2 = vmax.f32 %v1693_v47, 0.0 }
 0x651   : > { %v1738_v43 = vpack.c.bf16 %v1725_v2, %v1724_v32 }
 0x653   : > { %1762 = vmatmul.bf16.gmra.mxu2 %v1738_v43 }
 0x654   : > { %v1695_v60 = vpop.f32.mrf.mxu1 }
 0x655   : > { %v1696_v58 = vadd.f32 %v1695_v60, %v4941_v37 }
 0x657   : > { %v1726_v23 = vmax.f32 %v1696_v58, 0.0 }
 0x65c   : > { %v1697_v59 = vpop.f32.mrf.mxu1 }
 0x65d   : > { %v1698_v3 = vadd.f32 %v1697_v59, %v4939_v42 }
 0x65f   : > { %v1727_v44 = vmax.f32 %v1698_v3, 0.0 }
 0x661   : > { %v1739_v4 = vpack.c.bf16 %v1727_v44, %v1726_v23 }
 0x663   : > { %1767 = vmatmul.bf16.gmra.mxu2 %v1739_v4 }
 0x664   : > { %v1700_v33 = vpop.f32.mrf.mxu1 }
 0x665   : > { %v1701_v0 = vadd.f32 %v1700_v33, %v4947_v46 }
 0x667   : > { %v1728_v53 = vmax.f32 %v1701_v0, 0.0 }
 0x66c   : > { %v1702_v30 = vpop.f32.mrf.mxu1 }
 0x66d   : > { %v1703_v24 = vadd.f32 %v1702_v30, %v4945_v18 }
 0x66f   : > { %v1729_v11 = vmax.f32 %v1703_v24, 0.0 }
 0x671   : > { %v1740_v57 = vpack.c.bf16 %v1729_v11, %v1728_v53 }
 0x673   : > { %1772 = vmatmul.bf16.gmra.mxu2 %v1740_v57 }
 0x674   : > { %v1705_v13 = vpop.f32.mrf.mxu1 }
 0x675   : > { %v1706_v28 = vadd.f32 %v1705_v13, %v4953_v29 }
 0x677   : > { %v1730_v54 = vmax.f32 %v1706_v28, 0.0 }
 0x67c   : > { %v1707_v21 = vpop.f32.mrf.mxu1 }
 0x67d   : > { %v1708_v22 = vadd.f32 %v1707_v21, %v4951_v25 }
 0x67f   : > { %v1731_v63 = vmax.f32 %v1708_v22, 0.0 }
 0x681   : > { %v1741_v41 = vpack.c.bf16 %v1731_v63, %v1730_v54 }
 0x683   : > { %1777 = vmatmul.bf16.gmra.mxu2 %v1741_v41 }
 0x684   : > { %v1710_v34 = vpop.f32.mrf.mxu1 }
 0x685   : > { %v1711_v49 = vadd.f32 %v1710_v34, %v4957_v10 }
 0x687   : > { %v1732_v27 = vmax.f32 %v1711_v49, 0.0 }
 0x68c   : > { %v1712_v9 = vpop.f32.mrf.mxu1 }
 0x68d   : > { %v1713_v16 = vadd.f32 %v1712_v9, %v4959_v5 }
 0x68f   : > { %v1733_v31 = vmax.f32 %v1713_v16, 0.0 }
 0x691   : > { %v1742_v17 = vpack.c.bf16 %v1733_v31, %v1732_v27 }
 0x693   : > { %1782 = vmatmul.bf16.gmra.mxu2 %v1742_v17 }
 0x694   : > { %v1715_v38 = vpop.f32.mrf.mxu1 }
 0x695   : > { %v1716_v1 = vadd.f32 %v1715_v38, %v4963_v35 }
 0x697   : > { %v1734_v48 = vmax.f32 %v1716_v1, 0.0 }
 0x69c   : > { %v1717_v39 = vpop.f32.mrf.mxu1 }
 0x69d   : > { %v1718_v62 = vadd.f32 %v1717_v39, %v4965_v6 }
 0x69f   : > { %v1735_v50 = vmax.f32 %v1718_v62, 0.0 }
 0x6a1   : > { %v1743_v14 = vpack.c.bf16 %v1735_v50, %v1734_v48 }
 0x6a3   : > { %1787 = vmatmul.bf16.gmra.mxu2 %v1743_v14 }
 0x6c6   : > { %v1758_v36 = vpop.f32.mrf.mxu2 }
 0x6c7   : > { %v1799_v51 = vsel %vm1092_vm0, %v1758_v36, -inf }
 0x6c8   : > { %1800 = vmax.xlane.f32.xlu0 %v1799_v51 }
 0x6ce   : > { %v1760_v55 = vpop.f32.mrf.mxu2 }
 0x6cf   : > { %v1802_v8 = vsel %vm1092_vm0, %v1760_v55, -inf }
 0x6d0   : > { %1803 = vmax.xlane.f32.xlu1 %v1802_v8 }
 0x6d6   : > { %v1763_v52 = vpop.f32.mrf.mxu2 }
 0x6d7   : > { %v1805_v20 = vsel %vm1092_vm0, %v1763_v52, -inf }
 0x6d8   : > { %1806 = vmax.xlane.f32.xlu2 %v1805_v20 }
 0x6de   : > { %v1765_v26 = vpop.f32.mrf.mxu2 }
 0x6df   : > { %v1808_v56 = vsel %vm1092_vm0, %v1765_v26, -inf }
 0x6e0   : > { %1809 = vmax.xlane.f32.xlu0 %v1808_v56 }
 0x6e6   : > { %v1768_v12 = vpop.f32.mrf.mxu2 }
 0x6e7   : > { %v1811_v47 = vsel %vm1092_vm0, %v1768_v12, -inf }
 0x6e8   : > { %1812 = vmax.xlane.f32.xlu1 %v1811_v47 }
 0x6ee   : > { %v1770_v32 = vpop.f32.mrf.mxu2 }
 0x6ef   : > { %v1814_v2 = vsel %vm1092_vm0, %v1770_v32, -inf }
 0x6f0   : > { %1815 = vmax.xlane.f32.xlu2 %v1814_v2 }
 0x6f6   : > { %v4991_v43 = vpop.f32.mrf.mxu2 }
 0x6f7   : > { %v1817_v60 = vsel %vm1092_vm0, %v4991_v43, -inf }
 0x6f8   : > { %1818 = vmax.xlane.f32.xlu0 %v1817_v60 }
 0x6fe   : > { %v4995_v58 = vpop.f32.mrf.mxu2 }
 0x6ff   : > { %v1820_v59 = vsel %vm1092_vm0, %v4995_v58, -inf }
 0x700   : > { %1821 = vmax.xlane.f32.xlu1 %v1820_v59  ;;  %v5048_v59 = vpop.f32.mrf.mxu1 }
 0x706   : > { %v4999_v3 = vpop.f32.mrf.mxu2 }
 0x707   : > { %v1823_v23 = vsel %vm1092_vm0, %v4999_v3, -inf }
 0x708   : > { %1824 = vmax.xlane.f32.xlu1 %v1823_v23 }
 0x70e   : > { %v5003_v30 = vpop.f32.mrf.mxu2 }
 0x70f   : > { %v1826_v41 = vsel %vm1092_vm0, %v5003_v30, -inf }
 0x716   : > { %v5011_v22 = vpop.f32.mrf.mxu2 }
 0x717   : > { %v1829_v31 = vsel %vm1092_vm0, %v5011_v22, -inf }
 0x71e   : > { %v5023_v17 = vpop.f32.mrf.mxu2 }
 0x71f   : > { %v1832_v50 = vsel %vm1092_vm0, %v5023_v17, -inf }
 0x726   : > { %v5031_v14 = vpop.f32.mrf.mxu2 }
 0x727   : > { %v1835_v20 = vsel %vm1092_vm0, %v5031_v14, -inf }
 0x72e   : > { %v5039_v56 = vpop.f32.mrf.mxu2 }
 0x72f   : > { %v1838_v60 = vsel %vm1092_vm0, %v5039_v56, -inf }
 0x73b   : > { %v1801_v44 = vpop.xlane.xlu0 %1800 }
 0x73c   : > { %v1843_v4 = vsub.f32 %v1758_v36, %v1801_v44 }
 0x73e   : > { %v1861_v33 = vmul.f32 1.442695, %v1843_v4 }
 0x740   : > { %3683 = vpow2.f32 %v1861_v33 }
 0x743   : > { %v1804_v0 = vpop.xlane.xlu1 %1803 }
 0x744   : > { %v1844_v24 = vsub.f32 %v1760_v55, %v1804_v0  ;;  %v1793_v0 = vsel %vm1092_vm0, %v5048_v59, -inf }
 0x746   : > { %v5005_v53 = vpop.eup %3683  ;;  %v1863_v11 = vmul.f32 1.442695, %v1844_v24 }
 0x747   : > { %v1895_v57 = vsel %vm1092_vm0, %v5005_v53, 0.0 }
 0x748   : > { %3685 = vpow2.f32 %v1863_v11  ;;  %1896 = vadd.xlane.f32.xlu2 %v1895_v57  ;;  %v5057_v11 = vpop.f32.mrf.mxu1 }
 0x74b   : > { %v1807_v13 = vpop.xlane.xlu2 %1806 }
 0x74c   : > { %v1845_v28 = vsub.f32 %v1763_v52, %v1807_v13 }
 0x74e   : > { %v5009_v21 = vpop.eup %3685  ;;  %v1865_v54 = vmul.f32 1.442695, %v1845_v28 }
 0x74f   : > { %v1898_v63 = vsel %vm1092_vm0, %v5009_v21, 0.0 }
 0x750   : > { %3687 = vpow2.f32 %v1865_v54  ;;  %1899 = vadd.xlane.f32.xlu0 %v1898_v63  ;;  %1827 = vmax.xlane.f32.xlu2 %v1826_v41  ;;  %v1796_v54 = vsel %vm1092_vm0, %v5057_v11, -inf }
 0x753   : > { %v1810_v34 = vpop.xlane.xlu0 %1809 }
 0x754   : > { %v1846_v49 = vsub.f32 %v1765_v26, %v1810_v34 }
 0x756   : > { %v5017_v9 = vpop.eup %3687  ;;  %v1867_v16 = vmul.f32 1.442695, %v1846_v49 }
 0x757   : > { %v1901_v27 = vsel %vm1092_vm0, %v5017_v9, 0.0 }
 0x758   : > { %3689 = vpow2.f32 %v1867_v16  ;;  %1902 = vadd.xlane.f32.xlu0 %v1901_v27  ;;  %1830 = vmax.xlane.f32.xlu2 %v1829_v31 }
 0x75b   : > { %v1813_v38 = vpop.xlane.xlu1 %1812 }
 0x75c   : > { %v1847_v1 = vsub.f32 %v1768_v12, %v1813_v38 }
 0x75e   : > { %v5025_v39 = vpop.eup %3689  ;;  %v1869_v62 = vmul.f32 1.442695, %v1847_v1 }
 0x75f   : > { %v1904_v48 = vsel %vm1092_vm0, %v5025_v39, 0.0 }
 0x760   : > { %3691 = vpow2.f32 %v1869_v62  ;;  %1905 = vadd.xlane.f32.xlu1 %v1904_v48  ;;  %1833 = vmax.xlane.f32.xlu0 %v1832_v50 }
 0x763   : > { %v1816_v36 = vpop.xlane.xlu2 %1815 }
 0x764   : > { %v1848_v51 = vsub.f32 %v1770_v32, %v1816_v36 }
 0x766   : > { %v5033_v55 = vpop.eup %3691  ;;  %v1871_v8 = vmul.f32 1.442695, %v1848_v51 }
 0x767   : > { %v1907_v52 = vsel %vm1092_vm0, %v5033_v55, 0.0 }
 0x768   : > { %3693 = vpow2.f32 %v1871_v8  ;;  %1908 = vadd.xlane.f32.xlu1 %v1907_v52  ;;  %1836 = vmax.xlane.f32.xlu0 %v1835_v20 }
 0x76b   : > { %v1819_v26 = vpop.xlane.xlu0 %1818 }
 0x76c   : > { %v1849_v12 = vsub.f32 %v4991_v43, %v1819_v26 }
 0x76e   : > { %v5042_v47 = vpop.eup %3693  ;;  %v1873_v32 = vmul.f32 1.442695, %v1849_v12 }
 0x76f   : > { %v1910_v2 = vsel %vm1092_vm0, %v5042_v47, 0.0 }
 0x770   : > { %3695 = vpow2.f32 %v1873_v32  ;;  %1911 = vadd.xlane.f32.xlu2 %v1910_v2  ;;  %1839 = vmax.xlane.f32.xlu1 %v1838_v60 }
 0x773   : > { %v1822_v23 = vpop.xlane.xlu1 %1821 }
 0x774   : > { %v1850_v44 = vsub.f32 %v4995_v58, %v1822_v23 }
 0x776   : > { %v5051_v4 = vpop.eup %3695  ;;  %v1875_v43 = vmul.f32 1.442695, %v1850_v44 }
 0x777   : > { %v1913_v33 = vsel %vm1092_vm0, %v5051_v4, 0.0 }
 0x778   : > { %3697 = vpow2.f32 %v1875_v43  ;;  %1914 = vadd.xlane.f32.xlu2 %v1913_v33  ;;  %1794 = vmax.xlane.f32.xlu1 %v1793_v0 }
 0x77b   : > { %v1825_v24 = vpop.xlane.xlu1 %1824 }
 0x77c   : > { %v1851_v57 = vsub.f32 %v4999_v3, %v1825_v24 }
 0x77e   : > { %v5060_v13 = vpop.eup %3697  ;;  %v1877_v58 = vmul.f32 1.442695, %v1851_v57 }
 0x77f   : > { %v1916_v28 = vsel %vm1092_vm0, %v5060_v13, 0.0 }
 0x780   : > { %3699 = vpow2.f32 %v1877_v58  ;;  %1917 = vadd.xlane.f32.xlu0 %v1916_v28  ;;  %1797 = vmax.xlane.f32.xlu2 %v1796_v54 }
 0x786   : > { %v5066_v63 = vpop.eup %3699 }
 0x787   : > { %v1919_v41 = vsel %vm1092_vm0, %v5066_v63, 0.0 }
 0x788   : > { %1920 = vadd.xlane.f32.xlu0 %v1919_v41 }
 0x7bb   : > { %v1897_v34 = vpop.xlane.xlu2 %1896 }
 0x7bc   : > { %3701 = vrcp.f32 %v1897_v34 }
 0x7c2   : > { %v3702_v31 = vpop.eup %3701 }
 0x7c3   : > { %v1900_v3 = vpop.xlane.xlu0 %1899  ;;  %v1828_v49 = vpop.xlane.xlu2 %1827  ;;  %v1955_v1 = vmul.f32 %v3702_v31, %v5005_v53 }
 0x7c4   : > { %3703 = vrcp.f32 %v1900_v3  ;;  %v1852_v16 = vsub.f32 %v5003_v30, %v1828_v49 }
 0x7c6   : > { %v1879_v27 = vmul.f32 1.442695, %v1852_v16 }
 0x7c8   : > { %3705 = vpow2.f32 %v1879_v27 }
 0x7ca   : > { %v3704_v38 = vpop.eup %3703 }
 0x7cb   : > { %v1956_v62 = vmul.f32 %v3704_v38, %v5009_v21  ;;  %v1903_v48 = vpop.xlane.xlu0 %1902  ;;  %v1831_v50 = vpop.xlane.xlu2 %1830 }
 0x7cc   : > { %v1853_v36 = vsub.f32 %v5011_v22, %v1831_v50 }
 0x7cd   : > { %v1970_v51 = vpack.c.bf16 %v1956_v62, %v1955_v1 }
 0x7ce   : > { %v5074_v8 = vpop.eup %3705  ;;  %v1881_v52 = vmul.f32 1.442695, %v1853_v36 }
 0x7cf   : > { %3319 = vmatmul.msk.bf16.vlgmr.msrb.gmra.mxu3 %vm1092_vm0, %v1970_v51  ;;  %v1922_v30 = vsel %vm1092_vm0, %v5074_v8, 0.0 }
 0x7d0   : > { %3707 = vpow2.f32 %v1881_v52  ;;  %1923 = vadd.xlane.f32.xlu1 %v1922_v30 }
 0x7d1   : > { %3709 = vrcp.f32 %v1903_v48 }
 0x7d3   : > { %v1906_v20 = vpop.xlane.xlu1 %1905  ;;  %v1834_v53 = vpop.xlane.xlu0 %1833 }
 0x7d4   : > { %3711 = vrcp.f32 %v1906_v20  ;;  %v1854_v21 = vsub.f32 %v5023_v17, %v1834_v53 }
 0x7d6   : > { %v5080_v26 = vpop.eup %3707  ;;  %v1883_v22 = vmul.f32 1.442695, %v1854_v21 }
 0x7d7   : > { %v1925_v12 = vsel %vm1092_vm0, %v5080_v26, 0.0  ;;  %v3710_v32 = vpop.eup %3709 }
 0x7d8   : > { %3713 = vpow2.f32 %v1883_v22  ;;  %1926 = vadd.xlane.f32.xlu2 %v1925_v12  ;;  %v1957_v44 = vmul.f32 %v3710_v32, %v5017_v9 }
 0x7da   : > { %v3712_v2 = vpop.eup %3711 }
 0x7db   : > { %v1909_v60 = vpop.xlane.xlu1 %1908  ;;  %v1837_v23 = vpop.xlane.xlu0 %1836  ;;  %v1958_v43 = vmul.f32 %v3712_v2, %v5025_v39 }
 0x7dc   : > { %v1855_v33 = vsub.f32 %v5031_v14, %v1837_v23 }
 0x7dd   : > { %v1971_v0 = vpack.c.bf16 %v1958_v43, %v1957_v44 }
 0x7de   : > { %v5087_v17 = vpop.eup %3713  ;;  %v1885_v24 = vmul.f32 1.442695, %v1855_v33 }
 0x7df   : > { %3320 = vmatmul.msk.bf16.gmra.mxu3 %vm1092_vm0, %v1971_v0  ;;  %v1928_v57 = vsel %vm1092_vm0, %v5087_v17, 0.0 }
 0x7e0   : > { %3715 = vpow2.f32 %v1885_v24  ;;  %1929 = vadd.xlane.f32.xlu0 %v1928_v57 }
 0x7e1   : > { %3717 = vrcp.f32 %v1909_v60 }
 0x7e3   : > { %v1912_v58 = vpop.xlane.xlu2 %1911  ;;  %v1840_v28 = vpop.xlane.xlu1 %1839 }
 0x7e4   : > { %3719 = vrcp.f32 %v1912_v58  ;;  %v1856_v9 = vsub.f32 %v5039_v56, %v1840_v28 }
 0x7e6   : > { %v5093_v39 = vpop.eup %3715  ;;  %v1887_v14 = vmul.f32 1.442695, %v1856_v9 }
 0x7e7   : > { %v1931_v54 = vsel %vm1092_vm0, %v5093_v39, 0.0  ;;  %v3718_v41 = vpop.eup %3717 }
 0x7e8   : > { %3721 = vpow2.f32 %v1887_v14  ;;  %1932 = vadd.xlane.f32.xlu1 %v1931_v54  ;;  %v1959_v16 = vmul.f32 %v3718_v41, %v5033_v55 }
 0x7ea   : > { %v3720_v34 = vpop.eup %3719 }
 0x7eb   : > { %v1915_v3 = vpop.xlane.xlu2 %1914  ;;  %v1795_v49 = vpop.xlane.xlu1 %1794  ;;  %v1960_v27 = vmul.f32 %v3720_v34, %v5042_v47 }
 0x7ec   : > { %v1841_v31 = vsub.f32 %v5048_v59, %v1795_v49 }
 0x7ed   : > { %v1972_v38 = vpack.c.bf16 %v1960_v27, %v1959_v16 }
 0x7ee   : > { %v3722_v56 = vpop.eup %3721  ;;  %v1857_v1 = vmul.f32 1.442695, %v1841_v31 }
 0x7ef   : > { %3321 = vmatmul.msk.bf16.gmra.mxu3 %vm1092_vm0, %v1972_v38  ;;  %v1934_v62 = vsel %vm1092_vm0, %v3722_v56, 0.0 }
 0x7f0   : > { %3723 = vpow2.f32 %v1857_v1  ;;  %1935 = vadd.xlane.f32.xlu2 %v1934_v62 }
 0x7f1   : > { %3725 = vrcp.f32 %v1915_v3 }
 0x7f3   : > { %v1918_v48 = vpop.xlane.xlu0 %1917  ;;  %v1798_v50 = vpop.xlane.xlu2 %1797 }
 0x7f4   : > { %3727 = vrcp.f32 %v1918_v48  ;;  %v1842_v36 = vsub.f32 %v5057_v11, %v1798_v50 }
 0x7f6   : > { %v5103_v55 = vpop.eup %3723  ;;  %v1859_v47 = vmul.f32 1.442695, %v1842_v36 }
 0x7f7   : > { %v1889_v59 = vsel %vm1092_vm0, %v5103_v55, 0.0  ;;  %v3726_v51 = vpop.eup %3725 }
 0x7f8   : > { %3729 = vpow2.f32 %v1859_v47  ;;  %1890 = vadd.xlane.f32.xlu0 %v1889_v59  ;;  %v1961_v30 = vmul.f32 %v3726_v51, %v5051_v4 }
 0x7fa   : > { %v3728_v52 = vpop.eup %3727 }
 0x7fb   : > { %v1962_v20 = vmul.f32 %v3728_v52, %v5060_v13  ;;  %v1921_v22 = vpop.xlane.xlu0 %1920 }
 0x7fc   : > { %3731 = vrcp.f32 %v1921_v22 }
 0x7fd   : > { %v1973_v53 = vpack.c.bf16 %v1962_v20, %v1961_v30 }
 0x7fe   : > { %v3730_v21 = vpop.eup %3729 }
 0x7ff   : > { %3322 = vmatmul.msk.bf16.gmra.mxu3 %vm1092_vm0, %v1973_v53  ;;  %v1892_v11 = vsel %vm1092_vm0, %v3730_v21, 0.0 }
 0x800   : > { %1893 = vadd.xlane.f32.xlu1 %v1892_v11 }
 0x802   : > { %v3732_v32 = vpop.eup %3731 }
 0x803   : > { %v1963_v60 = vmul.f32 %v3732_v32, %v5066_v63 }
 0x843   : > { %v1924_v12 = vpop.xlane.xlu1 %1923 }
 0x844   : > { %3733 = vrcp.f32 %v1924_v12 }
 0x84a   : > { %v3734_v2 = vpop.eup %3733 }
 0x84b   : > { %v1964_v23 = vmul.f32 %v3734_v2, %v5074_v8  ;;  %v1927_v44 = vpop.xlane.xlu2 %1926 }
 0x84c   : > { %3735 = vrcp.f32 %v1927_v44 }
 0x84d   : > { %v1974_v4 = vpack.c.bf16 %v1964_v23, %v1963_v60 }
 0x84f   : > { %3323 = vmatmul.msk.bf16.gmra.mxu3 %vm1092_vm0, %v1974_v4 }
 0x852   : > { %v5114_v13 = vpop.f32.mrf.mxu3  ;;  %v3736_v33 = vpop.eup %3735 }
 0x853   : > { %v1930_v43 = vpop.xlane.xlu0 %1929  ;;  %v1965_v57 = vmul.f32 %v3736_v33, %v5080_v26  ;;  %v5121_v63 = vadd.f32 %v5114_v13, %v4914_v45 }
 0x854   : > { %3737 = vrcp.f32 %v1930_v43  ;;  %v2408_v43 = vmul.f32 %v5114_v13, %v5114_v13 }
 0x85a   : > { %v3738_v0 = vpop.eup %3737  ;;  %v5116_v24 = vpop.f32.mrf.mxu3 }
 0x85b   : > { %v1966_v8 = vmul.f32 %v3738_v0, %v5087_v17  ;;  %v5126_v58 = vadd.f32 %v5116_v24, %v4912_v7  ;;  %v1933_v14 = vpop.xlane.xlu1 %1932 }
 0x85c   : > { %3739 = vrcp.f32 %v1933_v14 }
 0x85d   : > { %v3424_v28 = vpack.c.bf16 %v5126_v58, %v5121_v63  ;;  %v1975_v9 = vpack.c.bf16 %v1966_v8, %v1965_v57  ;;  %v2121_v0 = vmul.f32 %v5126_v58, %v5126_v58  ;;  %v2409_v57 = vmul.f32 %v5116_v24, %v5116_v24 }
 0x85f   : > { %3463 = vst [vmem:[#allocation2] sm:$0xff] %v3424_v28   ;;  %3324 = vmatmul.msk.bf16.gmra.mxu3 %vm1092_vm0, %v1975_v9 }
 0x862   : > { %v5131_v26 = vpop.f32.mrf.mxu3  ;;  %v3740_v45 = vpop.eup %3739 }
 0x863   : > { %v1936_v54 = vpop.xlane.xlu2 %1935  ;;  %v1967_v7 = vmul.f32 %v3740_v45, %v5093_v39  ;;  %v5138_v34 = vadd.f32 %v5131_v26, %v4932_v19  ;;  %v2410_v8 = vmul.f32 %v5131_v26, %v5131_v26 }
 0x864   : > { %3741 = vrcp.f32 %v1936_v54 }
 0x865   : > { %v2122_v9 = vmul.f32 %v5138_v34, %v5138_v34 }
 0x86a   : > { %v3742_v41 = vpop.eup %3741  ;;  %v5133_v17 = vpop.f32.mrf.mxu3 }
 0x86b   : > { %v1968_v3 = vmul.f32 %v3742_v41, %v3722_v56  ;;  %v5142_v49 = vadd.f32 %v5133_v17, %v4930_v15  ;;  %v1891_v31 = vpop.xlane.xlu0 %1890  ;;  %v2411_v28 = vmul.f32 %v5133_v17, %v5133_v17 }
 0x86c   : > { %3743 = vrcp.f32 %v1891_v31 }
 0x86d   : > { %v3429_v16 = vpack.c.bf16 %v5142_v49, %v5138_v34  ;;  %v1976_v27 = vpack.c.bf16 %v1968_v3, %v1967_v7  ;;  %v2123_v14 = vmul.f32 %v5142_v49, %v5142_v49 }
 0x86f   : > { %3464 = vst [vmem:[#allocation2 + $0x18] sm:$0xff] %v3429_v16   ;;  %3325 = vmatmul.msk.bf16.gmra.mxu3 %vm1092_vm0, %v1976_v27 }
 0x872   : > { %v5147_v38 = vpop.f32.mrf.mxu3  ;;  %v3744_v19 = vpop.eup %3743 }
 0x873   : > { %v1894_v39 = vpop.xlane.xlu1 %1893  ;;  %v1953_v15 = vmul.f32 %v3744_v19, %v5103_v55  ;;  %v5154_v62 = vadd.f32 %v5147_v38, %v4941_v37  ;;  %v2412_v45 = vmul.f32 %v5147_v38, %v5147_v38 }
 0x874   : > { %3745 = vrcp.f32 %v1894_v39 }
 0x875   : > { %v2124_v54 = vmul.f32 %v5154_v62, %v5154_v62 }
 0x87a   : > { %v3746_v1 = vpop.eup %3745  ;;  %v5149_v56 = vpop.f32.mrf.mxu3 }
 0x87b   : > { %v1954_v48 = vmul.f32 %v3746_v1, %v3730_v21  ;;  %v5158_v50 = vadd.f32 %v5149_v56, %v4939_v42  ;;  %v2413_v41 = vmul.f32 %v5149_v56, %v5149_v56 }
 0x87d   : > { %v1969_v36 = vpack.c.bf16 %v1954_v48, %v1953_v15  ;;  %v3434_v47 = vpack.c.bf16 %v5158_v50, %v5154_v62  ;;  %v2125_v3 = vmul.f32 %v5158_v50, %v5158_v50 }
 0x87f   : > { %3465 = vst [vmem:[#allocation2 + $0x10] sm:$0xff] %v3434_v47   ;;  %3318 = vmatmul.msk.bf16.vlgmr.msra.gmra.mxu1 %vm1092_vm0, %v1969_v36 }
 0x882   : > { %v5163_v59 = vpop.f32.mrf.mxu3 }
 0x883   : > { %v5169_v37 = vadd.f32 %v5163_v59, %v4947_v46  ;;  %v2414_v7 = vmul.f32 %v5163_v59, %v5163_v59 }
 0x885   : > { %v2126_v16 = vmul.f32 %v5169_v37, %v5169_v37 }
 0x88a   : > { %v5165_v51 = vpop.f32.mrf.mxu3 }
 0x88b   : > { %v5173_v55 = vadd.f32 %v5165_v51, %v4945_v18  ;;  %v2415_v31 = vmul.f32 %v5165_v51, %v5165_v51 }
 0x88d   : > { %v3439_v42 = vpack.c.bf16 %v5173_v55, %v5169_v37  ;;  %v2127_v27 = vmul.f32 %v5173_v55, %v5173_v55 }
 0x88f   : > { %3466 = vst [vmem:[#allocation2 + $0x8] sm:$0xff] %v3439_v42  }
 0x8d2   : > { %v5177_v52 = vpop.f32.mrf.mxu3 }
 0x8d3   : > { %v5183_v20 = vadd.f32 %v5177_v52, %v4953_v29  ;;  %v2416_v39 = vmul.f32 %v5177_v52, %v5177_v52 }
 0x8d5   : > { %v2128_v1 = vmul.f32 %v5183_v20, %v5183_v20 }
 0x8da   : > { %v5179_v30 = vpop.f32.mrf.mxu3 }
 0x8db   : > { %v5187_v46 = vadd.f32 %v5179_v30, %v4951_v25  ;;  %v2417_v19 = vmul.f32 %v5179_v30, %v5179_v30 }
 0x8dd   : > { %v3444_v18 = vpack.c.bf16 %v5187_v46, %v5183_v20  ;;  %v2129_v15 = vmul.f32 %v5187_v46, %v5187_v46 }
 0x8df   : > { %3467 = vst [vmem:[#allocation2 + $0x20] sm:$0xff] %v3444_v18  }
 0x8e2   : > { %v5191_v53 = vpop.f32.mrf.mxu3 }
 0x8e3   : > { %v5197_v11 = vadd.f32 %v5191_v53, %v4957_v10  ;;  %v2418_v48 = vmul.f32 %v5191_v53, %v5191_v53 }
 0x8e5   : > { %v2130_v36 = vmul.f32 %v5197_v11, %v5197_v11 }
 0x8ea   : > { %v5193_v21 = vpop.f32.mrf.mxu3 }
 0x8eb   : > { %v5201_v29 = vadd.f32 %v5193_v21, %v4959_v5 }
 0x8ed   : > { %v3449_v25 = vpack.c.bf16 %v5201_v29, %v5197_v11  ;;  %v2131_v42 = vmul.f32 %v5201_v29, %v5201_v29 }
 0x8ef   : > { %3468 = vst [vmem:[#allocation2 + $0x28] sm:$0xff] %v3449_v25   ;;  %v2419_v25 = vmul.f32 %v5193_v21, %v5193_v21 }
 0x8f2   : > { %v5205_v22 = vpop.f32.mrf.mxu3 }
 0x8f3   : > { %v5211_v32 = vadd.f32 %v5205_v22, %v4963_v35 }
 0x8f5   : > { %v2132_v47 = vmul.f32 %v5211_v32, %v5211_v32 }
 0x8fa   : > { %v5207_v12 = vpop.f32.mrf.mxu3 }
 0x8fb   : > { %v5215_v10 = vadd.f32 %v5207_v12, %v4965_v6 }
 0x8fc   : > { %v5217_v2 = vpop.f32.mrf.mxu1 }
 0x8fd   : > { %v3454_v5 = vpack.c.bf16 %v5215_v10, %v5211_v32  ;;  %v5223_v60 = vadd.f32 %v5217_v2, %v4899_v61  ;;  %v2406_v23 = vmul.f32 %v5217_v2, %v5217_v2  ;;  %v2133_v18 = vmul.f32 %v5215_v10, %v5215_v10 }
 0x8ff   : > { %3469 = vst [vmem:[#allocation2 + $0x38] sm:$0xff] %v3454_v5   ;;  %2422 = vadd.xlane.f32.xlu0 %v2406_v23  ;;  %v2118_v35 = vmul.f32 %v5223_v60, %v5223_v60  ;;  %v2421_v5 = vmul.f32 %v5207_v12, %v5207_v12  ;;  %v2420_v23 = vmul.f32 %v5205_v22, %v5205_v22 }
 0x901   : > { %2134 = vadd.xlane.f32.xlu2 %v2118_v35 }
 0x904   : > { %v5229_v6 = vpop.f32.mrf.mxu1 }
 0x905   : > { %v5233_v4 = vadd.f32 %v5229_v6, %v4897_v40  ;;  %v2407_v44 = vmul.f32 %v5229_v6, %v5229_v6  ;;  %v2120_v40 = vmul.f32 %v5121_v63, %v5121_v63 }
 0x907   : > { %v3419_v61 = vpack.c.bf16 %v5233_v4, %v5223_v60  ;;  %2424 = vadd.xlane.f32.xlu1 %v2407_v44  ;;  %v2119_v33 = vmul.f32 %v5233_v4, %v5233_v4 }
 0x909   : > { %3420 = vst [vmem:[#allocation2 + $0x30] sm:$0xff] %v3419_v61   ;;  %2426 = vadd.xlane.f32.xlu2 %v2408_v43  ;;  %2136 = vadd.xlane.f32.xlu0 %v2119_v33 }
 0x90f   : > { %2138 = vadd.xlane.f32.xlu1 %v2120_v40 }
 0x911   : > { %2140 = vadd.xlane.f32.xlu2 %v2121_v0  ;;  %2428 = vadd.xlane.f32.xlu0 %v2409_v57 }
 0x917   : > { %2430 = vadd.xlane.f32.xlu1 %v2410_v8 }
 0x919   : > { %2432 = vadd.xlane.f32.xlu2 %v2411_v28  ;;  %2142 = vadd.xlane.f32.xlu0 %v2122_v9 }
 0x91f   : > { %2144 = vadd.xlane.f32.xlu1 %v2123_v14 }
 0x921   : > { %2146 = vadd.xlane.f32.xlu2 %v2124_v54  ;;  %2434 = vadd.xlane.f32.xlu0 %v2412_v45 }
 0x927   : > { %2436 = vadd.xlane.f32.xlu1 %v2413_v41 }
 0x929   : > { %2438 = vadd.xlane.f32.xlu2 %v2414_v7  ;;  %2148 = vadd.xlane.f32.xlu0 %v2125_v3 }
 0x92f   : > { %2150 = vadd.xlane.f32.xlu1 %v2126_v16 }
 0x931   : > { %2152 = vadd.xlane.f32.xlu2 %v2127_v27  ;;  %2440 = vadd.xlane.f32.xlu0 %v2415_v31 }
 0x937   : > { %2442 = vadd.xlane.f32.xlu1 %v2416_v39 }
 0x939   : > { %2444 = vadd.xlane.f32.xlu2 %v2417_v19  ;;  %2154 = vadd.xlane.f32.xlu0 %v2128_v1 }
 0x93f   : > { %2156 = vadd.xlane.f32.xlu1 %v2129_v15 }
 0x941   : > { %2446 = vadd.xlane.f32.xlu0 %v2418_v48  ;;  %2158 = vadd.xlane.f32.xlu2 %v2130_v36 }
 0x947   : > { %2162 = vadd.xlane.f32.xlu1 %v2132_v47 }
 0x949   : > { %2160 = vadd.xlane.f32.xlu0 %v2131_v42  ;;  %2164 = vadd.xlane.f32.xlu2 %v2133_v18 }
 0x94f   : > { %2448 = vadd.xlane.f32.xlu1 %v2419_v25 }
 0x951   : > { %2452 = vadd.xlane.f32.xlu0 %v2421_v5  ;;  %2450 = vadd.xlane.f32.xlu2 %v2420_v23  ;;  %v2390_v23 = vld [vmem:[#allocation11] sm:$0xff] }
 0x972   : > { %v2423_v35 = vpop.xlane.xlu0 %2422 }
 0x973   : > { %v2454_v44 = vmax.f32 %v2423_v35, 1e-24 }
 0x974   : > { %v2135_v61 = vpop.xlane.xlu2 %2134 }
 0x975   : > { %3747 = vrsqrt.f32 %v2454_v44  ;;  %v2166_v43 = vmax.f32 %v2135_v61, 1e-24  ;;  %vm2476_vm6 = vweird.f32 %v2454_v44 }
 0x977   : > { %3749 = vrsqrt.f32 %v2166_v43  ;;  %vm2188_vm9 = vweird.f32 %v2166_v43 }
 0x97a   : > { %v2425_v33 = vpop.xlane.xlu1 %2424 }
 0x97b   : > { %v3748_v40 = vpop.eup %3747  ;;  %v5298_v0 = vmax.f32 %v2425_v33, 1e-24 }
 0x97c   : > { %v2471_v57 = vmul.f32 %v3748_v40, %v2454_v44  ;;  %v2137_v8 = vpop.xlane.xlu0 %2136  ;;  %v2427_v28 = vpop.xlane.xlu2 %2426  ;;  %vm2477_vm0 = vweird.f32 %v3748_v40 }
 0x97d   : > { %v3750_v9 = vpop.eup %3749  ;;  %3751 = vrsqrt.f32 %v5298_v0  ;;  %v5301_v14 = vmax.f32 %v2137_v8, 1e-24  ;;  %v5303_v54 = vmax.f32 %v2427_v28, 1e-24  ;;  %vm2478_vm8 = vmor %vm2476_vm6, %vm2477_vm0  ;;  %vm2486_vm11 = vweird.f32 %v5298_v0  ;;  %v2102_v8 = vld [vmem:[#allocation10] sm:$0xff] }
 0x97e   : > { %v2472_v45 = vmul.f32 %v3748_v40, %v2471_v57  ;;  %v2183_v41 = vmul.f32 %v3750_v9, %v2166_v43  ;;  %vm2189_vm7 = vweird.f32 %v3750_v9 }
 0x97f   : > { %3753 = vrsqrt.f32 %v5301_v14  ;;  %vm2190_vm10 = vmor %vm2188_vm9, %vm2189_vm7  ;;  %vm2198_vm12 = vweird.f32 %v5301_v14  ;;  %vm2496_vm14 = vweird.f32 %v5303_v54 }
 0x980   : > { %v2473_v7 = vmul.f32 0.5, %v2472_v45  ;;  %v2184_v3 = vmul.f32 %v3750_v9, %v2183_v41  ;;  %3755 = vrsqrt.f32 %v5303_v54 }
 0x982   : > { %v2474_v16 = vsub.f32 1.5, %v2473_v7  ;;  %v2185_v27 = vmul.f32 0.5, %v2184_v3  ;;  %v2139_v31 = vpop.xlane.xlu1 %2138 }
 0x983   : > { %v5307_v39 = vpop.eup %3751  ;;  %v5309_v19 = vmax.f32 %v2139_v31, 1e-24 }
 0x984   : > { %v2475_v1 = vmul.f32 %v3748_v40, %v2474_v16  ;;  %v2186_v15 = vsub.f32 1.5, %v2185_v27  ;;  %v2481_v48 = vmul.f32 %v5307_v39, %v5298_v0  ;;  %v2429_v36 = vpop.xlane.xlu0 %2428  ;;  %v2141_v47 = vpop.xlane.xlu2 %2140  ;;  %vm2487_vm13 = vweird.f32 %v5307_v39 }
 0x985   : > { %v5313_v42 = vpop.eup %3753  ;;  %3757 = vrsqrt.f32 %v5309_v19  ;;  %v5316_v18 = vmax.f32 %v2429_v36, 1e-24  ;;  %v5318_v25 = vmax.f32 %v2141_v47, 1e-24  ;;  %vm2488_vm1 = vmor %vm2486_vm11, %vm2487_vm13  ;;  %vm2208_vm3 = vweird.f32 %v5309_v19 }
 0x986   : > { %v5320_v5 = vpop.eup %3755  ;;  %v2479_v35 = vsel %vm2478_vm8, %v3748_v40, %v2475_v1  ;;  %v2187_v44 = vmul.f32 %v3750_v9, %v2186_v15  ;;  %v2482_v61 = vmul.f32 %v5307_v39, %v2481_v48  ;;  %v2193_v33 = vmul.f32 %v5313_v42, %v5301_v14 }
 0x987   : > { %v2630_v57 = vmul.f32 %v2479_v35, %v5217_v2  ;;  %v2491_v43 = vmul.f32 %v5320_v5, %v5303_v54  ;;  %3759 = vrsqrt.f32 %v5316_v18  ;;  %vm2199_vm15 = vweird.f32 %v5313_v42 }
 0x988   : > { %v2191_v28 = vsel %vm2190_vm10, %v3750_v9, %v2187_v44  ;;  %v2483_v45 = vmul.f32 0.5, %v2482_v61  ;;  %v2194_v40 = vmul.f32 %v5313_v42, %v2193_v33  ;;  %3761 = vrsqrt.f32 %v5318_v25  ;;  %v2391_v33 = vld [vmem:[#allocation11 + $0x8] sm:$0xff]  ;;  %vm2200_vm4 = vmor %vm2198_vm12, %vm2199_vm15 }
 0x989   : > { %v2646_v41 = vadd.f32 %v2630_v57, %v2390_v23  ;;  %v2342_v7 = vmul.f32 %v2191_v28, %v5223_v60  ;;  %v2492_v2 = vmul.f32 %v5320_v5, %v2491_v43  ;;  %vm2497_vm2 = vweird.f32 %v5320_v5 }
 0x98a   : > { %v2484_v3 = vsub.f32 1.5, %v2483_v45  ;;  %v2195_v16 = vmul.f32 0.5, %v2194_v40  ;;  %v2431_v27 = vpop.xlane.xlu1 %2430  ;;  %vm2498_vm5 = vmor %vm2496_vm14, %vm2497_vm2  ;;  %vm2506_vm0 = vweird.f32 %v5316_v18  ;;  %vm2218_vm7 = vweird.f32 %v5318_v25 }
 0x98b   : > { %v5337_v9 = vpop.eup %3757  ;;  %2662 = vst [vmem:[#allocation11] sm:$0xff] %v2646_v41  ;;  %v2358_v31 = vadd.f32 %v2342_v7, %v2102_v8  ;;  %v2493_v1 = vmul.f32 0.5, %v2492_v2  ;;  %v5340_v15 = vmax.f32 %v2431_v27, 1e-24  ;;  %v2103_v41 = vld [vmem:[#allocation10 + $0x8] sm:$0xff] }
 0x98c   : > { %v2485_v60 = vmul.f32 %v5307_v39, %v2484_v3  ;;  %v2196_v48 = vsub.f32 1.5, %v2195_v16  ;;  %v2203_v36 = vmul.f32 %v5337_v9, %v5309_v19  ;;  %v2143_v47 = vpop.xlane.xlu0 %2142  ;;  %v2433_v23 = vpop.xlane.xlu2 %2432  ;;  %v2392_v3 = vld [vmem:[#allocation11 + $0x10] sm:$0xff]  ;;  %vm2209_vm6 = vweird.f32 %v5337_v9 }
 0x98d   : > { %2374 = vst [vmem:[#allocation10] sm:$0xff] %v2358_v31  ;;  %v2494_v35 = vsub.f32 1.5, %v2493_v1  ;;  %3763 = vrsqrt.f32 %v5340_v15  ;;  %v5352_v44 = vmax.f32 %v2143_v47, 1e-24  ;;  %v5354_v61 = vpop.eup %3759  ;;  %v5368_v40 = vmax.f32 %v2433_v23, 1e-24  ;;  %vm2210_vm8 = vmor %vm2208_vm3, %vm2209_vm6 }
 0x98e   : > { %v2489_v57 = vsel %vm2488_vm1, %v5307_v39, %v2485_v60  ;;  %v2197_v43 = vmul.f32 %v5313_v42, %v2196_v48  ;;  %v2204_v8 = vmul.f32 %v5337_v9, %v2203_v36  ;;  %v2501_v45 = vmul.f32 %v5354_v61, %v5316_v18  ;;  %v5370_v39 = vpop.eup %3761 }
 0x98f   : > { %v2631_v0 = vmul.f32 %v2489_v57, %v5229_v6  ;;  %v2495_v28 = vmul.f32 %v5320_v5, %v2494_v35  ;;  %3765 = vrsqrt.f32 %v5352_v44  ;;  %v2213_v54 = vmul.f32 %v5370_v39, %v5318_v25 }
 0x990   : > { %v2201_v7 = vsel %vm2200_vm4, %v5313_v42, %v2197_v43  ;;  %v2205_v6 = vmul.f32 0.5, %v2204_v8  ;;  %v2502_v27 = vmul.f32 %v5354_v61, %v2501_v45  ;;  %3767 = vrsqrt.f32 %v5368_v40 }
 0x991   : > { %v2647_v14 = vadd.f32 %v2631_v0, %v2391_v33  ;;  %v2343_v2 = vmul.f32 %v2201_v7, %v5233_v4  ;;  %v2499_v16 = vsel %vm2498_vm5, %v5320_v5, %v2495_v28  ;;  %vm2507_vm9 = vweird.f32 %v5354_v61  ;;  %v2104_v0 = vld [vmem:[#allocation10 + $0x10] sm:$0xff] }
 0x992   : > { %v2632_v42 = vmul.f32 %v2499_v16, %v5114_v13  ;;  %v2206_v31 = vsub.f32 1.5, %v2205_v6  ;;  %v2145_v1 = vpop.xlane.xlu1 %2144  ;;  %v2503_v36 = vmul.f32 0.5, %v2502_v27  ;;  %v2214_v13 = vmul.f32 %v5370_v39, %v2213_v54  ;;  %vm2508_vm11 = vmor %vm2506_vm0, %vm2507_vm9 }
 0x993   : > { %v5386_v60 = vpop.eup %3763  ;;  %2663 = vst [vmem:[#allocation11 + $0x8] sm:$0xff] %v2647_v14  ;;  %v2359_v48 = vadd.f32 %v2343_v2, %v2103_v41  ;;  %v5399_v57 = vmax.f32 %v2145_v1, 1e-24  ;;  %vm2219_vm10 = vweird.f32 %v5370_v39  ;;  %vm2516_vm14 = vweird.f32 %v5340_v15 }
 0x994   : > { %v2648_v4 = vadd.f32 %v2632_v42, %v2392_v3  ;;  %v2207_v5 = vmul.f32 %v5337_v9, %v2206_v31  ;;  %v2511_v47 = vmul.f32 %v5386_v60, %v5340_v15  ;;  %v2435_v23 = vpop.xlane.xlu0 %2434  ;;  %v2147_v35 = vpop.xlane.xlu2 %2146  ;;  %v2504_v33 = vsub.f32 1.5, %v2503_v36  ;;  %vm2220_vm13 = vmor %vm2218_vm7, %vm2219_vm10  ;;  %v2105_v36 = vld [vmem:[#allocation10 + $0x18] sm:$0xff] }
 0x995   : > { %2375 = vst [vmem:[#allocation10 + $0x8] sm:$0xff] %v2359_v48  ;;  %v5401_v43 = vmax.f32 %v2435_v23, 1e-24  ;;  %v5403_v8 = vpop.eup %3765  ;;  %v2215_v45 = vmul.f32 0.5, %v2214_v13  ;;  %v5412_v14 = vmax.f32 %v2147_v35, 1e-24  ;;  %vm2517_vm12 = vweird.f32 %v5386_v60 }
 0x996   : > { %2664 = vst [vmem:[#allocation11 + $0x10] sm:$0xff] %v2648_v4  ;;  %v2211_v28 = vsel %vm2210_vm8, %v5337_v9, %v2207_v5  ;;  %v2512_v41 = vmul.f32 %v5386_v60, %v2511_v47  ;;  %v2505_v7 = vmul.f32 %v5354_v61, %v2504_v33  ;;  %v2223_v6 = vmul.f32 %v5403_v8, %v5352_v44  ;;  %v5418_v9 = vpop.eup %3767  ;;  %vm2518_vm1 = vmor %vm2516_vm14, %vm2517_vm12 }
 0x997   : > { %v2344_v19 = vmul.f32 %v2211_v28, %v5121_v63  ;;  %v2216_v2 = vsub.f32 1.5, %v2215_v45  ;;  %3769 = vrsqrt.f32 %v5399_v57  ;;  %v2393_v63 = vld [vmem:[#allocation11 + $0x18] sm:$0xff]  ;;  %v2521_v1 = vmul.f32 %v5418_v9, %v5368_v40 }
 0x998   : > { %v2513_v3 = vmul.f32 0.5, %v2512_v41  ;;  %v2509_v27 = vsel %vm2508_vm11, %v5354_v61, %v2505_v7  ;;  %v2224_v42 = vmul.f32 %v5403_v8, %v2223_v6  ;;  %3771 = vrsqrt.f32 %v5401_v43 }
 0x999   : > { %v2360_v16 = vadd.f32 %v2344_v19, %v2104_v0  ;;  %v2633_v31 = vmul.f32 %v2509_v27, %v5116_v24  ;;  %v2217_v18 = vmul.f32 %v5370_v39, %v2216_v2  ;;  %vm2228_vm15 = vweird.f32 %v5352_v44 }
 0x99a   : > { %v2514_v54 = vsub.f32 1.5, %v2513_v3  ;;  %v2437_v48 = vpop.xlane.xlu1 %2436  ;;  %v2225_v61 = vmul.f32 0.5, %v2224_v42  ;;  %3773 = vrsqrt.f32 %v5412_v14  ;;  %v2522_v13 = vmul.f32 %v5418_v9, %v2521_v1 }
 0x99b   : > { %2376 = vst [vmem:[#allocation10 + $0x10] sm:$0xff] %v2360_v16  ;;  %v2649_v24 = vadd.f32 %v2633_v31, %v2393_v63  ;;  %v2221_v4 = vsel %vm2220_vm13, %v5370_v39, %v2217_v18  ;;  %vm2229_vm2 = vweird.f32 %v5403_v8  ;;  %v5441_v35 = vmax.f32 %v2437_v48, 1e-24  ;;  %v2394_v39 = vld [vmem:[#allocation11 + $0x20] sm:$0xff]  ;;  %v2395_v48 = vld [vmem:[#allocation11 + $0x28] sm:$0xff] }
 0x99c   : > { %v2515_v5 = vmul.f32 %v5386_v60, %v2514_v54  ;;  %v2149_v47 = vpop.xlane.xlu0 %2148  ;;  %v2439_v23 = vpop.xlane.xlu2 %2438  ;;  %v2345_v25 = vmul.f32 %v2221_v4, %v5126_v58  ;;  %v2226_v15 = vsub.f32 1.5, %v2225_v61  ;;  %v2523_v28 = vmul.f32 0.5, %v2522_v13  ;;  %vm2230_vm4 = vmor %vm2228_vm15, %vm2229_vm2  ;;  %v2106_v63 = vld [vmem:[#allocation10 + $0x20] sm:$0xff] }
 0x99d   : > { %v5443_v33 = vpop.eup %3769  ;;  %2665 = vst [vmem:[#allocation11 + $0x18] sm:$0xff] %v2649_v24  ;;  %vm2526_vm3 = vweird.f32 %v5368_v40  ;;  %v5447_v45 = vmax.f32 %v2149_v47, 1e-24  ;;  %vm2527_vm5 = vweird.f32 %v5418_v9  ;;  %v5460_v3 = vmax.f32 %v2439_v23, 1e-24 }
 0x99e   : > { %v2519_v0 = vsel %vm2518_vm1, %v5386_v60, %v2515_v5  ;;  %v5449_v58 = vpop.eup %3771  ;;  %v2361_v41 = vadd.f32 %v2345_v25, %v2105_v36  ;;  %v2227_v7 = vmul.f32 %v5403_v8, %v2226_v15  ;;  %v2233_v6 = vmul.f32 %v5443_v33, %v5399_v57  ;;  %vm2528_vm0 = vmor %vm2526_vm3, %vm2527_vm5 }
 0x99f   : > { %v2634_v19 = vmul.f32 %v2519_v0, %v5131_v26  ;;  %v2524_v2 = vsub.f32 1.5, %v2523_v28  ;;  %v2531_v60 = vmul.f32 %v5449_v58, %v5401_v43  ;;  %3775 = vrsqrt.f32 %v5441_v35 }
 0x9a0   : > { %v5462_v16 = vpop.eup %3773  ;;  %2377 = vst [vmem:[#allocation10 + $0x18] sm:$0xff] %v2361_v41  ;;  %v2231_v27 = vsel %vm2230_vm4, %v5403_v8, %v2227_v7  ;;  %v2234_v42 = vmul.f32 %v5443_v33, %v2233_v6  ;;  %vm2238_vm6 = vweird.f32 %v5399_v57  ;;  %vm2536_vm7 = vweird.f32 %v5401_v43  ;;  %v2107_v7 = vld [vmem:[#allocation10 + $0x28] sm:$0xff] }
 0x9a1   : > { %v2650_v26 = vadd.f32 %v2634_v19, %v2394_v39  ;;  %v2346_v44 = vmul.f32 %v2231_v27, %v5138_v34  ;;  %v2525_v31 = vmul.f32 %v5418_v9, %v2524_v2  ;;  %v2532_v18 = vmul.f32 %v5449_v58, %v2531_v60  ;;  %v2396_v60 = vld [vmem:[#allocation11 + $0x30] sm:$0xff] }
 0x9a2   : > { %v2243_v54 = vmul.f32 %v5462_v16, %v5412_v14  ;;  %v2151_v1 = vpop.xlane.xlu1 %2150  ;;  %v2235_v8 = vmul.f32 0.5, %v2234_v42  ;;  %3777 = vrsqrt.f32 %v5447_v45  ;;  %vm2239_vm8 = vweird.f32 %v5443_v33 }
 0x9a3   : > { %2666 = vst [vmem:[#allocation11 + $0x20] sm:$0xff] %v2650_v26  ;;  %v2362_v34 = vadd.f32 %v2346_v44, %v2106_v63  ;;  %v2529_v61 = vsel %vm2528_vm0, %v5418_v9, %v2525_v31  ;;  %v2533_v24 = vmul.f32 0.5, %v2532_v18  ;;  %3779 = vrsqrt.f32 %v5460_v3  ;;  %vm2240_vm11 = vmor %vm2238_vm6, %vm2239_vm8  ;;  %v2108_v44 = vld [vmem:[#allocation10 + $0x30] sm:$0xff] }
 0x9a4   : > { %v2244_v36 = vmul.f32 %v5462_v16, %v2243_v54  ;;  %v2441_v4 = vpop.xlane.xlu0 %2440  ;;  %v2153_v5 = vpop.xlane.xlu2 %2152  ;;  %v2635_v13 = vmul.f32 %v2529_v61, %v5133_v17  ;;  %v2236_v40 = vsub.f32 1.5, %v2235_v8  ;;  %vm2537_vm9 = vweird.f32 %v5449_v58 }
 0x9a5   : > { %2378 = vst [vmem:[#allocation10 + $0x20] sm:$0xff] %v2362_v34  ;;  %v2534_v47 = vsub.f32 1.5, %v2533_v24  ;;  %v5485_v25 = vmax.f32 %v2151_v1, 1e-24  ;;  %v5487_v9 = vpop.eup %3775  ;;  %vm2248_vm10 = vweird.f32 %v5412_v14  ;;  %v5491_v17 = vmax.f32 %v2441_v4, 1e-24  ;;  %vm2538_vm13 = vmor %vm2536_vm7, %vm2537_vm9 }
 0x9a6   : > { %v2245_v23 = vmul.f32 0.5, %v2244_v36  ;;  %v2651_v15 = vadd.f32 %v2635_v13, %v2395_v48  ;;  %v2237_v39 = vmul.f32 %v5443_v33, %v2236_v40  ;;  %vm2249_vm12 = vweird.f32 %v5462_v16 }
 0x9a7   : > { %v2535_v0 = vmul.f32 %v5449_v58, %v2534_v47  ;;  %v2541_v41 = vmul.f32 %v5487_v9, %v5441_v35  ;;  %vm2546_vm14 = vweird.f32 %v5441_v35  ;;  %3781 = vrsqrt.f32 %v5485_v25  ;;  %vm2250_vm15 = vmor %vm2248_vm10, %vm2249_vm12 }
 0x9a8   : > { %v2246_v28 = vsub.f32 1.5, %v2245_v23  ;;  %v5499_v19 = vpop.eup %3777  ;;  %2667 = vst [vmem:[#allocation11 + $0x28] sm:$0xff] %v2651_v15  ;;  %v2241_v6 = vsel %vm2240_vm11, %v5443_v33, %v2237_v39  ;;  %v5508_v57 = vmax.f32 %v2153_v5, 1e-24  ;;  %vm2258_vm1 = vweird.f32 %v5447_v45  ;;  %v2397_v15 = vld [vmem:[#allocation11 + $0x38] sm:$0xff] }
 0x9a9   : > { %v2347_v2 = vmul.f32 %v2241_v6, %v5142_v49  ;;  %v2539_v26 = vsel %vm2538_vm13, %v5449_v58, %v2535_v0  ;;  %v2542_v33 = vmul.f32 %v5487_v9, %v2541_v41  ;;  %v5514_v42 = vpop.eup %3779  ;;  %v2253_v49 = vmul.f32 %v5499_v19, %v5447_v45 }
 0x9aa   : > { %v2247_v63 = vmul.f32 %v5462_v16, %v2246_v28  ;;  %v2443_v27 = vpop.xlane.xlu1 %2442  ;;  %v2636_v43 = vmul.f32 %v2539_v26, %v5147_v38  ;;  %3783 = vrsqrt.f32 %v5491_v17  ;;  %v2551_v38 = vmul.f32 %v5514_v42, %v5460_v3 }
 0x9ab   : > { %v2363_v58 = vadd.f32 %v2347_v2, %v2107_v7  ;;  %v2543_v18 = vmul.f32 0.5, %v2542_v33  ;;  %v2254_v8 = vmul.f32 %v5499_v19, %v2253_v49  ;;  %vm2556_vm2 = vweird.f32 %v5460_v3 }
 0x9ac   : > { %v2251_v31 = vsel %vm2250_vm15, %v5462_v16, %v2247_v63  ;;  %v2155_v54 = vpop.xlane.xlu0 %2154  ;;  %v2652_v1 = vadd.f32 %v2636_v43, %v2396_v60  ;;  %vm2547_vm3 = vweird.f32 %v5487_v9  ;;  %v2552_v48 = vmul.f32 %v5514_v42, %v2551_v38  ;;  %v2445_v16 = vpop.xlane.xlu2 %2444 }
 0x9ad   : > { %v2348_v14 = vmul.f32 %v2251_v31, %v5154_v62  ;;  %2379 = vst [vmem:[#allocation10 + $0x28] sm:$0xff] %v2363_v58  ;;  %v2544_v34 = vsub.f32 1.5, %v2543_v18  ;;  %3785 = vrsqrt.f32 %v5508_v57  ;;  %v5534_v61 = vpop.eup %3781  ;;  %v2255_v36 = vmul.f32 0.5, %v2254_v8  ;;  %vm2548_vm5 = vmor %vm2546_vm14, %vm2547_vm3  ;;  %v2398_v58 = vld [vmem:[#allocation11 + $0x40] sm:$0xff] }
 0x9ae   : > { %2668 = vst [vmem:[#allocation11 + $0x30] sm:$0xff] %v2652_v1  ;;  %v5536_v4 = vmax.f32 %v2443_v27, 1e-24  ;;  %v5538_v62 = vmax.f32 %v2155_v54, 1e-24  ;;  %v2553_v13 = vmul.f32 0.5, %v2552_v48  ;;  %v2263_v40 = vmul.f32 %v5534_v61, %v5485_v25 }
 0x9af   : > { %v2364_v24 = vadd.f32 %v2348_v14, %v2108_v44  ;;  %v2545_v5 = vmul.f32 %v5487_v9, %v2544_v34  ;;  %vm2268_vm4 = vweird.f32 %v5485_v25  ;;  %v2256_v23 = vsub.f32 1.5, %v2255_v36 }
 0x9b0   : > { %v5544_v47 = vpop.eup %3783  ;;  %vm2259_vm0 = vweird.f32 %v5499_v19  ;;  %vm2557_vm6 = vweird.f32 %v5514_v42  ;;  %3787 = vrsqrt.f32 %v5536_v4  ;;  %v2554_v0 = vsub.f32 1.5, %v2553_v13 }
 0x9b1   : > { %2380 = vst [vmem:[#allocation10 + $0x30] sm:$0xff] %v2364_v24  ;;  %v2549_v39 = vsel %vm2548_vm5, %v5487_v9, %v2545_v5  ;;  %v2264_v28 = vmul.f32 %v5534_v61, %v2263_v40  ;;  %v2561_v41 = vmul.f32 %v5544_v47, %v5491_v17  ;;  %v2257_v6 = vmul.f32 %v5499_v19, %v2256_v23  ;;  %vm2260_vm8 = vmor %vm2258_vm1, %vm2259_vm0 }
 0x9b2   : > { %v2157_v7 = vpop.xlane.xlu1 %2156  ;;  %v2637_v35 = vmul.f32 %v2549_v39, %v5149_v56  ;;  %vm2566_vm7 = vweird.f32 %v5491_v17  ;;  %3789 = vrsqrt.f32 %v5538_v62  ;;  %v2555_v9 = vmul.f32 %v5514_v42, %v2554_v0  ;;  %v2109_v56 = vld [vmem:[#allocation10 + $0x38] sm:$0xff]  ;;  %vm2558_vm9 = vmor %vm2556_vm2, %vm2557_vm6 }
 0x9b3   : > { %v5561_v2 = vpop.eup %3785  ;;  %v2265_v60 = vmul.f32 0.5, %v2264_v28  ;;  %v2562_v26 = vmul.f32 %v5544_v47, %v2561_v41  ;;  %v5567_v63 = vmax.f32 %v2445_v16, 1e-24  ;;  %v2261_v27 = vsel %vm2260_vm8, %v5499_v19, %v2257_v6  ;;  %v2110_v16 = vld [vmem:[#allocation10 + $0x40] sm:$0xff] }
 0x9b4   : > { %v2653_v33 = vadd.f32 %v2637_v35, %v2397_v15  ;;  %vm2269_vm10 = vweird.f32 %v5534_v61  ;;  %v2273_v45 = vmul.f32 %v5561_v2, %v5508_v57  ;;  %v2447_v43 = vpop.xlane.xlu0 %2446  ;;  %v2349_v49 = vmul.f32 %v2261_v27, %v5158_v50  ;;  %v2159_v14 = vpop.xlane.xlu2 %2158 }
 0x9b5   : > { %v2559_v44 = vsel %vm2558_vm9, %v5514_v42, %v2555_v9  ;;  %v2266_v31 = vsub.f32 1.5, %v2265_v60  ;;  %v2563_v18 = vmul.f32 0.5, %v2562_v26  ;;  %vm2567_vm11 = vweird.f32 %v5544_v47  ;;  %vm2270_vm12 = vmor %vm2268_vm4, %vm2269_vm10  ;;  %v2111_v60 = vld [vmem:[#allocation10 + $0x48] sm:$0xff] }
 0x9b6   : > { %v5579_v38 = vpop.eup %3787  ;;  %2669 = vst [vmem:[#allocation11 + $0x38] sm:$0xff] %v2653_v33  ;;  %v2638_v19 = vmul.f32 %v2559_v44, %v5163_v59  ;;  %v2274_v3 = vmul.f32 %v5561_v2, %v2273_v45  ;;  %3791 = vrsqrt.f32 %v5567_v63  ;;  %v2365_v54 = vadd.f32 %v2349_v49, %v2109_v56  ;;  %vm2568_vm14 = vmor %vm2566_vm7, %vm2567_vm11  ;;  %v2400_v49 = vld [vmem:[#allocation11 + $0x50] sm:$0xff] }
 0x9b7   : > { %v2267_v1 = vmul.f32 %v5534_v61, %v2266_v31  ;;  %v2564_v50 = vsub.f32 1.5, %v2563_v18  ;;  %v2571_v42 = vmul.f32 %v5579_v38, %v5536_v4  ;;  %vm2278_vm13 = vweird.f32 %v5508_v57 }
 0x9b8   : > { %v5588_v8 = vpop.eup %3789  ;;  %v2654_v34 = vadd.f32 %v2638_v19, %v2398_v58  ;;  %v2275_v59 = vmul.f32 0.5, %v2274_v3  ;;  %v5595_v48 = vmax.f32 %v2157_v7, 1e-24  ;;  %2381 = vst [vmem:[#allocation10 + $0x38] sm:$0xff] %v2365_v54  ;;  %vm2279_vm15 = vweird.f32 %v5561_v2 }
 0x9b9   : > { %v2271_v24 = vsel %vm2270_vm12, %v5534_v61, %v2267_v1  ;;  %v2565_v36 = vmul.f32 %v5544_v47, %v2564_v50  ;;  %v2572_v5 = vmul.f32 %v5579_v38, %v2571_v42  ;;  %v2283_v13 = vmul.f32 %v5588_v8, %v5538_v62  ;;  %v2399_v61 = vld [vmem:[#allocation11 + $0x48] sm:$0xff]  ;;  %vm2280_vm2 = vmor %vm2278_vm13, %vm2279_vm15 }
 0x9ba   : > { %v2163_v40 = vpop.xlane.xlu1 %2162  ;;  %2670 = vst [vmem:[#allocation11 + $0x40] sm:$0xff] %v2654_v34  ;;  %v2350_v25 = vmul.f32 %v2271_v24, %v5169_v37  ;;  %v2276_v23 = vsub.f32 1.5, %v2275_v59  ;;  %3793 = vrsqrt.f32 %v5595_v48  ;;  %vm2576_vm1 = vweird.f32 %v5536_v4 }
 0x9bb   : > { %v2569_v15 = vsel %vm2568_vm14, %v5544_v47, %v2565_v36  ;;  %v2573_v39 = vmul.f32 0.5, %v2572_v5  ;;  %v2284_v0 = vmul.f32 %v5588_v8, %v2283_v13  ;;  %v5616_v7 = vmax.f32 %v2447_v43, 1e-24 }
 0x9bc   : > { %v5612_v28 = vpop.eup %3791  ;;  %v2366_v37 = vadd.f32 %v2350_v25, %v2110_v16  ;;  %v2639_v41 = vmul.f32 %v2569_v15, %v5165_v51  ;;  %v2277_v17 = vmul.f32 %v5561_v2, %v2276_v23  ;;  %vm2577_vm3 = vweird.f32 %v5579_v38  ;;  %v2161_v51 = vpop.xlane.xlu0 %2160 }
 0x9bd   : > { %v2574_v35 = vsub.f32 1.5, %v2573_v39  ;;  %v2285_v47 = vmul.f32 0.5, %v2284_v0  ;;  %v2581_v6 = vmul.f32 %v5612_v28, %v5567_v63  ;;  %vm2289_vm4 = vweird.f32 %v5588_v8  ;;  %vm2578_vm5 = vmor %vm2576_vm1, %vm2577_vm3  ;;  %v2165_v18 = vpop.xlane.xlu2 %2164 }
 0x9be   : > { %2382 = vst [vmem:[#allocation10 + $0x40] sm:$0xff] %v2366_v37  ;;  %v2655_v9 = vadd.f32 %v2639_v41, %v2399_v61  ;;  %v2281_v26 = vsel %vm2280_vm2, %v5561_v2, %v2277_v17  ;;  %3795 = vrsqrt.f32 %v5616_v7  ;;  %vm2288_vm0 = vweird.f32 %v5538_v62  ;;  %v2112_v62 = vld [vmem:[#allocation10 + $0x50] sm:$0xff] }
 0x9bf   : > { %v2351_v57 = vmul.f32 %v2281_v26, %v5173_v55  ;;  %v2575_v33 = vmul.f32 %v5579_v38, %v2574_v35  ;;  %v2286_v56 = vsub.f32 1.5, %v2285_v47  ;;  %v2582_v27 = vmul.f32 %v5612_v28, %v2581_v6  ;;  %vm2290_vm6 = vmor %vm2288_vm0, %vm2289_vm4  ;;  %v2113_v35 = vld [vmem:[#allocation10 + $0x58] sm:$0xff] }
 0x9c0   : > { %v5629_v45 = vpop.eup %3793  ;;  %2671 = vst [vmem:[#allocation11 + $0x48] sm:$0xff] %v2655_v9  ;;  %v5636_v2 = vmax.f32 %v2159_v14, 1e-24  ;;  %v5638_v43 = vmax.f32 %v2163_v40, 1e-24  ;;  %vm2587_vm7 = vweird.f32 %v5612_v28  ;;  %vm2586_vm8 = vweird.f32 %v5567_v63 }
 0x9c1   : > { %v2367_v55 = vadd.f32 %v2351_v57, %v2111_v60  ;;  %v2579_v58 = vsel %vm2578_vm5, %v5579_v38, %v2575_v33  ;;  %v2287_v44 = vmul.f32 %v5588_v8, %v2286_v56  ;;  %v2583_v31 = vmul.f32 0.5, %v2582_v27  ;;  %vm2588_vm9 = vmor %vm2586_vm8, %vm2587_vm7 }
 0x9c2   : > { %v2640_v19 = vmul.f32 %v2579_v58, %v5177_v52  ;;  %v2293_v4 = vmul.f32 %v5629_v45, %v5595_v48  ;;  %3797 = vrsqrt.f32 %v5636_v2  ;;  %v2449_v38 = vpop.xlane.xlu1 %2448  ;;  %v5659_v34 = vmax.f32 %v2161_v51, 1e-24 }
 0x9c3   : > { %2383 = vst [vmem:[#allocation10 + $0x48] sm:$0xff] %v2367_v55  ;;  %v2291_v3 = vsel %vm2290_vm6, %v5588_v8, %v2287_v44  ;;  %v2584_v54 = vsub.f32 1.5, %v2583_v31  ;;  %3799 = vrsqrt.f32 %v5638_v43  ;;  %v5661_v24 = vmax.f32 %v2165_v18, 1e-24  ;;  %v2402_v55 = vld [vmem:[#allocation11 + $0x60] sm:$0xff] }
 0x9c4   : > { %v5651_v1 = vpop.eup %3795  ;;  %v2656_v52 = vadd.f32 %v2640_v19, %v2400_v49  ;;  %v2352_v50 = vmul.f32 %v2291_v3, %v5183_v20  ;;  %v2294_v42 = vmul.f32 %v5629_v45, %v2293_v4  ;;  %v5663_v36 = vmax.f32 %v2449_v38, 1e-24  ;;  %v2401_v20 = vld [vmem:[#allocation11 + $0x58] sm:$0xff]  ;;  %v2453_v23 = vpop.xlane.xlu0 %2452 }
 0x9c5   : > { %v2585_v14 = vmul.f32 %v5612_v28, %v2584_v54  ;;  %v2591_v8 = vmul.f32 %v5651_v1, %v5616_v7  ;;  %3801 = vrsqrt.f32 %v5659_v34  ;;  %vm2299_vm10 = vweird.f32 %v5629_v45  ;;  %v2451_v17 = vpop.xlane.xlu2 %2450 }
 0x9c6   : > { %2672 = vst [vmem:[#allocation11 + $0x50] sm:$0xff] %v2656_v52  ;;  %v2368_v59 = vadd.f32 %v2352_v50, %v2112_v62  ;;  %v2295_v16 = vmul.f32 0.5, %v2294_v42  ;;  %3803 = vrsqrt.f32 %v5661_v24  ;;  %vm2298_vm11 = vweird.f32 %v5595_v48 }
 0x9c7   : > { %v2589_v5 = vsel %vm2588_vm9, %v5612_v28, %v2585_v14  ;;  %v2592_v13 = vmul.f32 %v5651_v1, %v2591_v8  ;;  %3805 = vrsqrt.f32 %v5663_v36  ;;  %vm2596_vm12 = vweird.f32 %v5616_v7  ;;  %vm2300_vm13 = vmor %vm2298_vm11, %vm2299_vm10  ;;  %v2116_v14 = vld [vmem:[#allocation10 + $0x70] sm:$0xff] }
 0x9c8   : > { %v5668_v63 = vpop.eup %3797  ;;  %2384 = vst [vmem:[#allocation10 + $0x50] sm:$0xff] %v2368_v59  ;;  %v2641_v40 = vmul.f32 %v2589_v5, %v5179_v30  ;;  %v2296_v25 = vsub.f32 1.5, %v2295_v16  ;;  %vm2597_vm14 = vweird.f32 %v5651_v1  ;;  %v5685_v41 = vmax.f32 %v2453_v23, 1e-24 }
 0x9c9   : > { %v5673_v61 = vpop.eup %3799  ;;  %v2593_v15 = vmul.f32 0.5, %v2592_v13  ;;  %v2303_v39 = vmul.f32 %v5668_v63, %v5636_v2  ;;  %vm2308_vm15 = vweird.f32 %v5636_v2  ;;  %vm2328_vm1 = vweird.f32 %v5638_v43  ;;  %vm2598_vm2 = vmor %vm2596_vm12, %vm2597_vm14 }
 0x9ca   : > { %v2657_v0 = vadd.f32 %v2641_v40, %v2401_v20  ;;  %v2297_v28 = vmul.f32 %v5629_v45, %v2296_v25  ;;  %v2323_v30 = vmul.f32 %v5673_v61, %v5638_v43  ;;  %3807 = vrsqrt.f32 %v5685_v41 }
 0x9cb   : > { %v2594_v37 = vsub.f32 1.5, %v2593_v15  ;;  %v2304_v48 = vmul.f32 %v5668_v63, %v2303_v39  ;;  %v5691_v9 = vpop.eup %3801  ;;  %vm2309_vm3 = vweird.f32 %v5668_v63  ;;  %v5705_v27 = vmax.f32 %v2451_v17, 1e-24  ;;  %v2117_v39 = vld [vmem:[#allocation10 + $0x78] sm:$0xff] }
 0x9cc   : > { %2673 = vst [vmem:[#allocation11 + $0x58] sm:$0xff] %v2657_v0  ;;  %v2301_v47 = vsel %vm2300_vm13, %v5629_v45, %v2297_v28  ;;  %v2324_v6 = vmul.f32 %v5673_v61, %v2323_v30  ;;  %v5696_v57 = vpop.eup %3803  ;;  %v2313_v56 = vmul.f32 %v5691_v9, %v5659_v34  ;;  %vm2329_vm4 = vweird.f32 %v5673_v61  ;;  %vm2310_vm0 = vmor %vm2308_vm15, %vm2309_vm3 }
 0x9cd   : > { %v2353_v60 = vmul.f32 %v2301_v47, %v5187_v46  ;;  %v2595_v26 = vmul.f32 %v5651_v1, %v2594_v37  ;;  %v2305_v51 = vmul.f32 0.5, %v2304_v48  ;;  %v5707_v46 = vpop.eup %3805  ;;  %v2333_v44 = vmul.f32 %v5696_v57, %v5661_v24  ;;  %vm2330_vm6 = vmor %vm2328_vm1, %vm2329_vm4 }
 0x9ce   : > { %v2325_v33 = vmul.f32 0.5, %v2324_v6  ;;  %v2314_v18 = vmul.f32 %v5691_v9, %v2313_v56  ;;  %vm2318_vm5 = vweird.f32 %v5659_v34  ;;  %v2601_v62 = vmul.f32 %v5707_v46, %v5663_v36 }
 0x9cf   : > { %v2369_v45 = vadd.f32 %v2353_v60, %v2113_v35  ;;  %v2599_v49 = vsel %vm2598_vm2, %v5651_v1, %v2595_v26  ;;  %v2306_v58 = vsub.f32 1.5, %v2305_v51  ;;  %v2334_v4 = vmul.f32 %v5696_v57, %v2333_v44  ;;  %v2114_v1 = vld [vmem:[#allocation10 + $0x60] sm:$0xff]  ;;  %v2405_v26 = vld [vmem:[#allocation11 + $0x78] sm:$0xff] }
 0x9d0   : > { %v2642_v7 = vmul.f32 %v2599_v49, %v5191_v53  ;;  %v2326_v31 = vsub.f32 1.5, %v2325_v33  ;;  %v2315_v54 = vmul.f32 0.5, %v2314_v18  ;;  %3809 = vrsqrt.f32 %v5705_v27  ;;  %v3808_v38 = vpop.eup %3807  ;;  %v2687_v49 = vld [vmem:[#allocation10 + $0x20] sm:$0xff] (%p2678_p1)  ;;  %v2686_v18 = vld [vmem:[#allocation10 + $0x18] sm:$0xff] (%p2678_p1) }
 0x9d1   : > { %2385 = vst [vmem:[#allocation10 + $0x58] sm:$0xff] %v2369_v45  ;;  %v2307_v19 = vmul.f32 %v5668_v63, %v2306_v58  ;;  %vm2319_vm7 = vweird.f32 %v5691_v9  ;;  %v2335_v50 = vmul.f32 0.5, %v2334_v4  ;;  %v2602_v2 = vmul.f32 %v5707_v46, %v2601_v62  ;;  %v2683_v58 = vld [vmem:[#allocation10] sm:$0xff] (%p2678_p1)  ;;  %v2684_v62 = vld [vmem:[#allocation10 + $0x8] sm:$0xff] (%p2678_p1) }
 0x9d2   : > { %v2658_v3 = vadd.f32 %v2642_v7, %v2402_v55  ;;  %v2327_v53 = vmul.f32 %v5673_v61, %v2326_v31  ;;  %v2316_v59 = vsub.f32 1.5, %v2315_v54  ;;  %v2621_v16 = vmul.f32 %v3808_v38, %v5685_v41  ;;  %vm2320_vm10 = vmor %vm2318_vm5, %vm2319_vm7 }
 0x9d3   : > { %v2311_v52 = vsel %vm2310_vm0, %v5668_v63, %v2307_v19  ;;  %v2336_v5 = vsub.f32 1.5, %v2335_v50  ;;  %vm2339_vm8 = vweird.f32 %v5696_v57  ;;  %v2603_v43 = vmul.f32 0.5, %v2602_v2  ;;  %v2691_v50 = vld [vmem:[#allocation10 + $0x40] sm:$0xff] (%p2678_p1)  ;;  %v2690_v2 = vld [vmem:[#allocation10 + $0x38] sm:$0xff] (%p2678_p1) }
 0x9d4   : > { %2674 = vst [vmem:[#allocation11 + $0x60] sm:$0xff] %v2658_v3  ;;  %v2354_v42 = vmul.f32 %v2311_v52, %v5197_v11  ;;  %v2331_v8 = vsel %vm2330_vm6, %v5673_v61, %v2327_v53  ;;  %v2317_v63 = vmul.f32 %v5691_v9, %v2316_v59  ;;  %vm2338_vm9 = vweird.f32 %v5661_v24  ;;  %v2115_v61 = vld [vmem:[#allocation10 + $0x68] sm:$0xff] }
 0x9d5   : > { %v2356_v20 = vmul.f32 %v2331_v8, %v5211_v32  ;;  %v2622_v40 = vmul.f32 %v3808_v38, %v2621_v16  ;;  %v2337_v11 = vmul.f32 %v5696_v57, %v2336_v5  ;;  %v2604_v23 = vsub.f32 1.5, %v2603_v43  ;;  %vm2340_vm12 = vmor %vm2338_vm9, %vm2339_vm8 }
 0x9d6   : > { %v2370_v13 = vadd.f32 %v2354_v42, %v2114_v1  ;;  %vm2607_vm11 = vweird.f32 %v5707_v46  ;;  %v3810_v32 = vpop.eup %3809  ;;  %v2321_v15 = vsel %vm2320_vm10, %v5691_v9, %v2317_v63  ;;  %vm2606_vm13 = vweird.f32 %v5663_v36  ;;  %v2403_v36 = vld [vmem:[#allocation11 + $0x68] sm:$0xff]  ;;  %v2689_v42 = vld [vmem:[#allocation10 + $0x30] sm:$0xff] (%p2678_p1) }
 0x9d7   : > { %v2372_v25 = vadd.f32 %v2356_v20, %v2116_v14  ;;  %v2623_v24 = vmul.f32 0.5, %v2622_v40  ;;  %v2355_v34 = vmul.f32 %v2321_v15, %v5201_v29  ;;  %v2341_v0 = vsel %vm2340_vm12, %v5696_v57, %v2337_v11  ;;  %vm2608_vm14 = vmor %vm2606_vm13, %vm2607_vm11  ;;  %v2692_v63 = vld [vmem:[#allocation10 + $0x48] sm:$0xff] (%p2678_p1) }
 0x9d8   : > { %2386 = vst [vmem:[#allocation10 + $0x60] sm:$0xff] %v2370_v13  ;;  %v2605_v28 = vmul.f32 %v5707_v46, %v2604_v23  ;;  %v2611_v30 = vmul.f32 %v3810_v32, %v5705_v27  ;;  %v2357_v37 = vmul.f32 %v2341_v0, %v5215_v10  ;;  %vm2627_vm15 = vweird.f32 %v3808_v38  ;;  %v2694_v43 = vld [vmem:[#allocation10 + $0x58] sm:$0xff] (%p2678_p1)  ;;  %v2693_v13 = vld [vmem:[#allocation10 + $0x50] sm:$0xff] (%p2678_p1) }
 0x9d9   : > { %2388 = vst [vmem:[#allocation10 + $0x70] sm:$0xff] %v2372_v25  ;;  %v2624_v48 = vsub.f32 1.5, %v2623_v24  ;;  %v2371_v17 = vadd.f32 %v2355_v34, %v2115_v61  ;;  %vm2626_vm1 = vweird.f32 %v5685_v41  ;;  %vm2617_vm3 = vweird.f32 %v3810_v32 }
 0x9da   : > { %v2609_v35 = vsel %vm2608_vm14, %v5707_v46, %v2605_v28  ;;  %v2612_v47 = vmul.f32 %v3810_v32, %v2611_v30  ;;  %v2373_v29 = vadd.f32 %v2357_v37, %v2117_v39  ;;  %vm2628_vm2 = vmor %vm2626_vm1, %vm2627_vm15  ;;  %vm2616_vm4 = vweird.f32 %v5705_v27  ;;  %v2688_v27 = vld [vmem:[#allocation10 + $0x28] sm:$0xff] (%p2678_p1) }
 0x9db   : > { %v2643_v6 = vmul.f32 %v2609_v35, %v5193_v21  ;;  %v2625_v9 = vmul.f32 %v3808_v38, %v2624_v48  ;;  %2387 = vst [vmem:[#allocation10 + $0x68] sm:$0xff] %v2371_v17  ;;  %vm2618_vm5 = vmor %vm2616_vm4, %vm2617_vm3  ;;  %v2404_v21 = vld [vmem:[#allocation11 + $0x70] sm:$0xff]  ;;  %v5765_v44 = vmul.f32 (%p2678_p1), 0.33333334, %v2687_v49  ;;  %v5769_v31 = vmul.f32 (%p2678_p1), 0.33333334, %v2683_v58 }
 0x9dc   : > { %v2613_v60 = vmul.f32 0.5, %v2612_v47  ;;  %2389 = vst [vmem:[#allocation10 + $0x78] sm:$0xff] %v2373_v29  ;;  %v5777_v3 = vmul.f32 (%p2678_p1), 0.33333334, %v2688_v27  ;;  %v5779_v53 = vmul.f32 (%p2678_p1), 0.33333334, %v2686_v18 }
 0x9dd   : > { %v2659_v10 = vadd.f32 %v2643_v6, %v2403_v36  ;;  %v2629_v51 = vsel %vm2628_vm2, %v3808_v38, %v2625_v9  ;;  %v2719_v19 = vmul.f32 (%p2678_p1), %v5765_v44, %v5765_v44  ;;  %v2715_v4 = vmul.f32 (%p2678_p1), %v5769_v31, %v5769_v31 }
 0x9de   : > { %v2645_v57 = vmul.f32 %v2629_v51, %v5207_v12  ;;  %v2614_v33 = vsub.f32 1.5, %v2613_v60  ;;  %v2685_v12 = vld [vmem:[#allocation10 + $0x10] sm:$0xff] (%p2678_p1)  ;;  %v5781_v54 = vmul.f32 (%p2678_p1), 0.33333334, %v2684_v62  ;;  %v2720_v38 = vmul.f32 (%p2678_p1), %v5777_v3, %v5777_v3 }
 0x9df   : > { %2675 = vst [vmem:[#allocation11 + $0x68] sm:$0xff] %v2659_v10  ;;  %v5767_v7 = vmul.f32 (%p2678_p1), 0.33333334, %v2685_v12  ;;  %2739 = vadd.xlane.f32.xlu2 (%p2678_p1), %v2719_v19  ;;  %2731 = vadd.xlane.f32.xlu0 (%p2678_p1), %v2715_v4  ;;  %v2718_v1 = vmul.f32 (%p2678_p1), %v5779_v53, %v5779_v53  ;;  %v5789_v14 = vmul.f32 (%p2678_p1), 0.33333334, %v2691_v50  ;;  %v2695_v34 = vld [vmem:[#allocation10 + $0x60] sm:$0xff] (%p2678_p1) }
 0x9e0   : > { %v2661_v56 = vadd.f32 %v2645_v57, %v2405_v26  ;;  %v2615_v46 = vmul.f32 %v3810_v32, %v2614_v33  ;;  %v2716_v52 = vmul.f32 (%p2678_p1), %v5781_v54, %v5781_v54  ;;  %v5791_v8 = vmul.f32 (%p2678_p1), 0.33333334, %v2690_v2  ;;  %v2697_v15 = vld [vmem:[#allocation10 + $0x70] sm:$0xff] (%p2678_p1) }
 0x9e1   : > { %v5793_v59 = vmul.f32 (%p2678_p1), 0.33333334, %v2689_v42  ;;  %v2723_v16 = vmul.f32 (%p2678_p1), %v5789_v14, %v5789_v14  ;;  %v5801_v40 = vmul.f32 (%p2678_p1), 0.33333334, %v2694_v43  ;;  %v5803_v25 = vmul.f32 (%p2678_p1), 0.33333334, %v2693_v13 }
 0x9e2   : > { %2677 = vst [vmem:[#allocation11 + $0x78] sm:$0xff] %v2661_v56  ;;  %v2619_v41 = vsel %vm2618_vm5, %v3810_v32, %v2615_v46  ;;  %v2722_v20 = vmul.f32 (%p2678_p1), %v5791_v8, %v5791_v8  ;;  %v5805_v11 = vmul.f32 (%p2678_p1), 0.33333334, %v2692_v63  ;;  %v2696_v24 = vld [vmem:[#allocation10 + $0x68] sm:$0xff] (%p2678_p1)  ;;  %v5813_v39 = vmul.f32 (%p2678_p1), 0.33333334, %v2697_v15 }
 0x9e3   : > { %v2644_v45 = vmul.f32 %v2619_v41, %v5205_v22  ;;  %2682 = sbr.rel (!%p2678_p1) target bundleno = 2713 (0xa99), region = 84  ;;  %v2717_v22 = vmul.f32 (%p2678_p1), %v5767_v7, %v5767_v7  ;;  %v2721_v5 = vmul.f32 (%p2678_p1), %v5793_v59, %v5793_v59  ;;  %v2726_v23 = vmul.f32 (%p2678_p1), %v5801_v40, %v5801_v40  ;;  %v2698_v17 = vld [vmem:[#allocation10 + $0x78] sm:$0xff] (%p2678_p1) }
 0x9e4   : > { %v2725_v32 = vmul.f32 (%p2678_p1), %v5803_v25, %v5803_v25  ;;  %v2724_v61 = vmul.f32 (%p2678_p1), %v5805_v11, %v5805_v11  ;;  %v5815_v0 = vmul.f32 (%p2678_p1), 0.33333334, %v2696_v24  ;;  %v5817_v28 = vmul.f32 (%p2678_p1), 0.33333334, %v2695_v34 }
 0x9e5   : > { %v2660_v55 = vadd.f32 %v2644_v45, %v2404_v21  ;;  %2735 = vadd.xlane.f32.xlu1 (%p2678_p1), %v2717_v22  ;;  %v2729_v30 = vmul.f32 (%p2678_p1), %v5813_v39, %v5813_v39  ;;  %v5825_v36 = vmul.f32 (%p2678_p1), 0.33333334, %v2698_v17 }
 0x9e6   : > { %v2728_v37 = vmul.f32 (%p2678_p1), %v5815_v0, %v5815_v0  ;;  %v2727_v48 = vmul.f32 (%p2678_p1), %v5817_v28, %v5817_v28 }
 0x9e7   : > { %2676 = vst [vmem:[#allocation11 + $0x70] sm:$0xff] %v2660_v55  ;;  %2741 = vadd.xlane.f32.xlu2 (%p2678_p1), %v2720_v38  ;;  %2733 = vadd.xlane.f32.xlu0 (%p2678_p1), %v2716_v52  ;;  %v2730_v35 = vmul.f32 (%p2678_p1), %v5825_v36, %v5825_v36 }
 0x9ed   : > { %2737 = vadd.xlane.f32.xlu1 %v2718_v1 }
 0x9ef   : > { %2747 = vadd.xlane.f32.xlu2 %v2723_v16  ;;  %2743 = vadd.xlane.f32.xlu0 %v2721_v5 }
 0x9f5   : > { %2745 = vadd.xlane.f32.xlu1 %v2722_v20 }
 0x9f7   : > { %2753 = vadd.xlane.f32.xlu2 %v2726_v23  ;;  %2749 = vadd.xlane.f32.xlu0 %v2724_v61 }
 0x9fd   : > { %2751 = vadd.xlane.f32.xlu1 %v2725_v32 }
 0x9ff   : > { %2759 = vadd.xlane.f32.xlu2 %v2729_v30  ;;  %2755 = vadd.xlane.f32.xlu0 %v2727_v48 }
 0xa05   : > { %2757 = vadd.xlane.f32.xlu1 %v2728_v37 }
 0xa07   : > { %2761 = vadd.xlane.f32.xlu0 %v2730_v35 }
 0xa52   : > { %v2740_v47 = vpop.xlane.xlu2 %2739  ;;  %v2732_v60 = vpop.xlane.xlu0 %2731 }
 0xa53   : > { %v2767_v6 = vmax.f32 %v2740_v47, 1e-24  ;;  %v2763_v10 = vmax.f32 %v2732_v60, 1e-24 }
 0xa55   : > { %3827 = vrsqrt.f32 %v2767_v6  ;;  %vm2825_vm0 = vweird.f32 %v2767_v6  ;;  %vm2785_vm9 = vweird.f32 %v2763_v10 }
 0xa58   : > { %v2736_v29 = vpop.xlane.xlu1 %2735 }
 0xa59   : > { %v2765_v9 = vmax.f32 %v2736_v29, 1e-24 }
 0xa5a   : > { %v2742_v26 = vpop.xlane.xlu2 %2741  ;;  %v2734_v46 = vpop.xlane.xlu0 %2733 }
 0xa5b   : > { %3829 = vrsqrt.f32 %v2765_v9  ;;  %v3828_v57 = vpop.eup %3827  ;;  %v5829_v33 = vmax.f32 %v2742_v26, 1e-24  ;;  %v5833_v45 = vmax.f32 %v2734_v46, 1e-24  ;;  %vm2805_vm7 = vweird.f32 %v2765_v9 }
 0xa5c   : > { %3831 = vrsqrt.f32 %v2763_v10  ;;  %v2820_v41 = vmul.f32 %v3828_v57, %v2767_v6  ;;  %vm2826_vm6 = vweird.f32 %v3828_v57 }
 0xa5d   : > { %3833 = vrsqrt.f32 %v5829_v33  ;;  %vm2827_vm11 = vmor %vm2825_vm0, %vm2826_vm6  ;;  %vm2835_vm14 = vweird.f32 %v5829_v33  ;;  %vm2795_vm5 = vweird.f32 %v5833_v45 }
 0xa5e   : > { %v2821_v12 = vmul.f32 %v3828_v57, %v2820_v41 }
 0xa60   : > { %v2738_v51 = vpop.xlane.xlu1 %2737  ;;  %v2822_v18 = vmul.f32 0.5, %v2821_v12 }
 0xa61   : > { %v5831_v56 = vmax.f32 %v2738_v51, 1e-24  ;;  %v3830_v21 = vpop.eup %3829 }
 0xa62   : > { %v3832_v55 = vpop.eup %3831  ;;  %v2800_v49 = vmul.f32 %v3830_v21, %v2765_v9  ;;  %v2823_v4 = vsub.f32 1.5, %v2822_v18  ;;  %v2748_v38 = vpop.xlane.xlu2 %2747  ;;  %vm2806_vm8 = vweird.f32 %v3830_v21 }
 0xa63   : > { %v2780_v58 = vmul.f32 %v3832_v55, %v2763_v10  ;;  %3835 = vrsqrt.f32 %v5831_v56  ;;  %v5838_v52 = vpop.eup %3833  ;;  %v5840_v2 = vmax.f32 %v2748_v38, 1e-24  ;;  %v2744_v42 = vpop.xlane.xlu0 %2743  ;;  %vm2786_vm10 = vweird.f32 %v3832_v55  ;;  %vm2807_vm12 = vmor %vm2805_vm7, %vm2806_vm8 }
 0xa64   : > { %v2801_v27 = vmul.f32 %v3830_v21, %v2800_v49  ;;  %3837 = vrsqrt.f32 %v5833_v45  ;;  %v2824_v20 = vmul.f32 %v3828_v57, %v2823_v4  ;;  %v2830_v43 = vmul.f32 %v5838_v52, %v5829_v33  ;;  %vm2787_vm13 = vmor %vm2785_vm9, %vm2786_vm10 }
 0xa65   : > { %v2781_v19 = vmul.f32 %v3832_v55, %v2780_v58  ;;  %3839 = vrsqrt.f32 %v5840_v2  ;;  %vm2815_vm15 = vweird.f32 %v5831_v56  ;;  %vm2836_vm1 = vweird.f32 %v5838_v52 }
 0xa66   : > { %v2802_v22 = vmul.f32 0.5, %v2801_v27  ;;  %v2828_v61 = vsel %vm2827_vm11, %v3828_v57, %v2824_v20  ;;  %v2831_v24 = vmul.f32 %v5838_v52, %v2830_v43  ;;  %v5871_v10 = vmax.f32 %v2744_v42, 1e-24  ;;  %vm2837_vm4 = vmor %vm2835_vm14, %vm2836_vm1 }
 0xa67   : > { %v2782_v62 = vmul.f32 0.5, %v2781_v19  ;;  %v2943_v30 = vmul.f32 %v2828_v61, %v5765_v44  ;;  %vm2865_vm7 = vweird.f32 %v5840_v2 }
 0xa68   : > { %v2746_v1 = vpop.xlane.xlu1 %2745  ;;  %v2803_v50 = vsub.f32 1.5, %v2802_v22  ;;  %v2832_v47 = vmul.f32 0.5, %v2831_v24 }
 0xa69   : > { %v5842_v16 = vpop.eup %3835  ;;  %v2783_v5 = vsub.f32 1.5, %v2782_v62  ;;  %v5853_v32 = vmax.f32 %v2746_v1, 1e-24  ;;  %2959 = vst [vmem:[#allocation10 + $0x20] sm:$0xff] %v2943_v30 }
 0xa6a   : > { %v5846_v13 = vpop.eup %3837  ;;  %v2804_v63 = vmul.f32 %v3830_v21, %v2803_v50  ;;  %v2810_v23 = vmul.f32 %v5842_v16, %v5831_v56  ;;  %v2833_v44 = vsub.f32 1.5, %v2832_v47  ;;  %vm2816_vm2 = vweird.f32 %v5842_v16 }
 0xa6b   : > { %v2784_v15 = vmul.f32 %v3832_v55, %v2783_v5  ;;  %v2790_v34 = vmul.f32 %v5846_v13, %v5833_v45  ;;  %3841 = vrsqrt.f32 %v5853_v32  ;;  %v3840_v51 = vpop.eup %3839  ;;  %vm2796_vm3 = vweird.f32 %v5846_v13  ;;  %vm2817_vm0 = vmor %vm2815_vm15, %vm2816_vm2 }
 0xa6c   : > { %v2808_v37 = vsel %vm2807_vm12, %v3830_v21, %v2804_v63  ;;  %v2811_v48 = vmul.f32 %v5842_v16, %v2810_v23  ;;  %v2750_v21 = vpop.xlane.xlu0 %2749  ;;  %v2834_v41 = vmul.f32 %v5838_v52, %v2833_v44  ;;  %v2860_v49 = vmul.f32 %v3840_v51, %v5840_v2  ;;  %vm2797_vm6 = vmor %vm2795_vm5, %vm2796_vm3 }
 0xa6d   : > { %v2941_v17 = vmul.f32 %v2808_v37, %v5767_v7  ;;  %v2788_v35 = vsel %vm2787_vm13, %v3832_v55, %v2784_v15  ;;  %v2791_v29 = vmul.f32 %v5846_v13, %v2790_v34  ;;  %v2754_v7 = vpop.xlane.xlu2 %2753  ;;  %3843 = vrsqrt.f32 %v5871_v10 }
 0xa6e   : > { %v2939_v6 = vmul.f32 %v2788_v35, %v5769_v31  ;;  %v2812_v9 = vmul.f32 0.5, %v2811_v48  ;;  %v5874_v31 = vmax.f32 %v2754_v7, 1e-24  ;;  %v2838_v58 = vsel %vm2837_vm4, %v5838_v52, %v2834_v41 }
 0xa6f   : > { %2957 = vst [vmem:[#allocation10 + $0x10] sm:$0xff] %v2941_v17  ;;  %v2792_v60 = vmul.f32 0.5, %v2791_v29  ;;  %v2861_v18 = vmul.f32 %v3840_v51, %v2860_v49  ;;  %v2944_v33 = vmul.f32 %v2838_v58, %v5777_v3  ;;  %v5900_v1 = vmax.f32 %v2750_v21, 1e-24 }
 0xa70   : > { %v2752_v26 = vpop.xlane.xlu1 %2751  ;;  %2955 = vst [vmem:[#allocation10] sm:$0xff] %v2939_v6  ;;  %v2813_v57 = vsub.f32 1.5, %v2812_v9  ;;  %3845 = vrsqrt.f32 %v5874_v31  ;;  %vm2866_vm8 = vweird.f32 %v3840_v51  ;;  %vm2855_vm9 = vweird.f32 %v5853_v32 }
 0xa71   : > { %v5876_v46 = vmax.f32 %v2752_v26, 1e-24  ;;  %v2793_v55 = vsub.f32 1.5, %v2792_v60  ;;  %v3842_v19 = vpop.eup %3841  ;;  %v2862_v62 = vmul.f32 0.5, %v2861_v18  ;;  %2960 = vst [vmem:[#allocation10 + $0x28] sm:$0xff] %v2944_v33  ;;  %vm2867_vm10 = vmor %vm2865_vm7, %vm2866_vm8  ;;  %vm2845_vm12 = vweird.f32 %v5871_v10 }
 0xa72   : > { %v2814_v12 = vmul.f32 %v5842_v16, %v2813_v57  ;;  %v2850_v56 = vmul.f32 %v3842_v19, %v5853_v32  ;;  %vm2856_vm11 = vweird.f32 %v3842_v19  ;;  %vm2895_vm13 = vweird.f32 %v5874_v31 }
 0xa73   : > { %v2794_v27 = vmul.f32 %v5846_v13, %v2793_v55  ;;  %3847 = vrsqrt.f32 %v5876_v46  ;;  %v2863_v52 = vsub.f32 1.5, %v2862_v62  ;;  %vm2885_vm14 = vweird.f32 %v5876_v46  ;;  %vm2857_vm15 = vmor %vm2855_vm9, %vm2856_vm11 }
 0xa74   : > { %v2818_v22 = vsel %vm2817_vm0, %v5842_v16, %v2814_v12  ;;  %v2851_v3 = vmul.f32 %v3842_v19, %v2850_v56  ;;  %v3844_v16 = vpop.eup %3843  ;;  %3849 = vrsqrt.f32 %v5900_v1  ;;  %v2756_v5 = vpop.xlane.xlu0 %2755  ;;  %vm2875_vm5 = vweird.f32 %v5900_v1  ;;  %v2971_v56 = vld [vmem:[#allocation11] sm:$0xff] }
 0xa75   : > { %v2942_v45 = vmul.f32 %v2818_v22, %v5779_v53  ;;  %v2798_v4 = vsel %vm2797_vm6, %v5846_v13, %v2794_v27  ;;  %v2760_v50 = vpop.xlane.xlu2 %2759  ;;  %v2864_v43 = vmul.f32 %v3840_v51, %v2863_v52  ;;  %v2840_v63 = vmul.f32 %v3844_v16, %v5871_v10 }
 0xa76   : > { %v2940_v38 = vmul.f32 %v2798_v4, %v5781_v54  ;;  %v5904_v53 = vmax.f32 %v2760_v50, 1e-24  ;;  %v3846_v54 = vpop.eup %3845  ;;  %v2852_v13 = vmul.f32 0.5, %v2851_v3  ;;  %vm2846_vm1 = vweird.f32 %v3844_v16  ;;  %v2973_v3 = vld [vmem:[#allocation11 + $0x10] sm:$0xff] }
 0xa77   : > { %2958 = vst [vmem:[#allocation10 + $0x18] sm:$0xff] %v2942_v45  ;;  %v2890_v61 = vmul.f32 %v3846_v54, %v5874_v31  ;;  %v2868_v15 = vsel %vm2867_vm10, %v3840_v51, %v2864_v43  ;;  %v2841_v34 = vmul.f32 %v3844_v16, %v2840_v63  ;;  %vm2896_vm2 = vweird.f32 %v3846_v54  ;;  %vm2847_vm4 = vmor %vm2845_vm12, %vm2846_vm1 }
 0xa78   : > { %v2758_v42 = vpop.xlane.xlu1 %2757  ;;  %2956 = vst [vmem:[#allocation10 + $0x8] sm:$0xff] %v2940_v38  ;;  %3851 = vrsqrt.f32 %v5904_v53  ;;  %v2853_v24 = vsub.f32 1.5, %v2852_v13  ;;  %v2947_v37 = vmul.f32 %v2868_v15, %v5789_v14  ;;  %v5930_v29 = vmax.f32 %v2756_v5, 1e-24  ;;  %vm2897_vm0 = vmor %vm2895_vm13, %vm2896_vm2  ;;  %v2972_v38 = vld [vmem:[#allocation11 + $0x8] sm:$0xff] }
 0xa79   : > { %v5906_v20 = vmax.f32 %v2758_v42, 1e-24  ;;  %v5910_v23 = vpop.eup %3847  ;;  %v2891_v48 = vmul.f32 %v3846_v54, %v2890_v61  ;;  %v2842_v17 = vmul.f32 0.5, %v2841_v34  ;;  %vm2925_vm8 = vweird.f32 %v5904_v53 }
 0xa7a   : > { %v2880_v30 = vmul.f32 %v5910_v23, %v5876_v46  ;;  %v2854_v2 = vmul.f32 %v3842_v19, %v2853_v24  ;;  %v5925_v47 = vpop.eup %3849  ;;  %2963 = vst [vmem:[#allocation10 + $0x40] sm:$0xff] %v2947_v37  ;;  %vm2886_vm3 = vweird.f32 %v5910_v23  ;;  %v2987_v5 = vmul.f32 0.5, %v2971_v56 }
 0xa7b   : > { %3853 = vrsqrt.f32 %v5906_v20  ;;  %v2892_v14 = vmul.f32 0.5, %v2891_v48  ;;  %v2843_v9 = vsub.f32 1.5, %v2842_v17  ;;  %v2870_v60 = vmul.f32 %v5925_v47, %v5900_v1  ;;  %vm2887_vm6 = vmor %vm2885_vm14, %vm2886_vm3 }
 0xa7c   : > { %v2881_v35 = vmul.f32 %v5910_v23, %v2880_v30  ;;  %v2858_v6 = vsel %vm2857_vm15, %v3842_v19, %v2854_v2  ;;  %3855 = vrsqrt.f32 %v5930_v29  ;;  %v2762_v32 = vpop.xlane.xlu0 %2761  ;;  %vm2876_vm7 = vweird.f32 %v5925_v47  ;;  %3003 = vst [vmem:[#allocation11] sm:$0xff] %v2987_v5  ;;  %v2976_v30 = vld [vmem:[#allocation11 + $0x28] sm:$0xff] }
 0xa7d   : > { %v2946_v26 = vmul.f32 %v2858_v6, %v5791_v8  ;;  %v2893_v51 = vsub.f32 1.5, %v2892_v14  ;;  %v2844_v57 = vmul.f32 %v3844_v16, %v2843_v9  ;;  %v2871_v41 = vmul.f32 %v5925_v47, %v2870_v60  ;;  %vm2877_vm10 = vmor %vm2875_vm5, %vm2876_vm7  ;;  %v2978_v14 = vld [vmem:[#allocation11 + $0x38] sm:$0xff]  ;;  %v2979_v60 = vld [vmem:[#allocation11 + $0x40] sm:$0xff] }
 0xa7e   : > { %v2882_v44 = vmul.f32 0.5, %v2881_v35  ;;  %v5934_v7 = vpop.eup %3851  ;;  %v5948_v12 = vmax.f32 %v2762_v32, 1e-24  ;;  %v2989_v61 = vmul.f32 0.5, %v2973_v3  ;;  %vm2915_vm12 = vweird.f32 %v5906_v20 }
 0xa7f   : > { %v2920_v55 = vmul.f32 %v5934_v7, %v5904_v53  ;;  %2962 = vst [vmem:[#allocation10 + $0x38] sm:$0xff] %v2946_v26  ;;  %v2894_v8 = vmul.f32 %v3846_v54, %v2893_v51  ;;  %v2848_v58 = vsel %vm2847_vm4, %v3844_v16, %v2844_v57  ;;  %v2872_v18 = vmul.f32 0.5, %v2871_v41  ;;  %v2974_v16 = vld [vmem:[#allocation11 + $0x18] sm:$0xff]  ;;  %v2977_v53 = vld [vmem:[#allocation11 + $0x30] sm:$0xff]  ;;  %v2980_v26 = vld [vmem:[#allocation11 + $0x48] sm:$0xff] }
 0xa80   : > { %v2883_v21 = vsub.f32 1.5, %v2882_v44  ;;  %v2945_v33 = vmul.f32 %v2848_v58, %v5793_v59  ;;  %3857 = vrsqrt.f32 %v5948_v12  ;;  %vm2926_vm9 = vweird.f32 %v5934_v7  ;;  %3005 = vst [vmem:[#allocation11 + $0x10] sm:$0xff] %v2989_v61  ;;  %v2981_v57 = vld [vmem:[#allocation11 + $0x50] sm:$0xff]  ;;  %v2982_v41 = vld [vmem:[#allocation11 + $0x58] sm:$0xff] }
 0xa81   : > { %v5942_v49 = vpop.eup %3853  ;;  %v2921_v19 = vmul.f32 %v5934_v7, %v2920_v55  ;;  %v2898_v22 = vsel %vm2897_vm0, %v3846_v54, %v2894_v8  ;;  %v2873_v4 = vsub.f32 1.5, %v2872_v18  ;;  %v2988_v54 = vmul.f32 0.5, %v2972_v38  ;;  %vm2927_vm11 = vmor %vm2925_vm8, %vm2926_vm9  ;;  %v2983_v8 = vld [vmem:[#allocation11 + $0x60] sm:$0xff]  ;;  %v2984_v18 = vld [vmem:[#allocation11 + $0x68] sm:$0xff] }
 0xa82   : > { %v2884_v27 = vmul.f32 %v5910_v23, %v2883_v21  ;;  %v2910_v10 = vmul.f32 %v5942_v49, %v5906_v20  ;;  %v2950_v31 = vmul.f32 %v2898_v22, %v5801_v40  ;;  %v5965_v59 = vpop.eup %3855  ;;  %2961 = vst [vmem:[#allocation10 + $0x30] sm:$0xff] %v2945_v33  ;;  %vm2916_vm13 = vweird.f32 %v5942_v49  ;;  %v2985_v33 = vld [vmem:[#allocation11 + $0x70] sm:$0xff]  ;;  %v2986_v22 = vld [vmem:[#allocation11 + $0x78] sm:$0xff] }
 0xa83   : > { %v2922_v62 = vmul.f32 0.5, %v2921_v19  ;;  %v2874_v40 = vmul.f32 %v5925_v47, %v2873_v4  ;;  %v2900_v42 = vmul.f32 %v5965_v59, %v5930_v29  ;;  %v2990_v37 = vmul.f32 0.5, %v2974_v16  ;;  %3004 = vst [vmem:[#allocation11 + $0x8] sm:$0xff] %v2988_v54  ;;  %vm2917_vm14 = vmor %vm2915_vm12, %vm2916_vm13 }
 0xa84   : > { %v2888_v45 = vsel %vm2887_vm6, %v5910_v23, %v2884_v27  ;;  %v2911_v46 = vmul.f32 %v5942_v49, %v2910_v10  ;;  %2966 = vst [vmem:[#allocation10 + $0x58] sm:$0xff] %v2950_v31  ;;  %v2975_v23 = vld [vmem:[#allocation11 + $0x20] sm:$0xff]  ;;  %vm2906_vm15 = vweird.f32 %v5965_v59  ;;  %vm2905_vm1 = vweird.f32 %v5930_v29 }
 0xa85   : > { %v2949_v52 = vmul.f32 %v2888_v45, %v5803_v25  ;;  %v2923_v50 = vsub.f32 1.5, %v2922_v62  ;;  %v2878_v43 = vsel %vm2877_vm10, %v5925_v47, %v2874_v40  ;;  %v2901_v63 = vmul.f32 %v5965_v59, %v2900_v42  ;;  %3006 = vst [vmem:[#allocation11 + $0x18] sm:$0xff] %v2990_v37  ;;  %vm2907_vm2 = vmor %vm2905_vm1, %vm2906_vm15 }
 0xa86   : > { %v2912_v25 = vmul.f32 0.5, %v2911_v46  ;;  %v2948_v15 = vmul.f32 %v2878_v43, %v5805_v11  ;;  %v3858_v48 = vpop.eup %3857  ;;  %v2991_v17 = vmul.f32 0.5, %v2975_v23  ;;  %v2992_v6 = vmul.f32 0.5, %v2976_v30 }
 0xa87   : > { %2965 = vst [vmem:[#allocation10 + $0x50] sm:$0xff] %v2949_v52  ;;  %v2924_v13 = vmul.f32 %v5934_v7, %v2923_v50  ;;  %v2902_v34 = vmul.f32 0.5, %v2901_v63  ;;  %v2930_v20 = vmul.f32 %v3858_v48, %v5948_v12  ;;  %v2994_v21 = vmul.f32 0.5, %v2978_v14 }
 0xa88   : > { %v2913_v24 = vsub.f32 1.5, %v2912_v25  ;;  %2964 = vst [vmem:[#allocation10 + $0x48] sm:$0xff] %v2948_v15  ;;  %v2995_v55 = vmul.f32 0.5, %v2979_v60  ;;  %vm2936_vm3 = vweird.f32 %v3858_v48  ;;  %v2997_v58 = vmul.f32 0.5, %v2981_v57 }
 0xa89   : > { %v2928_v1 = vsel %vm2927_vm11, %v5934_v7, %v2924_v13  ;;  %v2903_v35 = vsub.f32 1.5, %v2902_v34  ;;  %v2931_v44 = vmul.f32 %v3858_v48, %v2930_v20  ;;  %v2993_v7 = vmul.f32 0.5, %v2977_v53  ;;  %3007 = vst [vmem:[#allocation11 + $0x20] sm:$0xff] %v2991_v17 }
 0xa8a   : > { %v2953_v2 = vmul.f32 %v2928_v1, %v5813_v39  ;;  %v2914_v11 = vmul.f32 %v5942_v49, %v2913_v24  ;;  %3008 = vst [vmem:[#allocation11 + $0x28] sm:$0xff] %v2992_v6  ;;  %vm2935_vm4 = vweird.f32 %v5948_v12  ;;  %v2998_v19 = vmul.f32 0.5, %v2982_v41 }
 0xa8b   : > { %v2904_v9 = vmul.f32 %v5965_v59, %v2903_v35  ;;  %v2932_v32 = vmul.f32 0.5, %v2931_v44  ;;  %3009 = vst [vmem:[#allocation11 + $0x30] sm:$0xff] %v2993_v7  ;;  %vm2937_vm5 = vmor %vm2935_vm4, %vm2936_vm3  ;;  %v2999_v10 = vmul.f32 0.5, %v2983_v8  ;;  %v3000_v45 = vmul.f32 0.5, %v2984_v18 }
 0xa8c   : > { %2969 = vst [vmem:[#allocation10 + $0x70] sm:$0xff] %v2953_v2  ;;  %v2918_v47 = vsel %vm2917_vm14, %v5942_v49, %v2914_v11  ;;  %v2996_v49 = vmul.f32 0.5, %v2980_v26  ;;  %v3001_v4 = vmul.f32 0.5, %v2985_v33  ;;  %v3002_v62 = vmul.f32 0.5, %v2986_v22 }
 0xa8d   : > { %v2952_v39 = vmul.f32 %v2918_v47, %v5815_v0  ;;  %v2908_v51 = vsel %vm2907_vm2, %v5965_v59, %v2904_v9  ;;  %v2933_v0 = vsub.f32 1.5, %v2932_v32  ;;  %3010 = vst [vmem:[#allocation11 + $0x38] sm:$0xff] %v2994_v21 }
 0xa8e   : > { %v2951_v29 = vmul.f32 %v2908_v51, %v5817_v28  ;;  %3011 = vst [vmem:[#allocation11 + $0x40] sm:$0xff] %v2995_v55 }
 0xa8f   : > { %2968 = vst [vmem:[#allocation10 + $0x68] sm:$0xff] %v2952_v39  ;;  %v2934_v27 = vmul.f32 %v3858_v48, %v2933_v0 }
 0xa90   : > { %2967 = vst [vmem:[#allocation10 + $0x60] sm:$0xff] %v2951_v29 }
 0xa91   : > { %v2938_v28 = vsel %vm2937_vm5, %v3858_v48, %v2934_v27  ;;  %3012 = vst [vmem:[#allocation11 + $0x48] sm:$0xff] %v2996_v49 }
 0xa92   : > { %v2954_v31 = vmul.f32 %v2938_v28, %v5825_v36  ;;  %3013 = vst [vmem:[#allocation11 + $0x50] sm:$0xff] %v2997_v58 }
 0xa93   : > { %3014 = vst [vmem:[#allocation11 + $0x58] sm:$0xff] %v2998_v19 }
 0xa94   : > { %2970 = vst [vmem:[#allocation10 + $0x78] sm:$0xff] %v2954_v31 }
 0xa95   : > { %3015 = vst [vmem:[#allocation11 + $0x60] sm:$0xff] %v2999_v10 }
 0xa96   : > { %3016 = vst [vmem:[#allocation11 + $0x68] sm:$0xff] %v3000_v45 }
 0xa97   : > { %3017 = vst [vmem:[#allocation11 + $0x70] sm:$0xff] %v3001_v4 }
 0xa98   : > { %3018 = vst [vmem:[#allocation11 + $0x78] sm:$0xff] %v3002_v62 }
 0xa99 PF: > { %s6086_s27 = sadd.s32 4294967295, %s4039_s29   ;;  %s3026_s14 = sshll.u32 %s6048_s6, 4  ;;  %s3027_s14 = int_to_ptr.hbm [resolvable:$true] %s3026_s14 }
 0xa9a   : > { %p6002_p3 = scmp.eq.s32.totalorder %s6086_s27, 1  ;;  %s4045_s15 = smov [#allocation10]  }
 0xa9b   : > { %s3024_s19 = sshll.u32 %s4045_s15, 4  ;;  %s4046_s21 = smov 128   ;;  %s3025_s19 = int_to_ptr.vmem [resolvable:$true] %s3024_s19 }
 0xa9c   : > { %s4047_s4 = smov 8   ;;  %s4048_s7 = smov [#allocation11]  }
 0xa9d   : > { %3508 = dma.vmem_to_hbm [thread:$0]  (%p6002_p3), %s3025_s19, 2048, %s3027_s14, [#allocation7], %s4046_s21, %s4046_s21, %s4047_s4  }
 0xa9e   : > { %s3038_s30 = sshll.u32 %s4048_s7, 4  ;;  %s6088_s9 = sld [smem:[#allocation23_spill]]  ;;  %s3039_s30 = int_to_ptr.vmem [resolvable:$true] %s3038_s30 }
 0xaa4   : > { %s3040_s17 = sshll.u32 %s6088_s9, 4  ;;  %s3041_s17 = int_to_ptr.hbm [resolvable:$true] %s3040_s17 }
 0xaa5   : > { %3510 = dma.vmem_to_hbm [thread:$0]  (%p6002_p3), %s3039_s30, 2048, %s3041_s17, [#allocation12], %s4046_s21, %s4046_s21, %s4047_s4  }
 0xaa6   : > { %4010 = dma.done.wait (%p6002_p3), [#allocation7], 2048  }
 0xaa7   : > { %4012 = vsyncadd (%p6002_p3), [#allocation7], 4294965248 }
 0xaa8   : > { %4014 = dma.done.wait (%p6002_p3), [#allocation12], 2048  }
 0xaa9   : > { %4016 = vsyncadd (%p6002_p3), [#allocation12], 4294965248 }
 0xaaa PF: > { %s24_s29 = sadd.s32 1, %s4039_s29   ;;  %s6089_s27 = sld [smem:[#allocation20_spill]] }
 0xaab   : > { %p21_p4 = scmp.ge.s32.totalorder %s24_s29, 4   ;;  %s6090_s28 = sld [smem:[#allocation21_spill]] }
 0xaac   : > { %s6091_s24 = smov %s4023_s25  ;;  %s6092_s25 = smov %s4027_s26 }
 0xaad   : > { %s6093_s26 = smov %s4162_s10  ;;  %23 = sbr.rel (!%p21_p4) target bundleno = 10 (0xa), region = 133 }
 0xab2   :  { %3062 = vsyncpa [#allocation6], 1 }
 0xab3   :  { %3064 = vsyncpa [#allocation6 + $0x1], 1 }
 0xab4   :  { %3065 = vsyncpa [#allocation9], 1 }
 0xab5   :  { %3066 = vsyncpa [#allocation7], 1 }
 0xab6   :  { %3068 = vsyncpa [#allocation7 + $0x1], 1 }
 0xab7   :  { %3069 = vsyncpa [#allocation12], 1 }

</bundles_post_ra>
